<compile_context>
chip_gen: v7x
topology: tpu7x:2x2x1
jax: 0.10.0
libtpu: 0.0.40
codegen_flags: <defaults>
</compile_context>

<pallas_src>
import functools

import jax
import jax.numpy as jnp
from jax import lax
from jax.experimental import pallas as pl
from jax.experimental.pallas import tpu as pltpu

_EPS = 1e-5
_LANE = 128


def _round_up(x, m):
    return (x + m - 1) // m * m


def _fill_padded(pad_ref, interior):
    """Assemble a spatially zero-padded (H+2, W+2, Cp) conv input in VMEM.

    Only the 1-px border is zeroed; the interior is written from `interior`.
    Border + interior are fully rewritten every grid step, so the scratch
    carries no state across steps (batch axis stays safely 'parallel').
    """
    Hp, Wp, Cp = pad_ref.shape
    H, W = Hp - 2, Wp - 2
    zrow = jnp.zeros((1, Wp, Cp), pad_ref.dtype)
    zcol = jnp.zeros((H, 1, Cp), pad_ref.dtype)
    pad_ref[0:1, :, :] = zrow
    pad_ref[H + 1:H + 2, :, :] = zrow
    pad_ref[1:H + 1, 0:1, :] = zcol
    pad_ref[1:H + 1, W + 1:W + 2, :] = zcol
    pad_ref[1:H + 1, 1:W + 1, :] = interior.astype(pad_ref.dtype)


def _conv3x3(pad_ref, w_ref, H, W, Cp):
    """3x3 conv (pad=1, stride=1) as 9 accumulating per-tap MXU dots.

    No im2col patch is materialized: each tap window is sliced from the padded
    VMEM buffer, cast to bf16 and immediately consumed by a K=Cp dot into the
    f32 accumulator.  Weight rows are tap-major: rows [t*Cp, (t+1)*Cp) hold
    tap t = dy*3 + dx.
    """
    acc = jnp.zeros((H * W, Cp), jnp.float32)
    for dy in range(3):
        for dx in range(3):
            t = dy * 3 + dx
            tap = pad_ref[dy:dy + H, dx:dx + W, :].reshape(H * W, Cp)
            acc = acc + jnp.dot(tap.astype(jnp.bfloat16),
                                w_ref[t * Cp:(t + 1) * Cp, :],
                                preferred_element_type=jnp.float32)
    return acc


def _basic_block_kernel(x_ref, w1_ref, b1_ref, w2_ref, b2_ref,
                        wsc_ref, bsc_ref, o_ref, xpad_ref, h1pad_ref,
                        *, has_proj):
    # x_ref    : (1, H, W, Cp)  bf16, channel-padded, NOT spatially padded
    # w1_ref   : (9*Cp, Cp)     bf16 conv1 weights, BN1 scale folded, tap-major
    # w2_ref   : (9*Cp, Cp)     bf16 conv2 weights, BN2 scale folded
    # wsc_ref  : (Cp, Cp)       bf16 shortcut 1x1 weights, BNsc scale folded
    # b*_ref   : (1, Cp)        f32 folded BatchNorm biases
    # o_ref    : (1, H, W, Cp)  f32
    # xpad_ref, h1pad_ref : (H+2, W+2, Cp) f32 VMEM scratch (padded conv inputs)
    _, H, W, Cp = o_ref.shape
    x = x_ref[0]                                               # (H, W, Cp) bf16

    # ---- conv1 + BN1 (scale folded) + ReLU ----
    _fill_padded(xpad_ref, x)
    h1 = jnp.maximum(_conv3x3(xpad_ref, w1_ref, H, W, Cp) + b1_ref[...], 0.0)

    # ---- conv2 + BN2 (scale folded) ----
    _fill_padded(h1pad_ref, h1.reshape(H, W, Cp))
    res = _conv3x3(h1pad_ref, w2_ref, H, W, Cp) + b2_ref[...]  # (H*W, Cp) f32

    # ---- shortcut: reuse the resident unpadded input block ----
    xc = x.reshape(H * W, Cp)
    if has_proj:
        sc = (jnp.dot(xc, wsc_ref[...], preferred_element_type=jnp.float32)
              + bsc_ref[...])
    else:
        sc = xc.astype(jnp.float32)                            # identity: no matmul

    o_ref[0] = jnp.maximum(res + sc, 0.0).reshape(H, W, Cp).astype(o_ref.dtype)


def basic_block_pallas(x_nchw, kernel_params, stride=1):
    """Forward pass. x_nchw: (N, Cin, H, W) float32."""
    assert stride == 1  # TODO(synk): strided first conv / shortcut not implemented
    N, Cin, H, W = x_nchw.shape
    (w1, b1, w2, b2, wsc, bsc, Cout, has_proj) = kernel_params
    Cp = b1.shape[-1]                                          # lane-dense channel width

    # NHWC, channel pad to Cp, bf16 staging.  Spatial padding happens in VMEM
    # inside the kernel (no padded HBM copy; rows keep stride W).
    x = jnp.transpose(x_nchw, (0, 2, 3, 1))
    xb = jnp.pad(x, ((0, 0), (0, 0), (0, 0), (0, Cp - Cin))).astype(jnp.bfloat16)

    kernel = functools.partial(_basic_block_kernel, has_proj=has_proj)

    def const_spec(shape):
        # Constant index_map -> the pipeliner fetches these once and reuses them.
        return pl.BlockSpec(shape, lambda n: (0,) * len(shape))

    out = pl.pallas_call(
        kernel,
        out_shape=jax.ShapeDtypeStruct((N, H, W, Cp), jnp.float32),
        grid_spec=pltpu.PrefetchScalarGridSpec(
            num_scalar_prefetch=0,
            grid=(N,),
            in_specs=[
                pl.BlockSpec((1, H, W, Cp), lambda n: (n, 0, 0, 0)),
                const_spec((9 * Cp, Cp)),
                const_spec((1, Cp)),
                const_spec((9 * Cp, Cp)),
                const_spec((1, Cp)),
                const_spec((Cp, Cp)),
                const_spec((1, Cp)),
            ],
            out_specs=pl.BlockSpec((1, H, W, Cp), lambda n: (n, 0, 0, 0)),
            scratch_shapes=[
                pltpu.VMEM((H + 2, W + 2, Cp), jnp.float32),   # padded conv1 input
                pltpu.VMEM((H + 2, W + 2, Cp), jnp.float32),   # padded conv2 input
            ],
        ),
        compiler_params=pltpu.CompilerParams(
            dimension_semantics=("parallel",),                 # batch elems independent
            vmem_limit_bytes=32 * 1024 * 1024,
        ),
    )(xb, w1, b1, w2, b2, wsc, bsc)

    out = out[:, :, :, :Cout]                                  # drop channel padding
    return jnp.transpose(out, (0, 3, 1, 2))                    # NCHW


# ------------------------- parameter setup (plain JAX glue) -------------------------

def init_params(key, in_channels, out_channels, stride=1):
    """Deterministic synthetic parameters mirroring BasicBlock.__init__ shapes."""
    Cin, Cmid, Cout = in_channels, out_channels, out_channels  # expansion = 1
    ks = jax.random.split(key, 16)
    p = {
        "w1":  0.1 * jax.random.normal(ks[0], (Cmid, Cin, 3, 3), jnp.float32),
        "g1":  1.0 + 0.1 * jax.random.normal(ks[1], (Cmid,), jnp.float32),
        "b1":  0.1 * jax.random.normal(ks[2], (Cmid,), jnp.float32),
        "rm1": 0.1 * jax.random.normal(ks[3], (Cmid,), jnp.float32),
        "rv1": 1.0 + 0.5 * jax.random.uniform(ks[4], (Cmid,), jnp.float32),
        "w2":  0.1 * jax.random.normal(ks[5], (Cout, Cmid, 3, 3), jnp.float32),
        "g2":  1.0 + 0.1 * jax.random.normal(ks[6], (Cout,), jnp.float32),
        "b2":  0.1 * jax.random.normal(ks[7], (Cout,), jnp.float32),
        "rm2": 0.1 * jax.random.normal(ks[8], (Cout,), jnp.float32),
        "rv2": 1.0 + 0.5 * jax.random.uniform(ks[9], (Cout,), jnp.float32),
    }
    if stride != 1 or in_channels != out_channels:
        p.update({
            "wsc":  0.1 * jax.random.normal(ks[10], (Cout, Cin, 1, 1), jnp.float32),
            "gsc":  1.0 + 0.1 * jax.random.normal(ks[11], (Cout,), jnp.float32),
            "bsc":  0.1 * jax.random.normal(ks[12], (Cout,), jnp.float32),
            "rmsc": 0.1 * jax.random.normal(ks[13], (Cout,), jnp.float32),
            "rvsc": 1.0 + 0.5 * jax.random.uniform(ks[14], (Cout,), jnp.float32),
        })
    else:
        p["wsc"] = None
    return p


def fold_params(raw, in_channels, out_channels):
    """Fold BN scale into weights / keep bias; pad channels to 128; bf16 weights."""
    Cin, Cmid, Cout = in_channels, out_channels, out_channels
    Cp = _round_up(max(Cin, Cmid, Cout), _LANE)

    def bn_scale_bias(g, b, rm, rv):
        s = g / jnp.sqrt(rv + _EPS)
        return s, b - rm * s

    def pad_bias(b, C):
        return jnp.pad(b, (0, Cp - C)).reshape(1, Cp).astype(jnp.float32)

    def pack_conv3(w, s, ci, co):
        # (co, ci, 3, 3): fold BN scale into output channels (pre-bf16-cast),
        # reorder to (kh, kw, ci, co), zero-pad channels, flatten taps into K.
        w = w * s[:, None, None, None]
        w = jnp.transpose(w, (2, 3, 1, 0))
        w = jnp.pad(w, ((0, 0), (0, 0), (0, Cp - ci), (0, Cp - co)))
        return w.reshape(9 * Cp, Cp).astype(jnp.bfloat16)

    s1, bb1 = bn_scale_bias(raw["g1"], raw["b1"], raw["rm1"], raw["rv1"])
    s2, bb2 = bn_scale_bias(raw["g2"], raw["b2"], raw["rm2"], raw["rv2"])
    w1 = pack_conv3(raw["w1"], s1, Cin, Cmid)
    w2 = pack_conv3(raw["w2"], s2, Cmid, Cout)
    b1 = pad_bias(bb1, Cmid)
    b2 = pad_bias(bb2, Cout)

    if raw["wsc"] is None:
        has_proj = False
        wsc = jnp.zeros((Cp, Cp), jnp.bfloat16)      # unused by the identity variant
        bsc = jnp.zeros((1, Cp), jnp.float32)
    else:
        has_proj = True
        ssc, bbsc = bn_scale_bias(raw["gsc"], raw["bsc"], raw["rmsc"], raw["rvsc"])
        wsc = raw["wsc"][:, :, 0, 0] * ssc[:, None]              # (Cout, Cin), scaled
        wsc = jnp.transpose(wsc, (1, 0))                          # (Cin, Cout)
        wsc = jnp.pad(wsc, ((0, Cp - Cin), (0, Cp - Cout))).astype(jnp.bfloat16)
        bsc = pad_bias(bbsc, Cout)

    return (w1, b1, w2, b2, wsc, bsc, Cout, has_proj)


# ------------------------- pure-JAX reference (for correctness) -------------------------

def ref_forward(x, raw):
    def bn(y, g, b, rm, rv):
        inv = g / jnp.sqrt(rv + _EPS)
        return y * inv[None, :, None, None] + (b - rm * inv)[None, :, None, None]

    conv = functools.partial(lax.conv_general_dilated,
                             window_strides=(1, 1),
                             dimension_numbers=("NCHW", "OIHW", "NCHW"))
    h = jnp.maximum(bn(conv(x, raw["w1"], padding=((1, 1), (1, 1))),
                       raw["g1"], raw["b1"], raw["rm1"], raw["rv1"]), 0.0)
    res = bn(conv(h, raw["w2"], padding=((1, 1), (1, 1))),
             raw["g2"], raw["b2"], raw["rm2"], raw["rv2"])
    if raw["wsc"] is None:
        sc = x
    else:
        sc = bn(conv(x, raw["wsc"], padding=((0, 0), (0, 0))),
                raw["gsc"], raw["bsc"], raw["rmsc"], raw["rvsc"])
    return jnp.maximum(res + sc, 0.0)


def _run_case(key, in_channels, out_channels, N, H, W):
    kx, kp = jax.random.split(key)
    x = jax.random.normal(kx, (N, in_channels, H, W), jnp.float32)
    raw = init_params(kp, in_channels, out_channels, stride=1)
    kernel_params = fold_params(raw, in_channels, out_channels)

    y = basic_block_pallas(x, kernel_params, stride=1)
    y = jax.block_until_ready(y)

    y_ref = ref_forward(x, raw)
    assert y.shape == (N, out_channels, H, W)
    err = float(jnp.max(jnp.abs(y - y_ref)))
    # bf16 activations / bf16 scale-folded weights -> loosened tolerance vs f32 ref
    assert jnp.allclose(y, y_ref, atol=3e-2, rtol=3e-2), err
    return err


if __name__ == "__main__":
    key = jax.random.PRNGKey(0)
    k1, k2 = jax.random.split(key)

    # projection-shortcut case (in != out)
    _run_case(k1, in_channels=4, out_channels=8, N=2, H=16, W=16)
    # identity-shortcut case (in == out, stride == 1): skips the 1x1 matmul
    _run_case(k2, in_channels=8, out_channels=8, N=2, H=16, W=16)

    print("KERNEL_OK")
</pallas_src>

<mosaic_0001>
module attributes {stable_mosaic.version = 11 : i64} {
  func.func @_basic_block_kernel(%arg0: i32, %arg1: memref<1x16x16x128xbf16, #tpu.memory_space<vmem>>, %arg2: memref<1152x128xbf16, #tpu.memory_space<vmem>>, %arg3: memref<1x128xf32, #tpu.memory_space<vmem>>, %arg4: memref<1152x128xbf16, #tpu.memory_space<vmem>>, %arg5: memref<1x128xf32, #tpu.memory_space<vmem>>, %arg6: memref<128x128xbf16, #tpu.memory_space<vmem>>, %arg7: memref<1x128xf32, #tpu.memory_space<vmem>>, %arg8: memref<1x16x16x128xf32, #tpu.memory_space<vmem>>, %arg9: memref<18x18x128xf32, #tpu.memory_space<vmem>>, %arg10: memref<18x18x128xf32, #tpu.memory_space<vmem>>) attributes {dimension_semantics = [#tpu.dimension_semantics<parallel>], iteration_bounds = array<i64: 2>, scalar_prefetch = 0 : i64, scratch_operands = 2 : i64, tpu.core_type = #tpu.core_type<tc>, window_params = [{transform_indices = @transform_0, window_bounds = array<i64: 1, 16, 16, 128>}, {pipeline_mode = #tpu.pipeline_mode<synchronous>, transform_indices = @transform_1, window_bounds = array<i64: 1152, 128>}, {pipeline_mode = #tpu.pipeline_mode<synchronous>, transform_indices = @transform_2, window_bounds = array<i64: 1, 128>}, {pipeline_mode = #tpu.pipeline_mode<synchronous>, transform_indices = @transform_3, window_bounds = array<i64: 1152, 128>}, {pipeline_mode = #tpu.pipeline_mode<synchronous>, transform_indices = @transform_4, window_bounds = array<i64: 1, 128>}, {pipeline_mode = #tpu.pipeline_mode<synchronous>, transform_indices = @transform_5, window_bounds = array<i64: 128, 128>}, {pipeline_mode = #tpu.pipeline_mode<synchronous>, transform_indices = @transform_6, window_bounds = array<i64: 1, 128>}, {transform_indices = @transform_7, window_bounds = array<i64: 1, 16, 16, 128>}]} {
    %c0 = arith.constant 0 : index
    %c0_0 = arith.constant 0 : index
    %c0_1 = arith.constant 0 : index
    %c0_2 = arith.constant 0 : index
    %0 = vector.load %arg1[%c0, %c0_0, %c0_1, %c0_2] : memref<1x16x16x128xbf16, #tpu.memory_space<vmem>>, vector<1x16x16x128xbf16>
    %1 = vector.shape_cast %0 : vector<1x16x16x128xbf16> to vector<16x16x128xbf16>
    %cst = arith.constant 0.000000e+00 : f32
    %2 = vector.broadcast %cst : f32 to vector<1x18x128xf32>
    %cst_3 = arith.constant 0.000000e+00 : f32
    %3 = vector.broadcast %cst_3 : f32 to vector<16x1x128xf32>
    %c0_4 = arith.constant 0 : index
    %c0_5 = arith.constant 0 : index
    %c0_6 = arith.constant 0 : index
    %4 = vector.load %arg9[%c0_4, %c0_5, %c0_6] : memref<18x18x128xf32, #tpu.memory_space<vmem>>, vector<1x18x128xf32>
    tpu.vector_store %arg9[%c0_4, %c0_5, %c0_6], %2 {strides = array<i32>} : memref<18x18x128xf32, #tpu.memory_space<vmem>>, vector<1x18x128xf32>,
    %c17 = arith.constant 17 : index
    %c0_7 = arith.constant 0 : index
    %c0_8 = arith.constant 0 : index
    %5 = vector.load %arg9[%c17, %c0_7, %c0_8] : memref<18x18x128xf32, #tpu.memory_space<vmem>>, vector<1x18x128xf32>
    tpu.vector_store %arg9[%c17, %c0_7, %c0_8], %2 {strides = array<i32>} : memref<18x18x128xf32, #tpu.memory_space<vmem>>, vector<1x18x128xf32>,
    %c1 = arith.constant 1 : index
    %c0_9 = arith.constant 0 : index
    %c0_10 = arith.constant 0 : index
    %6 = vector.load %arg9[%c1, %c0_9, %c0_10] : memref<18x18x128xf32, #tpu.memory_space<vmem>>, vector<16x1x128xf32>
    tpu.vector_store %arg9[%c1, %c0_9, %c0_10], %3 {strides = array<i32>} : memref<18x18x128xf32, #tpu.memory_space<vmem>>, vector<16x1x128xf32>,
    %c1_11 = arith.constant 1 : index
    %c17_12 = arith.constant 17 : index
    %c0_13 = arith.constant 0 : index
    %7 = vector.load %arg9[%c1_11, %c17_12, %c0_13] : memref<18x18x128xf32, #tpu.memory_space<vmem>>, vector<16x1x128xf32>
    tpu.vector_store %arg9[%c1_11, %c17_12, %c0_13], %3 {strides = array<i32>} : memref<18x18x128xf32, #tpu.memory_space<vmem>>, vector<16x1x128xf32>,
    %8 = arith.extf %1 : vector<16x16x128xbf16> to vector<16x16x128xf32>
    %c1_14 = arith.constant 1 : index
    %c1_15 = arith.constant 1 : index
    %c0_16 = arith.constant 0 : index
    %9 = vector.load %arg9[%c1_14, %c1_15, %c0_16] : memref<18x18x128xf32, #tpu.memory_space<vmem>>, vector<16x16x128xf32>
    tpu.vector_store %arg9[%c1_14, %c1_15, %c0_16], %8 {strides = array<i32>} : memref<18x18x128xf32, #tpu.memory_space<vmem>>, vector<16x16x128xf32>,
    %cst_17 = arith.constant 0.000000e+00 : f32
    %10 = vector.broadcast %cst_17 : f32 to vector<256x128xf32>
    %c0_18 = arith.constant 0 : index
    %c0_19 = arith.constant 0 : index
    %c0_20 = arith.constant 0 : index
    %11 = vector.load %arg9[%c0_18, %c0_19, %c0_20] : memref<18x18x128xf32, #tpu.memory_space<vmem>>, vector<16x16x128xf32>
    %12 = vector.shape_cast %11 : vector<16x16x128xf32> to vector<256x128xf32>
    %13 = arith.truncf %12 : vector<256x128xf32> to vector<256x128xbf16>
    %c0_21 = arith.constant 0 : index
    %c0_22 = arith.constant 0 : index
    %14 = vector.load %arg2[%c0_21, %c0_22] : memref<1152x128xbf16, #tpu.memory_space<vmem>>, vector<128x128xbf16>
    %cst_23 = arith.constant dense<0.000000e+00> : vector<256x128xf32>
    %15 = tpu.matmul %13, %14, %cst_23 {dimension_numbers = #tpu.dot_dimension_numbers<[1], [0], [0], [1], [0, 0, 1, 1], [], []>} : vector<256x128xbf16>, vector<128x128xbf16>, vector<256x128xf32> -> vector<256x128xf32>
    %16 = arith.addf %10, %15 : vector<256x128xf32>
    %c0_24 = arith.constant 0 : index
    %c1_25 = arith.constant 1 : index
    %c0_26 = arith.constant 0 : index
    %17 = vector.load %arg9[%c0_24, %c1_25, %c0_26] : memref<18x18x128xf32, #tpu.memory_space<vmem>>, vector<16x16x128xf32>
    %18 = vector.shape_cast %17 : vector<16x16x128xf32> to vector<256x128xf32>
    %19 = arith.truncf %18 : vector<256x128xf32> to vector<256x128xbf16>
    %c128 = arith.constant 128 : index
    %c0_27 = arith.constant 0 : index
    %20 = vector.load %arg2[%c128, %c0_27] : memref<1152x128xbf16, #tpu.memory_space<vmem>>, vector<128x128xbf16>
    %cst_28 = arith.constant dense<0.000000e+00> : vector<256x128xf32>
    %21 = tpu.matmul %19, %20, %cst_28 {dimension_numbers = #tpu.dot_dimension_numbers<[1], [0], [0], [1], [0, 0, 1, 1], [], []>} : vector<256x128xbf16>, vector<128x128xbf16>, vector<256x128xf32> -> vector<256x128xf32>
    %22 = arith.addf %16, %21 : vector<256x128xf32>
    %c0_29 = arith.constant 0 : index
    %c2 = arith.constant 2 : index
    %c0_30 = arith.constant 0 : index
    %23 = vector.load %arg9[%c0_29, %c2, %c0_30] : memref<18x18x128xf32, #tpu.memory_space<vmem>>, vector<16x16x128xf32>
    %24 = vector.shape_cast %23 : vector<16x16x128xf32> to vector<256x128xf32>
    %25 = arith.truncf %24 : vector<256x128xf32> to vector<256x128xbf16>
    %c256 = arith.constant 256 : index
    %c0_31 = arith.constant 0 : index
    %26 = vector.load %arg2[%c256, %c0_31] : memref<1152x128xbf16, #tpu.memory_space<vmem>>, vector<128x128xbf16>
    %cst_32 = arith.constant dense<0.000000e+00> : vector<256x128xf32>
    %27 = tpu.matmul %25, %26, %cst_32 {dimension_numbers = #tpu.dot_dimension_numbers<[1], [0], [0], [1], [0, 0, 1, 1], [], []>} : vector<256x128xbf16>, vector<128x128xbf16>, vector<256x128xf32> -> vector<256x128xf32>
    %28 = arith.addf %22, %27 : vector<256x128xf32>
    %c1_33 = arith.constant 1 : index
    %c0_34 = arith.constant 0 : index
    %c0_35 = arith.constant 0 : index
    %29 = vector.load %arg9[%c1_33, %c0_34, %c0_35] : memref<18x18x128xf32, #tpu.memory_space<vmem>>, vector<16x16x128xf32>
    %30 = vector.shape_cast %29 : vector<16x16x128xf32> to vector<256x128xf32>
    %31 = arith.truncf %30 : vector<256x128xf32> to vector<256x128xbf16>
    %c384 = arith.constant 384 : index
    %c0_36 = arith.constant 0 : index
    %32 = vector.load %arg2[%c384, %c0_36] : memref<1152x128xbf16, #tpu.memory_space<vmem>>, vector<128x128xbf16>
    %cst_37 = arith.constant dense<0.000000e+00> : vector<256x128xf32>
    %33 = tpu.matmul %31, %32, %cst_37 {dimension_numbers = #tpu.dot_dimension_numbers<[1], [0], [0], [1], [0, 0, 1, 1], [], []>} : vector<256x128xbf16>, vector<128x128xbf16>, vector<256x128xf32> -> vector<256x128xf32>
    %34 = arith.addf %28, %33 : vector<256x128xf32>
    %c1_38 = arith.constant 1 : index
    %c1_39 = arith.constant 1 : index
    %c0_40 = arith.constant 0 : index
    %35 = vector.load %arg9[%c1_38, %c1_39, %c0_40] : memref<18x18x128xf32, #tpu.memory_space<vmem>>, vector<16x16x128xf32>
    %36 = vector.shape_cast %35 : vector<16x16x128xf32> to vector<256x128xf32>
    %37 = arith.truncf %36 : vector<256x128xf32> to vector<256x128xbf16>
    %c512 = arith.constant 512 : index
    %c0_41 = arith.constant 0 : index
    %38 = vector.load %arg2[%c512, %c0_41] : memref<1152x128xbf16, #tpu.memory_space<vmem>>, vector<128x128xbf16>
    %cst_42 = arith.constant dense<0.000000e+00> : vector<256x128xf32>
    %39 = tpu.matmul %37, %38, %cst_42 {dimension_numbers = #tpu.dot_dimension_numbers<[1], [0], [0], [1], [0, 0, 1, 1], [], []>} : vector<256x128xbf16>, vector<128x128xbf16>, vector<256x128xf32> -> vector<256x128xf32>
    %40 = arith.addf %34, %39 : vector<256x128xf32>
    %c1_43 = arith.constant 1 : index
    %c2_44 = arith.constant 2 : index
    %c0_45 = arith.constant 0 : index
    %41 = vector.load %arg9[%c1_43, %c2_44, %c0_45] : memref<18x18x128xf32, #tpu.memory_space<vmem>>, vector<16x16x128xf32>
    %42 = vector.shape_cast %41 : vector<16x16x128xf32> to vector<256x128xf32>
    %43 = arith.truncf %42 : vector<256x128xf32> to vector<256x128xbf16>
    %c640 = arith.constant 640 : index
    %c0_46 = arith.constant 0 : index
    %44 = vector.load %arg2[%c640, %c0_46] : memref<1152x128xbf16, #tpu.memory_space<vmem>>, vector<128x128xbf16>
    %cst_47 = arith.constant dense<0.000000e+00> : vector<256x128xf32>
    %45 = tpu.matmul %43, %44, %cst_47 {dimension_numbers = #tpu.dot_dimension_numbers<[1], [0], [0], [1], [0, 0, 1, 1], [], []>} : vector<256x128xbf16>, vector<128x128xbf16>, vector<256x128xf32> -> vector<256x128xf32>
    %46 = arith.addf %40, %45 : vector<256x128xf32>
    %c2_48 = arith.constant 2 : index
    %c0_49 = arith.constant 0 : index
    %c0_50 = arith.constant 0 : index
    %47 = vector.load %arg9[%c2_48, %c0_49, %c0_50] : memref<18x18x128xf32, #tpu.memory_space<vmem>>, vector<16x16x128xf32>
    %48 = vector.shape_cast %47 : vector<16x16x128xf32> to vector<256x128xf32>
    %49 = arith.truncf %48 : vector<256x128xf32> to vector<256x128xbf16>
    %c768 = arith.constant 768 : index
    %c0_51 = arith.constant 0 : index
    %50 = vector.load %arg2[%c768, %c0_51] : memref<1152x128xbf16, #tpu.memory_space<vmem>>, vector<128x128xbf16>
    %cst_52 = arith.constant dense<0.000000e+00> : vector<256x128xf32>
    %51 = tpu.matmul %49, %50, %cst_52 {dimension_numbers = #tpu.dot_dimension_numbers<[1], [0], [0], [1], [0, 0, 1, 1], [], []>} : vector<256x128xbf16>, vector<128x128xbf16>, vector<256x128xf32> -> vector<256x128xf32>
    %52 = arith.addf %46, %51 : vector<256x128xf32>
    %c2_53 = arith.constant 2 : index
    %c1_54 = arith.constant 1 : index
    %c0_55 = arith.constant 0 : index
    %53 = vector.load %arg9[%c2_53, %c1_54, %c0_55] : memref<18x18x128xf32, #tpu.memory_space<vmem>>, vector<16x16x128xf32>
    %54 = vector.shape_cast %53 : vector<16x16x128xf32> to vector<256x128xf32>
    %55 = arith.truncf %54 : vector<256x128xf32> to vector<256x128xbf16>
    %c896 = arith.constant 896 : index
    %c0_56 = arith.constant 0 : index
    %56 = vector.load %arg2[%c896, %c0_56] : memref<1152x128xbf16, #tpu.memory_space<vmem>>, vector<128x128xbf16>
    %cst_57 = arith.constant dense<0.000000e+00> : vector<256x128xf32>
    %57 = tpu.matmul %55, %56, %cst_57 {dimension_numbers = #tpu.dot_dimension_numbers<[1], [0], [0], [1], [0, 0, 1, 1], [], []>} : vector<256x128xbf16>, vector<128x128xbf16>, vector<256x128xf32> -> vector<256x128xf32>
    %58 = arith.addf %52, %57 : vector<256x128xf32>
    %c2_58 = arith.constant 2 : index
    %c2_59 = arith.constant 2 : index
    %c0_60 = arith.constant 0 : index
    %59 = vector.load %arg9[%c2_58, %c2_59, %c0_60] : memref<18x18x128xf32, #tpu.memory_space<vmem>>, vector<16x16x128xf32>
    %60 = vector.shape_cast %59 : vector<16x16x128xf32> to vector<256x128xf32>
    %61 = arith.truncf %60 : vector<256x128xf32> to vector<256x128xbf16>
    %c1024 = arith.constant 1024 : index
    %c0_61 = arith.constant 0 : index
    %62 = vector.load %arg2[%c1024, %c0_61] : memref<1152x128xbf16, #tpu.memory_space<vmem>>, vector<128x128xbf16>
    %cst_62 = arith.constant dense<0.000000e+00> : vector<256x128xf32>
    %63 = tpu.matmul %61, %62, %cst_62 {dimension_numbers = #tpu.dot_dimension_numbers<[1], [0], [0], [1], [0, 0, 1, 1], [], []>} : vector<256x128xbf16>, vector<128x128xbf16>, vector<256x128xf32> -> vector<256x128xf32>
    %64 = arith.addf %58, %63 : vector<256x128xf32>
    %c0_63 = arith.constant 0 : index
    %c0_64 = arith.constant 0 : index
    %65 = vector.load %arg3[%c0_63, %c0_64] : memref<1x128xf32, #tpu.memory_space<vmem>>, vector<1x128xf32>
    %66 = vector.broadcast %65 : vector<1x128xf32> to vector<256x128xf32>
    %67 = arith.addf %64, %66 : vector<256x128xf32>
    %cst_65 = arith.constant 0.000000e+00 : f32
    %68 = vector.broadcast %cst_65 : f32 to vector<256x128xf32>
    %69 = arith.maximumf %67, %68 : vector<256x128xf32>
    %70 = vector.shape_cast %69 : vector<256x128xf32> to vector<16x16x128xf32>
    %cst_66 = arith.constant 0.000000e+00 : f32
    %71 = vector.broadcast %cst_66 : f32 to vector<1x18x128xf32>
    %cst_67 = arith.constant 0.000000e+00 : f32
    %72 = vector.broadcast %cst_67 : f32 to vector<16x1x128xf32>
    %c0_68 = arith.constant 0 : index
    %c0_69 = arith.constant 0 : index
    %c0_70 = arith.constant 0 : index
    %73 = vector.load %arg10[%c0_68, %c0_69, %c0_70] : memref<18x18x128xf32, #tpu.memory_space<vmem>>, vector<1x18x128xf32>
    tpu.vector_store %arg10[%c0_68, %c0_69, %c0_70], %71 {strides = array<i32>} : memref<18x18x128xf32, #tpu.memory_space<vmem>>, vector<1x18x128xf32>,
    %c17_71 = arith.constant 17 : index
    %c0_72 = arith.constant 0 : index
    %c0_73 = arith.constant 0 : index
    %74 = vector.load %arg10[%c17_71, %c0_72, %c0_73] : memref<18x18x128xf32, #tpu.memory_space<vmem>>, vector<1x18x128xf32>
    tpu.vector_store %arg10[%c17_71, %c0_72, %c0_73], %71 {strides = array<i32>} : memref<18x18x128xf32, #tpu.memory_space<vmem>>, vector<1x18x128xf32>,
    %c1_74 = arith.constant 1 : index
    %c0_75 = arith.constant 0 : index
    %c0_76 = arith.constant 0 : index
    %75 = vector.load %arg10[%c1_74, %c0_75, %c0_76] : memref<18x18x128xf32, #tpu.memory_space<vmem>>, vector<16x1x128xf32>
    tpu.vector_store %arg10[%c1_74, %c0_75, %c0_76], %72 {strides = array<i32>} : memref<18x18x128xf32, #tpu.memory_space<vmem>>, vector<16x1x128xf32>,
    %c1_77 = arith.constant 1 : index
    %c17_78 = arith.constant 17 : index
    %c0_79 = arith.constant 0 : index
    %76 = vector.load %arg10[%c1_77, %c17_78, %c0_79] : memref<18x18x128xf32, #tpu.memory_space<vmem>>, vector<16x1x128xf32>
    tpu.vector_store %arg10[%c1_77, %c17_78, %c0_79], %72 {strides = array<i32>} : memref<18x18x128xf32, #tpu.memory_space<vmem>>, vector<16x1x128xf32>,
    %c1_80 = arith.constant 1 : index
    %c1_81 = arith.constant 1 : index
    %c0_82 = arith.constant 0 : index
    %77 = vector.load %arg10[%c1_80, %c1_81, %c0_82] : memref<18x18x128xf32, #tpu.memory_space<vmem>>, vector<16x16x128xf32>
    tpu.vector_store %arg10[%c1_80, %c1_81, %c0_82], %70 {strides = array<i32>} : memref<18x18x128xf32, #tpu.memory_space<vmem>>, vector<16x16x128xf32>,
    %cst_83 = arith.constant 0.000000e+00 : f32
    %78 = vector.broadcast %cst_83 : f32 to vector<256x128xf32>
    %c0_84 = arith.constant 0 : index
    %c0_85 = arith.constant 0 : index
    %c0_86 = arith.constant 0 : index
    %79 = vector.load %arg10[%c0_84, %c0_85, %c0_86] : memref<18x18x128xf32, #tpu.memory_space<vmem>>, vector<16x16x128xf32>
    %80 = vector.shape_cast %79 : vector<16x16x128xf32> to vector<256x128xf32>
    %81 = arith.truncf %80 : vector<256x128xf32> to vector<256x128xbf16>
    %c0_87 = arith.constant 0 : index
    %c0_88 = arith.constant 0 : index
    %82 = vector.load %arg4[%c0_87, %c0_88] : memref<1152x128xbf16, #tpu.memory_space<vmem>>, vector<128x128xbf16>
    %cst_89 = arith.constant dense<0.000000e+00> : vector<256x128xf32>
    %83 = tpu.matmul %81, %82, %cst_89 {dimension_numbers = #tpu.dot_dimension_numbers<[1], [0], [0], [1], [0, 0, 1, 1], [], []>} : vector<256x128xbf16>, vector<128x128xbf16>, vector<256x128xf32> -> vector<256x128xf32>
    %84 = arith.addf %78, %83 : vector<256x128xf32>
    %c0_90 = arith.constant 0 : index
    %c1_91 = arith.constant 1 : index
    %c0_92 = arith.constant 0 : index
    %85 = vector.load %arg10[%c0_90, %c1_91, %c0_92] : memref<18x18x128xf32, #tpu.memory_space<vmem>>, vector<16x16x128xf32>
    %86 = vector.shape_cast %85 : vector<16x16x128xf32> to vector<256x128xf32>
    %87 = arith.truncf %86 : vector<256x128xf32> to vector<256x128xbf16>
    %c128_93 = arith.constant 128 : index
    %c0_94 = arith.constant 0 : index
    %88 = vector.load %arg4[%c128_93, %c0_94] : memref<1152x128xbf16, #tpu.memory_space<vmem>>, vector<128x128xbf16>
    %cst_95 = arith.constant dense<0.000000e+00> : vector<256x128xf32>
    %89 = tpu.matmul %87, %88, %cst_95 {dimension_numbers = #tpu.dot_dimension_numbers<[1], [0], [0], [1], [0, 0, 1, 1], [], []>} : vector<256x128xbf16>, vector<128x128xbf16>, vector<256x128xf32> -> vector<256x128xf32>
    %90 = arith.addf %84, %89 : vector<256x128xf32>
    %c0_96 = arith.constant 0 : index
    %c2_97 = arith.constant 2 : index
    %c0_98 = arith.constant 0 : index
    %91 = vector.load %arg10[%c0_96, %c2_97, %c0_98] : memref<18x18x128xf32, #tpu.memory_space<vmem>>, vector<16x16x128xf32>
    %92 = vector.shape_cast %91 : vector<16x16x128xf32> to vector<256x128xf32>
    %93 = arith.truncf %92 : vector<256x128xf32> to vector<256x128xbf16>
    %c256_99 = arith.constant 256 : index
    %c0_100 = arith.constant 0 : index
    %94 = vector.load %arg4[%c256_99, %c0_100] : memref<1152x128xbf16, #tpu.memory_space<vmem>>, vector<128x128xbf16>
    %cst_101 = arith.constant dense<0.000000e+00> : vector<256x128xf32>
    %95 = tpu.matmul %93, %94, %cst_101 {dimension_numbers = #tpu.dot_dimension_numbers<[1], [0], [0], [1], [0, 0, 1, 1], [], []>} : vector<256x128xbf16>, vector<128x128xbf16>, vector<256x128xf32> -> vector<256x128xf32>
    %96 = arith.addf %90, %95 : vector<256x128xf32>
    %c1_102 = arith.constant 1 : index
    %c0_103 = arith.constant 0 : index
    %c0_104 = arith.constant 0 : index
    %97 = vector.load %arg10[%c1_102, %c0_103, %c0_104] : memref<18x18x128xf32, #tpu.memory_space<vmem>>, vector<16x16x128xf32>
    %98 = vector.shape_cast %97 : vector<16x16x128xf32> to vector<256x128xf32>
    %99 = arith.truncf %98 : vector<256x128xf32> to vector<256x128xbf16>
    %c384_105 = arith.constant 384 : index
    %c0_106 = arith.constant 0 : index
    %100 = vector.load %arg4[%c384_105, %c0_106] : memref<1152x128xbf16, #tpu.memory_space<vmem>>, vector<128x128xbf16>
    %cst_107 = arith.constant dense<0.000000e+00> : vector<256x128xf32>
    %101 = tpu.matmul %99, %100, %cst_107 {dimension_numbers = #tpu.dot_dimension_numbers<[1], [0], [0], [1], [0, 0, 1, 1], [], []>} : vector<256x128xbf16>, vector<128x128xbf16>, vector<256x128xf32> -> vector<256x128xf32>
    %102 = arith.addf %96, %101 : vector<256x128xf32>
    %c1_108 = arith.constant 1 : index
    %c1_109 = arith.constant 1 : index
    %c0_110 = arith.constant 0 : index
    %103 = vector.load %arg10[%c1_108, %c1_109, %c0_110] : memref<18x18x128xf32, #tpu.memory_space<vmem>>, vector<16x16x128xf32>
    %104 = vector.shape_cast %103 : vector<16x16x128xf32> to vector<256x128xf32>
    %105 = arith.truncf %104 : vector<256x128xf32> to vector<256x128xbf16>
    %c512_111 = arith.constant 512 : index
    %c0_112 = arith.constant 0 : index
    %106 = vector.load %arg4[%c512_111, %c0_112] : memref<1152x128xbf16, #tpu.memory_space<vmem>>, vector<128x128xbf16>
    %cst_113 = arith.constant dense<0.000000e+00> : vector<256x128xf32>
    %107 = tpu.matmul %105, %106, %cst_113 {dimension_numbers = #tpu.dot_dimension_numbers<[1], [0], [0], [1], [0, 0, 1, 1], [], []>} : vector<256x128xbf16>, vector<128x128xbf16>, vector<256x128xf32> -> vector<256x128xf32>
    %108 = arith.addf %102, %107 : vector<256x128xf32>
    %c1_114 = arith.constant 1 : index
    %c2_115 = arith.constant 2 : index
    %c0_116 = arith.constant 0 : index
    %109 = vector.load %arg10[%c1_114, %c2_115, %c0_116] : memref<18x18x128xf32, #tpu.memory_space<vmem>>, vector<16x16x128xf32>
    %110 = vector.shape_cast %109 : vector<16x16x128xf32> to vector<256x128xf32>
    %111 = arith.truncf %110 : vector<256x128xf32> to vector<256x128xbf16>
    %c640_117 = arith.constant 640 : index
    %c0_118 = arith.constant 0 : index
    %112 = vector.load %arg4[%c640_117, %c0_118] : memref<1152x128xbf16, #tpu.memory_space<vmem>>, vector<128x128xbf16>
    %cst_119 = arith.constant dense<0.000000e+00> : vector<256x128xf32>
    %113 = tpu.matmul %111, %112, %cst_119 {dimension_numbers = #tpu.dot_dimension_numbers<[1], [0], [0], [1], [0, 0, 1, 1], [], []>} : vector<256x128xbf16>, vector<128x128xbf16>, vector<256x128xf32> -> vector<256x128xf32>
    %114 = arith.addf %108, %113 : vector<256x128xf32>
    %c2_120 = arith.constant 2 : index
    %c0_121 = arith.constant 0 : index
    %c0_122 = arith.constant 0 : index
    %115 = vector.load %arg10[%c2_120, %c0_121, %c0_122] : memref<18x18x128xf32, #tpu.memory_space<vmem>>, vector<16x16x128xf32>
    %116 = vector.shape_cast %115 : vector<16x16x128xf32> to vector<256x128xf32>
    %117 = arith.truncf %116 : vector<256x128xf32> to vector<256x128xbf16>
    %c768_123 = arith.constant 768 : index
    %c0_124 = arith.constant 0 : index
    %118 = vector.load %arg4[%c768_123, %c0_124] : memref<1152x128xbf16, #tpu.memory_space<vmem>>, vector<128x128xbf16>
    %cst_125 = arith.constant dense<0.000000e+00> : vector<256x128xf32>
    %119 = tpu.matmul %117, %118, %cst_125 {dimension_numbers = #tpu.dot_dimension_numbers<[1], [0], [0], [1], [0, 0, 1, 1], [], []>} : vector<256x128xbf16>, vector<128x128xbf16>, vector<256x128xf32> -> vector<256x128xf32>
    %120 = arith.addf %114, %119 : vector<256x128xf32>
    %c2_126 = arith.constant 2 : index
    %c1_127 = arith.constant 1 : index
    %c0_128 = arith.constant 0 : index
    %121 = vector.load %arg10[%c2_126, %c1_127, %c0_128] : memref<18x18x128xf32, #tpu.memory_space<vmem>>, vector<16x16x128xf32>
    %122 = vector.shape_cast %121 : vector<16x16x128xf32> to vector<256x128xf32>
    %123 = arith.truncf %122 : vector<256x128xf32> to vector<256x128xbf16>
    %c896_129 = arith.constant 896 : index
    %c0_130 = arith.constant 0 : index
    %124 = vector.load %arg4[%c896_129, %c0_130] : memref<1152x128xbf16, #tpu.memory_space<vmem>>, vector<128x128xbf16>
    %cst_131 = arith.constant dense<0.000000e+00> : vector<256x128xf32>
    %125 = tpu.matmul %123, %124, %cst_131 {dimension_numbers = #tpu.dot_dimension_numbers<[1], [0], [0], [1], [0, 0, 1, 1], [], []>} : vector<256x128xbf16>, vector<128x128xbf16>, vector<256x128xf32> -> vector<256x128xf32>
    %126 = arith.addf %120, %125 : vector<256x128xf32>
    %c2_132 = arith.constant 2 : index
    %c2_133 = arith.constant 2 : index
    %c0_134 = arith.constant 0 : index
    %127 = vector.load %arg10[%c2_132, %c2_133, %c0_134] : memref<18x18x128xf32, #tpu.memory_space<vmem>>, vector<16x16x128xf32>
    %128 = vector.shape_cast %127 : vector<16x16x128xf32> to vector<256x128xf32>
    %129 = arith.truncf %128 : vector<256x128xf32> to vector<256x128xbf16>
    %c1024_135 = arith.constant 1024 : index
    %c0_136 = arith.constant 0 : index
    %130 = vector.load %arg4[%c1024_135, %c0_136] : memref<1152x128xbf16, #tpu.memory_space<vmem>>, vector<128x128xbf16>
    %cst_137 = arith.constant dense<0.000000e+00> : vector<256x128xf32>
    %131 = tpu.matmul %129, %130, %cst_137 {dimension_numbers = #tpu.dot_dimension_numbers<[1], [0], [0], [1], [0, 0, 1, 1], [], []>} : vector<256x128xbf16>, vector<128x128xbf16>, vector<256x128xf32> -> vector<256x128xf32>
    %132 = arith.addf %126, %131 : vector<256x128xf32>
    %c0_138 = arith.constant 0 : index
    %c0_139 = arith.constant 0 : index
    %133 = vector.load %arg5[%c0_138, %c0_139] : memref<1x128xf32, #tpu.memory_space<vmem>>, vector<1x128xf32>
    %134 = vector.broadcast %133 : vector<1x128xf32> to vector<256x128xf32>
    %135 = arith.addf %132, %134 : vector<256x128xf32>
    %136 = vector.shape_cast %1 : vector<16x16x128xbf16> to vector<256x128xbf16>
    %c0_140 = arith.constant 0 : index
    %c0_141 = arith.constant 0 : index
    %137 = vector.load %arg6[%c0_140, %c0_141] : memref<128x128xbf16, #tpu.memory_space<vmem>>, vector<128x128xbf16>
    %cst_142 = arith.constant dense<0.000000e+00> : vector<256x128xf32>
    %138 = tpu.matmul %136, %137, %cst_142 {dimension_numbers = #tpu.dot_dimension_numbers<[1], [0], [0], [1], [0, 0, 1, 1], [], []>} : vector<256x128xbf16>, vector<128x128xbf16>, vector<256x128xf32> -> vector<256x128xf32>
    %c0_143 = arith.constant 0 : index
    %c0_144 = arith.constant 0 : index
    %139 = vector.load %arg7[%c0_143, %c0_144] : memref<1x128xf32, #tpu.memory_space<vmem>>, vector<1x128xf32>
    %140 = vector.broadcast %139 : vector<1x128xf32> to vector<256x128xf32>
    %141 = arith.addf %138, %140 : vector<256x128xf32>
    %142 = arith.addf %135, %141 : vector<256x128xf32>
    %cst_145 = arith.constant 0.000000e+00 : f32
    %143 = vector.broadcast %cst_145 : f32 to vector<256x128xf32>
    %144 = arith.maximumf %142, %143 : vector<256x128xf32>
    %145 = vector.shape_cast %144 : vector<256x128xf32> to vector<16x16x128xf32>
    %c0_146 = arith.constant 0 : index
    %c0_147 = arith.constant 0 : index
    %c0_148 = arith.constant 0 : index
    %c0_149 = arith.constant 0 : index
    %146 = vector.load %arg8[%c0_146, %c0_147, %c0_148, %c0_149] : memref<1x16x16x128xf32, #tpu.memory_space<vmem>>, vector<1x16x16x128xf32>
    %147 = vector.shape_cast %146 : vector<1x16x16x128xf32> to vector<16x16x128xf32>
    %148 = vector.shape_cast %145 : vector<16x16x128xf32> to vector<1x16x16x128xf32>
    tpu.vector_store %arg8[%c0_146, %c0_147, %c0_148, %c0_149], %148 {strides = array<i32>} : memref<1x16x16x128xf32, #tpu.memory_space<vmem>>, vector<1x16x16x128xf32>,
    return
  }
  func.func @transform_0(%arg0: i32) -> (i32, i32, i32, i32) {
    %c0_i32 = arith.constant 0 : i32
    %c0_i32_0 = arith.constant 0 : i32
    %c0_i32_1 = arith.constant 0 : i32
    %c0_i32_2 = arith.constant 0 : i32
    return %arg0, %c0_i32, %c0_i32_0, %c0_i32_1 : i32, i32, i32, i32
  }
  func.func @transform_1(%arg0: i32) -> (i32, i32) {
    %c0_i32 = arith.constant 0 : i32
    %c0_i32_0 = arith.constant 0 : i32
    %c0_i32_1 = arith.constant 0 : i32
    return %c0_i32, %c0_i32_0 : i32, i32
  }
  func.func @transform_2(%arg0: i32) -> (i32, i32) {
    %c0_i32 = arith.constant 0 : i32
    %c0_i32_0 = arith.constant 0 : i32
    %c0_i32_1 = arith.constant 0 : i32
    return %c0_i32, %c0_i32_0 : i32, i32
  }
  func.func @transform_3(%arg0: i32) -> (i32, i32) {
    %c0_i32 = arith.constant 0 : i32
    %c0_i32_0 = arith.constant 0 : i32
    %c0_i32_1 = arith.constant 0 : i32
    return %c0_i32, %c0_i32_0 : i32, i32
  }
  func.func @transform_4(%arg0: i32) -> (i32, i32) {
    %c0_i32 = arith.constant 0 : i32
    %c0_i32_0 = arith.constant 0 : i32
    %c0_i32_1 = arith.constant 0 : i32
    return %c0_i32, %c0_i32_0 : i32, i32
  }
  func.func @transform_5(%arg0: i32) -> (i32, i32) {
    %c0_i32 = arith.constant 0 : i32
    %c0_i32_0 = arith.constant 0 : i32
    %c0_i32_1 = arith.constant 0 : i32
    return %c0_i32, %c0_i32_0 : i32, i32
  }
  func.func @transform_6(%arg0: i32) -> (i32, i32) {
    %c0_i32 = arith.constant 0 : i32
    %c0_i32_0 = arith.constant 0 : i32
    %c0_i32_1 = arith.constant 0 : i32
    return %c0_i32, %c0_i32_0 : i32, i32
  }
  func.func @transform_7(%arg0: i32) -> (i32, i32, i32, i32) {
    %c0_i32 = arith.constant 0 : i32
    %c0_i32_0 = arith.constant 0 : i32
    %c0_i32_1 = arith.constant 0 : i32
    %c0_i32_2 = arith.constant 0 : i32
    return %arg0, %c0_i32, %c0_i32_0, %c0_i32_1 : i32, i32, i32, i32
  }
}

</mosaic_0001>

<bundles_post_ra>
// kernel: tpu_custom_call.1
= control target key start
LH: loop header
LB: loop body
LE: loop exit
PB: predicated region body
PF: predicated region fallthrough
CT: control target
= control target key end

     0   :  { %12 = vsyncpa [#allocation5], 0  ;;  %s10286_s0 = inlined_call_operand.hbm [shape: bf16[2,16,16,128], index: 0, kind: input, shape index: {}]   ;;  %s10287_s1 = inlined_call_operand.hbm [shape: bf16[1152,128], index: 1, kind: input, shape index: {}]   ;;  %s10288_s2 = inlined_call_operand.vmem [shape: f32[1,128], index: 2, kind: input, shape index: {}]   ;;  %s10289_s3 = inlined_call_operand.hbm [shape: bf16[1152,128], index: 3, kind: input, shape index: {}]   ;;  %s10290_s4 = inlined_call_operand.vmem [shape: f32[1,128], index: 4, kind: input, shape index: {}]   ;;  %s10291_s5 = inlined_call_operand.hbm [shape: bf16[128,128], index: 5, kind: input, shape index: {}]   ;;  %s10292_s6 = inlined_call_operand.vmem [shape: f32[1,128], index: 6, kind: input, shape index: {}]   ;;  %s10293_s7 = inlined_call_operand.hbm [shape: f32[2,16,16,128], index: 7, kind: output, shape index: {}]  }
   0x1   :  { %14 = vsyncpa [#allocation5 + $0x1], 0 }
   0x2   :  { %15 = vsyncpa [#allocation8], 0 }
   0x3   :  { %16 = vsyncpa [#allocation11], 0 }
   0x4   :  { %17 = vsyncpa [#allocation6], 0 }
   0x5   :  { %19 = vsyncpa [#allocation6 + $0x1], 0  ;;  %s9274_s24 = smov 0   ;;  %s9276_s25 = smov 0  }
   0x6   :  { %s9278_s26 = smov 0   ;;  %s9280_s27 = smov 0  }
   0x7 LB: > { %s9295_s28 = sadd.s32 4294967295, %s9221_s27   ;;  %s6564_s29 = sadd.s32 4294967294, %s9221_s27   ;;  %s9221_s27 = sphi %s9280_s27, %s10319_s27   ;;  %s9217_s26 = sphi %s9278_s26, %s10318_s26   ;;  %s9213_s25 = sphi %s9276_s25, %s10317_s25   ;;  %s9209_s24 = sphi %s9274_s24, %s10316_s24  }
   0x8   : > { %p45_p0 = scmp.ne.s32.totalorder %s9213_s25, %s9209_s24  ;;  %p10294_p1 = scmp.eq.s32.totalorder %s9295_s28, 0 }
   0x9   : > { %p201_p3 = scmp.eq.s32.totalorder %s6564_s29, 1  ;;  %p6565_p5 = scmp.ge.s32.totalorder %s9221_s27, 1 }
   0xa   : > { %p9304_p4 = por %p10294_p1, %p45_p0  ;;  %p208_p7 = scmp.lt.s32.totalorder %s9221_s27, 3 }
   0xb   : > { %p9309_p6 = por %p201_p3, %p45_p0  ;;  %s9223_s10 = smov [#allocation7]  }
   0xc   : > { %s10298_s30 = scalar_select %p9304_p4, 1, 0 }
   0xd   : > { %s10299_s8 = scalar_select %p9309_p6, 1, 0 }
   0xe   : > { %p9314_p8 = pnand %p6565_p5, %p208_p7  ;;  %s220_s11 = sshll.u32 %s9223_s10, 4  ;;  %s9318_s11 = int_to_ptr.vmem [resolvable:$true] %s220_s11 }
   0xf   : > { %10300 = sst [smem:[#allocation17_spill]] %s10299_s8  ;;  %s9224_s13 = smov [#allocation9]  }
  0x10   : > { %s10301_s9 = scalar_select %p9314_p8, 1, 0 }
  0x11   : > { %p8765_p9 = pneg %p9314_p8  ;;  %s236_s14 = sshll.u32 %s9224_s13, 4  ;;  %s9329_s14 = int_to_ptr.vmem [resolvable:$true] %s236_s14 }
  0x12   : > { %s9225_s15 = smov [#allocation10]   ;;  %s9033_s19 = scalar_lea.hbm %s10287_s1, 9216 }
  0x13   : > { %p9325_p11 = pnand %p8765_p9, %p10294_p1  ;;  %s9331_s16 = sshll.u32 %s9225_s15, 4  ;;  %s253_s16 = int_to_ptr.vmem [resolvable:$true] %s9331_s16 }
  0x14   : > { %p9034_p12 = scmp.ne.s32.totalorder %s10287_s1, %s9033_s19  ;;  %p9040_p5 = scmp.lt.u32.totalorder %s9033_s19, %s10287_s1 }
  0x15   : > { %p9341_p13 = pneg %p9325_p11 }
  0x17   : > { %p9036_p0 = pnand %p9341_p13, %p9034_p12 }
  0x19   : > { %p9037_p3 = pneg %p9036_p0 }
  0x1b   : > { %p9042_p7 = pnand %p9040_p5, %p9037_p3 }
  0x1d   : > { %9045 = shalt.err (!%p9042_p7)
}
  0x1e   : > { %s9046_s10 = scalar_lea.vmem %s9318_s11, 9216  ;;  %p9054_p2 = scmp.lt.s32.totalorder %s9318_s11, %s9318_s11 }
  0x1f   : > { %p9047_p9 = scmp.ne.s32.totalorder %s9318_s11, %s9046_s10  ;;  %p9055_p6 = scmp.lt.s32.totalorder %s9046_s10, %s9046_s10 }
  0x21   : > { %p9049_p10 = pnand %p9047_p9, %p9341_p13  ;;  %p9056_p12 = por %p9055_p6, %p9054_p2 }
  0x23   : > { %p9050_p1 = pneg %p9049_p10 }
  0x25   : > { %p9057_p0 = pnand %p9056_p12, %p9050_p1 }
  0x27   : > { %9060 = shalt.err (!%p9057_p0)
}
  0x28   : > { %s9226_s13 = smov 64   ;;  %s9227_s15 = smov 4  }
  0x29   : > { %8768 = dma.hbm_to_vmem [thread:$0]  (!%p9325_p11), %s10287_s1, 9216, %s9318_s11, [#allocation8], %s9226_s13, %s9226_s13, %s9227_s15  }
  0x2a   : > { %s9061_s21 = scalar_lea.hbm %s10289_s3, 9216 }
  0x2b   : > { %p9062_p1 = scmp.ne.s32.totalorder %s10289_s3, %s9061_s21  ;;  %p9068_p10 = scmp.lt.u32.totalorder %s9061_s21, %s10289_s3 }
  0x2d   : > { %p9064_p2 = pnand %p9062_p1, %p9341_p13 }
  0x2f   : > { %p9065_p6 = pneg %p9064_p2 }
  0x31   : > { %p9070_p3 = pnand %p9068_p10, %p9065_p6 }
  0x33   : > { %9073 = shalt.err (!%p9070_p3)
}
  0x34   : > { %s9074_s11 = scalar_lea.vmem %s9329_s14, 9216  ;;  %p9082_p12 = scmp.lt.s32.totalorder %s9329_s14, %s9329_s14 }
  0x35   : > { %p9075_p5 = scmp.ne.s32.totalorder %s9329_s14, %s9074_s11  ;;  %p9083_p0 = scmp.lt.s32.totalorder %s9074_s11, %s9074_s11 }
  0x37   : > { %p9077_p7 = pnand %p9075_p5, %p9341_p13  ;;  %p9084_p1 = por %p9083_p0, %p9082_p12 }
  0x39   : > { %p9078_p9 = pneg %p9077_p7 }
  0x3b   : > { %p9085_p2 = pnand %p9084_p1, %p9078_p9 }
  0x3d   : > { %9088 = shalt.err (!%p9085_p2)
}
  0x3e   : > { %8771 = dma.hbm_to_vmem [thread:$0]  (!%p9325_p11), %s10289_s3, 9216, %s9329_s14, [#allocation8], %s9226_s13, %s9226_s13, %s9227_s15  }
  0x3f   : > { %s9089_s20 = scalar_lea.hbm %s10291_s5, 1024 }
  0x40   : > { %p9090_p6 = scmp.ne.s32.totalorder %s10291_s5, %s9089_s20  ;;  %p9096_p5 = scmp.lt.u32.totalorder %s9089_s20, %s10291_s5 }
  0x42   : > { %p9092_p10 = pnand %p9090_p6, %p9341_p13 }
  0x44   : > { %p9093_p3 = pneg %p9092_p10 }
  0x46   : > { %p9098_p7 = pnand %p9096_p5, %p9093_p3 }
  0x48   : > { %9101 = shalt.err (!%p9098_p7)
}
  0x49   : > { %s9102_s11 = scalar_lea.vmem %s253_s16, 1024  ;;  %p9110_p1 = scmp.lt.s32.totalorder %s253_s16, %s253_s16 }
  0x4a   : > { %p9103_p9 = scmp.ne.s32.totalorder %s253_s16, %s9102_s11  ;;  %p9111_p2 = scmp.lt.s32.totalorder %s9102_s11, %s9102_s11 }
  0x4c   : > { %p9105_p12 = pnand %p9103_p9, %p9341_p13  ;;  %p9112_p4 = por %p9111_p2, %p9110_p1 }
  0x4e   : > { %p9106_p0 = pneg %p9105_p12 }
  0x50   : > { %p9113_p8 = pnand %p9112_p4, %p9106_p0 }
  0x52   : > { %9116 = shalt.err (!%p9113_p8)
}
  0x53   : > { %8774 = dma.hbm_to_vmem [thread:$0]  (!%p9325_p11), %s10291_s5, 1024, %s253_s16, [#allocation11], %s9226_s13, %s9226_s13, %s9227_s15  }
  0x54   : > { %s9414_s22 = sadd.s32 1, %s9221_s27   ;;  %s32_s17 = sadd.s32 1, %s9217_s26 }
  0x55   : > { %s29_s12 = ssub.s32 %s9221_s27, %s9414_s22  ;;  %p39_p8 = scmp.ne.s32.totalorder %s9217_s26, %s9213_s25 }
  0x56   : > { %p30_p4 = scmp.eq.s32.totalorder %s29_s12, 0  ;;  %p40_p13 = scmp.eq.s32.totalorder %s9221_s27, 0 }
  0x57   : > { %p8786_p6 = scmp.lt.s32.totalorder %s9221_s27, 2  ;;  %p10304_p3 = scmp.eq.s32.totalorder %s9295_s28, 1 }
  0x58   : > { %s9424_s18 = scalar_select %p30_p4, %s9217_s26, %s32_s17  }
  0x59   : > { %p41_p10 = por %p40_p13, %p39_p8  ;;  %p9428_p5 = por %p10304_p3, %p39_p8 }
  0x5a   : > { %s269_s20 = sand.u32 1, %s9217_s26   ;;  %s6755_s21 = sshll.u32 %s9221_s27, 11 }
  0x5b   : > { %s6570_s16 = sshll.u32 %s269_s20, 7  ;;  %s9437_s10 = scalar_lea.hbm %s10286_s0, %s6755_s21 }
  0x5c   : > { %s273_s11 = scalar_lea.vmem [#allocation4], %s6570_s16  ;;  %p9439_p11 = pnand %p8786_p6, %p41_p10 }
  0x5d   : > { %s280_s14 = sshll.u32 %s273_s11, 4  ;;  %s9445_s12 = scalar_lea.sflag [#allocation5], %s269_s20  ;;  %s9443_s14 = int_to_ptr.vmem [resolvable:$true] %s280_s14 }
  0x5e   : > { %s9117_s17 = scalar_lea.hbm %s9437_s10, 2048  ;;  %p9119_p9 = pneg %p9439_p11 }
  0x5f   : > { %p9118_p7 = scmp.ne.s32.totalorder %s9437_s10, %s9117_s17  ;;  %s9122_s23 = scalar_lea.hbm %s10286_s0, 4096 }
  0x60   : > { %p9123_p1 = scmp.lt.u32.totalorder %s9437_s10, %s10286_s0  ;;  %p9124_p2 = scmp.lt.u32.totalorder %s9122_s23, %s9117_s17 }
  0x61   : > { %p9120_p12 = pnand %p9119_p9, %p9118_p7  ;;  %p9126_p8 = scmp.lt.u32.totalorder %s9117_s17, %s9437_s10 }
  0x62   : > { %p9125_p4 = por %p9124_p2, %p9123_p1 }
  0x63   : > { %p9121_p0 = pneg %p9120_p12 }
  0x64   : > { %p9127_p13 = por %p9126_p8, %p9125_p4 }
  0x66   : > { %p9128_p6 = pnand %p9127_p13, %p9121_p0 }
  0x68   : > { %9131 = shalt.err (!%p9128_p6)
}
  0x69   : > { %s9132_s20 = scalar_lea.vmem %s9443_s14, 2048  ;;  %s9228_s21 = smov [#allocation4]  }
  0x6a   : > { %p9133_p10 = scmp.ne.s32.totalorder %s9443_s14, %s9132_s20  ;;  %s9137_s16 = sshll.u32 %s9228_s21, 4  ;;  %s9138_s16 = int_to_ptr.vmem [resolvable:$false] %s9137_s16 }
  0x6b   : > { %s9139_s29 = scalar_lea.vmem %s9138_s16, 4096  ;;  %p9140_p12 = scmp.lt.s32.totalorder %s9443_s14, %s9138_s16 }
  0x6c   : > { %p9135_p3 = pnand %p9133_p10, %p9119_p9  ;;  %p9141_p1 = scmp.lt.s32.totalorder %s9139_s29, %s9132_s20 }
  0x6e   : > { %p9136_p7 = pneg %p9135_p3  ;;  %p9142_p2 = por %p9141_p1, %p9140_p12 }
  0x70   : > { %p9143_p4 = pnand %p9142_p2, %p9136_p7 }
  0x72   : > { %9146 = shalt.err (!%p9143_p4)
}
  0x73   : > { %8778 = dma.hbm_to_vmem [thread:$0]  (!%p9439_p11), %s9437_s10, 2048, %s9443_s14, %s9445_s12, %s9226_s13, %s9226_s13, %s9227_s15  }
  0x74   : > { %p10307_p9 = scmp.ne.s32.totalorder %s10301_s9, 0 }
  0x75   : > { %s9479_s17 = sand.u32 (!%p10307_p9), 1, %s9213_s25   ;;  %p10308_p0 = scmp.ne.s32.totalorder (!%p10307_p9), %s10298_s30, 0 }
  0x76   : > { %292 = sbr.rel (%p10307_p9) target bundleno = 1765 (0x6e5), region = 48  ;;  %s6574_s23 = sshll.u32 (!%p10307_p9), %s9479_s17, 7 }
  0x77   : > { %s295_s11 = scalar_lea.sflag (!%p10307_p9), [#allocation5], %s9479_s17  ;;  %s9483_s20 = scalar_lea.vmem (!%p10307_p9), [#allocation4], %s6574_s23 }
  0x7d   : > { %9192 = dma.done.wait (%p10308_p0), %s295_s11, 2048  }
  0x7e   : > { %9194 = vsyncadd (%p10308_p0), %s295_s11, 4294965248  ;;  %p10309_p11 = scmp.eq.s32.totalorder %s9295_s28, 0 }
  0x80   : > { %9196 = dma.done.wait (%p10309_p11), [#allocation8], 18432   ;;  %p10310_p8 = pmov %p10309_p11 }
  0x82   : > { %9198 = vsyncadd (%p10310_p8), [#allocation8], 4294948864  ;;  %p10311_p13 = pmov %p10310_p8 }
  0x83   : > { %p10312_p6 = pmov %p10310_p8 }
  0x84   : > { %9200 = dma.done.wait (%p10311_p13), [#allocation11], 1024  }
  0x85   : > { %9202 = vsyncadd (%p10312_p6), [#allocation11], 4294966272  ;;  %v9229_v0 = vmov 0.0   ;;  %v8831_v1 = vld [vmem:[#allocation7 + $0x40] sm:$0xff]   ;;  %v8832_v2 = vld [vmem:[#allocation7 + $0x48] sm:$0xff]   ;;  %s6578_s8 = sshll.u32 %s9479_s17, 8 }
  0x86   : > { %374 = vst [vmem:[#allocation2] sm:$0xff] %v9229_v0  ;;  %375 = vst [vmem:[#allocation2 + $0x8] sm:$0xff] %v9229_v0  ;;  %7213 = vmatprep.subr.bf16.mxu0 %v8831_v1  ;;  %v8833_v3 = vld [vmem:[#allocation7 + $0x50] sm:$0xff]   ;;  %v8834_v4 = vld [vmem:[#allocation7 + $0x58] sm:$0xff]   ;;  %s10153_s12 = scalar_lea.vmem [#allocation12], %s6578_s8  ;;  %s6756_s21 = sshll.u32 %s9295_s28, 12 }
  0x87   : > { %376 = vst [vmem:[#allocation2 + $0x10] sm:$0x3] %v9229_v0  ;;  %378 = vst [vmem:[#allocation2 + $0x198] sm:$0xff] %v9229_v0  ;;  %7214 = vmatpush3.bf16.msra.mxu0 %v8831_v1  ;;  %v9574_v7 = vld [vmem:[%s9483_s20] sm:$0xff]   ;;  %v9579_v11 = vld [vmem:[%s9483_s20 + $0x8] sm:$0xff]   ;;  %s6462_s16 = sshll.u32 %s10153_s12, 4  ;;  %s10237_s11 = scalar_lea.hbm %s10293_s7, %s6756_s21  ;;  %s10239_s16 = int_to_ptr.vmem [resolvable:$true] %s6462_s16 }
  0x88   : > { %379 = vst [vmem:[#allocation2 + $0x1a0] sm:$0xff] %v9229_v0  ;;  %380 = vst [vmem:[#allocation2 + $0x1a8] sm:$0x3] %v9229_v0  ;;  %7215 = vmatprep.subr.bf16.mxu0 %v8832_v2  ;;  %v414_v9 = vunpack.c.l.bf16 %v9574_v7  ;;  %v415_v10 = vunpack.c.h.bf16 %v9574_v7  ;;  %v9582_v12 = vld [vmem:[%s9483_s20 + $0x10] sm:$0xff]   ;;  %v8835_v13 = vld [vmem:[#allocation7 + $0x60] sm:$0xff]   ;;  %v416_v14 = vunpack.c.l.bf16 %v9579_v11  ;;  %v417_v15 = vunpack.c.h.bf16 %v9579_v11  ;;  %s6449_s28 = scalar_lea.sflag [#allocation6], %s9479_s17 }
  0x89   : > { %382 = vst [vmem:[#allocation2 + $0x18] sm:$0x1] %v9229_v0  ;;  %383 = vst [vmem:[#allocation2 + $0x30] sm:$0x1] %v9229_v0  ;;  %v418_v16 = vunpack.c.l.bf16 %v9582_v12  ;;  %v9588_v17 = vld [vmem:[%s9483_s20 + $0x18] sm:$0xff]   ;;  %v419_v18 = vunpack.c.h.bf16 %v9582_v12  ;;  %v9594_v21 = vld [vmem:[%s9483_s20 + $0x20] sm:$0xff]  }
  0x8a   : > { %384 = vst [vmem:[#allocation2 + $0x48] sm:$0x1] %v9229_v0  ;;  %385 = vst [vmem:[#allocation2 + $0x60] sm:$0x1] %v9229_v0  ;;  %v420_v19 = vunpack.c.l.bf16 %v9588_v17  ;;  %v421_v20 = vunpack.c.h.bf16 %v9588_v17  ;;  %v422_v22 = vunpack.c.l.bf16 %v9594_v21  ;;  %v423_v23 = vunpack.c.h.bf16 %v9594_v21  ;;  %v9599_v24 = vld [vmem:[%s9483_s20 + $0x28] sm:$0xff]   ;;  %v9602_v25 = vld [vmem:[%s9483_s20 + $0x30] sm:$0xff]  }
  0x8b   : > { %386 = vst [vmem:[#allocation2 + $0x78] sm:$0x1] %v9229_v0  ;;  %387 = vst [vmem:[#allocation2 + $0x90] sm:$0x1] %v9229_v0  ;;  %7216 = vmatpush3.bf16.msra.mxu0 %v8832_v2  ;;  %v424_v26 = vunpack.c.l.bf16 %v9599_v24  ;;  %v425_v27 = vunpack.c.h.bf16 %v9599_v24  ;;  %v426_v28 = vunpack.c.l.bf16 %v9602_v25  ;;  %v427_v29 = vunpack.c.h.bf16 %v9602_v25  ;;  %v9609_v30 = vld [vmem:[%s9483_s20 + $0x38] sm:$0xff]   ;;  %v9612_v31 = vld [vmem:[%s9483_s20 + $0x40] sm:$0xff]  }
  0x8c   : > { %388 = vst [vmem:[#allocation2 + $0xa8] sm:$0x1] %v9229_v0  ;;  %389 = vst [vmem:[#allocation2 + $0xc0] sm:$0x1] %v9229_v0  ;;  %7217 = vmatprep.subr.bf16.mxu0 %v8833_v3  ;;  %v8836_v32 = vld [vmem:[#allocation7 + $0x68] sm:$0xff]   ;;  %v428_v33 = vunpack.c.l.bf16 %v9609_v30  ;;  %v429_v34 = vunpack.c.h.bf16 %v9609_v30  ;;  %v430_v35 = vunpack.c.l.bf16 %v9612_v31  ;;  %v431_v37 = vunpack.c.h.bf16 %v9612_v31  ;;  %v9624_v40 = vld [vmem:[%s9483_s20 + $0x50] sm:$0xff]  }
  0x8d   : > { %390 = vst [vmem:[#allocation2 + $0xd8] sm:$0x1] %v9229_v0  ;;  %391 = vst [vmem:[#allocation2 + $0xf0] sm:$0x1] %v9229_v0  ;;  %v542_v5 = vld [vmem:[#allocation2 + $0x1] sm:$0xff]  ;;  %v434_v41 = vunpack.c.l.bf16 %v9624_v40  ;;  %v435_v42 = vunpack.c.h.bf16 %v9624_v40  ;;  %v9629_v43 = vld [vmem:[%s9483_s20 + $0x58] sm:$0xff]  }
  0x8e   : > { %392 = vst [vmem:[#allocation2 + $0x108] sm:$0x1] %v9229_v0  ;;  %393 = vst [vmem:[#allocation2 + $0x120] sm:$0x1] %v9229_v0  ;;  %v543_v6 = vld [vmem:[#allocation2 + $0x9] sm:$0xff]  ;;  %v9632_v44 = vld [vmem:[%s9483_s20 + $0x60] sm:$0xff]   ;;  %v436_v46 = vunpack.c.l.bf16 %v9629_v43  ;;  %v437_v47 = vunpack.c.h.bf16 %v9629_v43 }
  0x8f   : > { %394 = vst [vmem:[#allocation2 + $0x138] sm:$0x1] %v9229_v0  ;;  %395 = vst [vmem:[#allocation2 + $0x150] sm:$0x1] %v9229_v0  ;;  %v574_v8 = vpack.c.bf16 %v543_v6, %v542_v5  ;;  %7218 = vmatpush3.bf16.msra.mxu0 %v8833_v3  ;;  %v9618_v36 = vld [vmem:[%s9483_s20 + $0x48] sm:$0xff]   ;;  %v8837_v45 = vld [vmem:[#allocation7 + $0x70] sm:$0xff]   ;;  %v438_v48 = vunpack.c.l.bf16 %v9632_v44  ;;  %v439_v49 = vunpack.c.h.bf16 %v9632_v44 }
  0x90   : > { %396 = vst [vmem:[#allocation2 + $0x168] sm:$0x1] %v9229_v0  ;;  %397 = vst [vmem:[#allocation2 + $0x180] sm:$0x1] %v9229_v0  ;;  %7219 = vmatprep.subr.bf16.mxu0 %v8834_v4  ;;  %v432_v38 = vunpack.c.l.bf16 %v9618_v36  ;;  %v433_v39 = vunpack.c.h.bf16 %v9618_v36  ;;  %v9639_v50 = vld [vmem:[%s9483_s20 + $0x68] sm:$0xff]   ;;  %v9642_v51 = vld [vmem:[%s9483_s20 + $0x70] sm:$0xff]  }
  0x91   : > { %398 = vst [vmem:[#allocation2 + $0x29] sm:$0x1] %v9229_v0  ;;  %399 = vst [vmem:[#allocation2 + $0x41] sm:$0x1] %v9229_v0  ;;  %7229 = vmatprep.mubr.bf16.mxu0 %v574_v8  ;;  %v440_v52 = vunpack.c.l.bf16 %v9639_v50  ;;  %v441_v53 = vunpack.c.h.bf16 %v9639_v50  ;;  %v442_v54 = vunpack.c.l.bf16 %v9642_v51  ;;  %v443_v55 = vunpack.c.h.bf16 %v9642_v51  ;;  %v8838_v56 = vld [vmem:[#allocation7 + $0x78] sm:$0xff]   ;;  %v8839_v57 = vld [vmem:[#allocation7] sm:$0xff]  }
  0x92   : > { %400 = vst [vmem:[#allocation2 + $0x59] sm:$0x1] %v9229_v0  ;;  %401 = vst [vmem:[#allocation2 + $0x71] sm:$0x1] %v9229_v0  ;;  %v8840_v58 = vld [vmem:[#allocation7 + $0x8] sm:$0xff]   ;;  %v8841_v59 = vld [vmem:[#allocation7 + $0x10] sm:$0xff]  }
  0x93   : > { %402 = vst [vmem:[#allocation2 + $0x89] sm:$0x1] %v9229_v0  ;;  %403 = vst [vmem:[#allocation2 + $0xa1] sm:$0x1] %v9229_v0  ;;  %7220 = vmatpush3.bf16.msra.mxu0 %v8834_v4  ;;  %v8842_v60 = vld [vmem:[#allocation7 + $0x18] sm:$0xff]   ;;  %v8843_v61 = vld [vmem:[#allocation7 + $0x20] sm:$0xff]  }
  0x94   : > { %404 = vst [vmem:[#allocation2 + $0xb9] sm:$0x1] %v9229_v0  ;;  %405 = vst [vmem:[#allocation2 + $0xd1] sm:$0x1] %v9229_v0  ;;  %7221 = vmatprep.subr.bf16.mxu0 %v8835_v13  ;;  %v8844_v62 = vld [vmem:[#allocation7 + $0x28] sm:$0xff]   ;;  %v8845_v63 = vld [vmem:[#allocation7 + $0x30] sm:$0xff]  }
  0x95   : > { %406 = vst [vmem:[#allocation2 + $0xe9] sm:$0x1] %v9229_v0  ;;  %407 = vst [vmem:[#allocation2 + $0x101] sm:$0x1] %v9229_v0  ;;  %v8847_v1 = vld [vmem:[#allocation7 + $0x80] sm:$0xff]   ;;  %v9230_v6 = vmov 0.0|0.0  }
  0x96   : > { %408 = vst [vmem:[#allocation2 + $0x119] sm:$0x1] %v9229_v0  ;;  %409 = vst [vmem:[#allocation2 + $0x131] sm:$0x1] %v9229_v0  ;;  %s9231_s30 = smov [#allocation12]  }
  0x97   : > { %410 = vst [vmem:[#allocation2 + $0x149] sm:$0x1] %v9229_v0  ;;  %411 = vst [vmem:[#allocation2 + $0x161] sm:$0x1] %v9229_v0  ;;  %7222 = vmatpush3.bf16.msra.mxu0 %v8835_v13  ;;  %s9151_s9 = sshll.u32 %s9231_s30, 4  ;;  %s9152_s9 = int_to_ptr.vmem [resolvable:$false] %s9151_s9 }
  0x98   : > { %412 = vst [vmem:[#allocation2 + $0x179] sm:$0x1] %v9229_v0  ;;  %413 = vst [vmem:[#allocation2 + $0x191] sm:$0x1] %v9229_v0  ;;  %7223 = vmatprep.subr.bf16.mxu0 %v8836_v32  ;;  %s9153_s13 = scalar_lea.vmem %s9152_s9, 8192  ;;  %p9154_p12 = scmp.lt.s32.totalorder %s10239_s16, %s9152_s9 }
  0x99   : > { %3231 = vst [vmem:[#allocation3] sm:$0xff] %v9229_v0  ;;  %3232 = vst [vmem:[#allocation3 + $0x8] sm:$0xff] %v9229_v0 }
  0x9a   : > { %3233 = vst [vmem:[#allocation3 + $0x10] sm:$0x3] %v9229_v0  ;;  %3235 = vst [vmem:[#allocation3 + $0x198] sm:$0xff] %v9229_v0 }
  0x9b   : > { %3236 = vst [vmem:[#allocation3 + $0x1a0] sm:$0xff] %v9229_v0  ;;  %3237 = vst [vmem:[#allocation3 + $0x1a8] sm:$0x3] %v9229_v0  ;;  %7224 = vmatpush3.bf16.msra.mxu0 %v8836_v32 }
  0x9c   : > { %3239 = vst [vmem:[#allocation3 + $0x18] sm:$0x1] %v9229_v0  ;;  %3240 = vst [vmem:[#allocation3 + $0x30] sm:$0x1] %v9229_v0  ;;  %7225 = vmatprep.subr.bf16.mxu0 %v8837_v45 }
  0x9d   : > { %3241 = vst [vmem:[#allocation3 + $0x48] sm:$0x1] %v9229_v0  ;;  %3242 = vst [vmem:[#allocation3 + $0x60] sm:$0x1] %v9229_v0 }
  0x9e   : > { %3243 = vst [vmem:[#allocation3 + $0x78] sm:$0x1] %v9229_v0  ;;  %3244 = vst [vmem:[#allocation3 + $0x90] sm:$0x1] %v9229_v0 }
  0x9f   : > { %3245 = vst [vmem:[#allocation3 + $0xa8] sm:$0x1] %v9229_v0  ;;  %3246 = vst [vmem:[#allocation3 + $0xc0] sm:$0x1] %v9229_v0  ;;  %7226 = vmatpush3.bf16.msra.mxu0 %v8837_v45  ;;  %v8854_v45 = vld [vmem:[#allocation7 + $0xb8] sm:$0xff]  }
  0xa0   : > { %3247 = vst [vmem:[#allocation3 + $0xd8] sm:$0x1] %v9229_v0  ;;  %3248 = vst [vmem:[#allocation3 + $0xf0] sm:$0x1] %v9229_v0  ;;  %7227 = vmatprep.subr.bf16.mxu0 %v8838_v56 }
  0xa1   : > { %3249 = vst [vmem:[#allocation3 + $0x108] sm:$0x1] %v9229_v0  ;;  %3250 = vst [vmem:[#allocation3 + $0x120] sm:$0x1] %v9229_v0 }
  0xa2   : > { %3251 = vst [vmem:[#allocation3 + $0x138] sm:$0x1] %v9229_v0  ;;  %3252 = vst [vmem:[#allocation3 + $0x150] sm:$0x1] %v9229_v0 }
  0xa3   : > { %3253 = vst [vmem:[#allocation3 + $0x168] sm:$0x1] %v9229_v0  ;;  %3254 = vst [vmem:[#allocation3 + $0x180] sm:$0x1] %v9229_v0  ;;  %7228 = vmatpush3.bf16.msra.mxu0 %v8838_v56 }
  0xa4   : > { %3255 = vst [vmem:[#allocation3 + $0x29] sm:$0x1] %v9229_v0  ;;  %3256 = vst [vmem:[#allocation3 + $0x41] sm:$0x1] %v9229_v0  ;;  %7261 = vmatprep.subr.bf16.mxu0 %v8839_v57 }
  0xa5   : > { %3257 = vst [vmem:[#allocation3 + $0x59] sm:$0x1] %v9229_v0  ;;  %3258 = vst [vmem:[#allocation3 + $0x71] sm:$0x1] %v9229_v0 }
  0xa6   : > { %3259 = vst [vmem:[#allocation3 + $0x89] sm:$0x1] %v9229_v0  ;;  %3260 = vst [vmem:[#allocation3 + $0xa1] sm:$0x1] %v9229_v0  ;;  %7230 = vmatmul.mubr.bf16.vlgmr.msra.gmra.mrb[0].mxu0 %v9574_v7 }
  0xa7   : > { %3261 = vst [vmem:[#allocation3 + $0xb9] sm:$0x1] %v9229_v0  ;;  %3262 = vst [vmem:[#allocation3 + $0xd1] sm:$0x1] %v9229_v0  ;;  %7262 = vmatpush3.bf16.msra.mxu0 %v8839_v57  ;;  %7233 = vmatprep.mubr.bf16.mxu0 %v9579_v11 }
  0xa8   : > { %3263 = vst [vmem:[#allocation3 + $0xe9] sm:$0x1] %v9229_v0  ;;  %3264 = vst [vmem:[#allocation3 + $0x101] sm:$0x1] %v9229_v0  ;;  %7263 = vmatprep.subr.bf16.mxu0 %v8840_v58 }
  0xa9   : > { %3265 = vst [vmem:[#allocation3 + $0x119] sm:$0x1] %v9229_v0  ;;  %3266 = vst [vmem:[#allocation3 + $0x131] sm:$0x1] %v9229_v0 }
  0xaa   : > { %3267 = vst [vmem:[#allocation3 + $0x149] sm:$0x1] %v9229_v0  ;;  %3268 = vst [vmem:[#allocation3 + $0x161] sm:$0x1] %v9229_v0 }
  0xab   : > { %3269 = vst [vmem:[#allocation3 + $0x179] sm:$0x1] %v9229_v0  ;;  %3270 = vst [vmem:[#allocation3 + $0x191] sm:$0x1] %v9229_v0  ;;  %7264 = vmatpush3.bf16.msra.mxu0 %v8840_v58  ;;  %v8846_v0 = vld [vmem:[#allocation7 + $0x38] sm:$0xff]  }
  0xac   : > { %446 = vst [vmem:[#allocation2 + $0x19] sm:$0xff] %v414_v9  ;;  %447 = vst [vmem:[#allocation2 + $0x21] sm:$0xff] %v415_v10  ;;  %7265 = vmatprep.subr.bf16.mxu0 %v8841_v59  ;;  %v8848_v9 = vld [vmem:[#allocation7 + $0x88] sm:$0xff]  }
  0xad   : > { %448 = vst [vmem:[#allocation2 + $0x31] sm:$0xff] %v416_v14  ;;  %449 = vst [vmem:[#allocation2 + $0x39] sm:$0xff] %v417_v15 }
  0xae   : > { %450 = vst [vmem:[#allocation2 + $0x49] sm:$0xff] %v418_v16  ;;  %451 = vst [vmem:[#allocation2 + $0x51] sm:$0xff] %v419_v18  ;;  %7234 = vmatmul.mubr.bf16.gmra.mrb[4].mxu0 %v9582_v12  ;;  %v8849_v18 = vld [vmem:[#allocation7 + $0x90] sm:$0xff]  }
  0xaf   : > { %452 = vst [vmem:[#allocation2 + $0x61] sm:$0xff] %v420_v19  ;;  %453 = vst [vmem:[#allocation2 + $0x69] sm:$0xff] %v421_v20  ;;  %7237 = vmatprep.mubr.bf16.mxu0 %v9588_v17  ;;  %7266 = vmatpush3.bf16.msra.mxu0 %v8841_v59  ;;  %v8850_v20 = vld [vmem:[#allocation7 + $0x98] sm:$0xff]  }
  0xb0   : > { %454 = vst [vmem:[#allocation2 + $0x79] sm:$0xff] %v422_v22  ;;  %455 = vst [vmem:[#allocation2 + $0x81] sm:$0xff] %v423_v23  ;;  %7267 = vmatprep.subr.bf16.mxu0 %v8842_v60 }
  0xb1   : > { %456 = vst [vmem:[#allocation2 + $0x91] sm:$0xff] %v424_v26  ;;  %457 = vst [vmem:[#allocation2 + $0x99] sm:$0xff] %v425_v27 }
  0xb2   : > { %458 = vst [vmem:[#allocation2 + $0xa9] sm:$0xff] %v426_v28  ;;  %459 = vst [vmem:[#allocation2 + $0xb1] sm:$0xff] %v427_v29  ;;  %v8851_v29 = vld [vmem:[#allocation7 + $0xa0] sm:$0xff]  }
  0xb3   : > { %460 = vst [vmem:[#allocation2 + $0xc1] sm:$0xff] %v428_v33  ;;  %461 = vst [vmem:[#allocation2 + $0xc9] sm:$0xff] %v429_v34  ;;  %7268 = vmatpush3.bf16.msra.mxu0 %v8842_v60  ;;  %v480_v2 = vld [vmem:[#allocation2 + $0x18] sm:$0xff]  ;;  %v481_v3 = vld [vmem:[#allocation2 + $0x20] sm:$0xff] }
  0xb4   : > { %462 = vst [vmem:[#allocation2 + $0xd9] sm:$0xff] %v430_v35  ;;  %463 = vst [vmem:[#allocation2 + $0xe1] sm:$0xff] %v431_v37  ;;  %7269 = vmatprep.subr.bf16.mxu0 %v8843_v61  ;;  %v482_v4 = vld [vmem:[#allocation2 + $0x30] sm:$0xff]  ;;  %v483_v5 = vld [vmem:[#allocation2 + $0x38] sm:$0xff]  ;;  %v9663_v8 = vpack.c.bf16 %v481_v3, %v480_v2 }
  0xb5   : > { %464 = vst [vmem:[#allocation2 + $0xf1] sm:$0xff] %v432_v38  ;;  %465 = vst [vmem:[#allocation2 + $0xf9] sm:$0xff] %v433_v39  ;;  %v9665_v10 = vpack.c.bf16 %v483_v5, %v482_v4  ;;  %v484_v13 = vld [vmem:[#allocation2 + $0x48] sm:$0xff]  ;;  %v485_v14 = vld [vmem:[#allocation2 + $0x50] sm:$0xff] }
  0xb6   : > { %466 = vst [vmem:[#allocation2 + $0x109] sm:$0xff] %v434_v41  ;;  %467 = vst [vmem:[#allocation2 + $0x111] sm:$0xff] %v435_v42  ;;  %7238 = vmatmul.mubr.bf16.gmra.mrb[8].mxu0 %v9594_v21  ;;  %v486_v15 = vld [vmem:[#allocation2 + $0x60] sm:$0xff]  ;;  %v487_v16 = vld [vmem:[#allocation2 + $0x68] sm:$0xff]  ;;  %v9669_v19 = vpack.c.bf16 %v485_v14, %v484_v13 }
  0xb7   : > { %468 = vst [vmem:[#allocation2 + $0x121] sm:$0xff] %v436_v46  ;;  %469 = vst [vmem:[#allocation2 + $0x129] sm:$0xff] %v437_v47  ;;  %7241 = vmatprep.mubr.bf16.mxu0 %v9599_v24  ;;  %7270 = vmatpush3.bf16.msra.mxu0 %v8843_v61  ;;  %v9671_v22 = vpack.c.bf16 %v487_v16, %v486_v15  ;;  %v488_v23 = vld [vmem:[#allocation2 + $0x78] sm:$0xff]  ;;  %v489_v26 = vld [vmem:[#allocation2 + $0x80] sm:$0xff] }
  0xb8   : > { %470 = vst [vmem:[#allocation2 + $0x139] sm:$0xff] %v438_v48  ;;  %471 = vst [vmem:[#allocation2 + $0x141] sm:$0xff] %v439_v49  ;;  %7271 = vmatprep.subr.bf16.mxu0 %v8844_v62  ;;  %v490_v27 = vld [vmem:[#allocation2 + $0x90] sm:$0xff]  ;;  %v491_v28 = vld [vmem:[#allocation2 + $0x98] sm:$0xff]  ;;  %v9675_v32 = vpack.c.bf16 %v489_v26, %v488_v23 }
  0xb9   : > { %472 = vst [vmem:[#allocation2 + $0x151] sm:$0xff] %v440_v52  ;;  %473 = vst [vmem:[#allocation2 + $0x159] sm:$0xff] %v441_v53  ;;  %v8852_v33 = vld [vmem:[#allocation7 + $0xa8] sm:$0xff]   ;;  %v9677_v34 = vpack.c.bf16 %v491_v28, %v490_v27  ;;  %v493_v37 = vld [vmem:[#allocation2 + $0xb0] sm:$0xff] }
  0xba   : > { %474 = vst [vmem:[#allocation2 + $0x169] sm:$0xff] %v442_v54  ;;  %475 = vst [vmem:[#allocation2 + $0x171] sm:$0xff] %v443_v55  ;;  %v492_v35 = vld [vmem:[#allocation2 + $0xa8] sm:$0xff]  ;;  %v494_v38 = vld [vmem:[#allocation2 + $0xc0] sm:$0xff] }
  0xbb   : > { %7272 = vmatpush3.bf16.msra.mxu0 %v8844_v62  ;;  %v495_v39 = vld [vmem:[#allocation2 + $0xc8] sm:$0xff]  ;;  %v8853_v41 = vld [vmem:[#allocation7 + $0xb0] sm:$0xff]   ;;  %v9681_v42 = vpack.c.bf16 %v493_v37, %v492_v35  ;;  %v496_v47 = vld [vmem:[#allocation2 + $0xd8] sm:$0xff] }
  0xbc   : > { %7273 = vmatprep.subr.bf16.mxu0 %v8845_v63  ;;  %v9683_v46 = vpack.c.bf16 %v495_v39, %v494_v38  ;;  %v497_v48 = vld [vmem:[#allocation2 + $0xe0] sm:$0xff]  ;;  %v498_v49 = vld [vmem:[#allocation2 + $0xf0] sm:$0xff]  ;;  %v499_v52 = vld [vmem:[#allocation2 + $0xf8] sm:$0xff] }
  0xbd   : > { %v8855_v53 = vld [vmem:[#allocation7 + $0xc0] sm:$0xff]   ;;  %v9687_v54 = vpack.c.bf16 %v497_v48, %v496_v47  ;;  %v9689_v55 = vpack.c.bf16 %v499_v52, %v498_v49  ;;  %v500_v56 = vld [vmem:[#allocation2 + $0x108] sm:$0xff]  ;;  %v501_v57 = vld [vmem:[#allocation2 + $0x110] sm:$0xff] }
  0xbe   : > { %7242 = vmatmul.mubr.bf16.gmra.mrb[12].mxu0 %v9602_v25  ;;  %v502_v58 = vld [vmem:[#allocation2 + $0x120] sm:$0xff]  ;;  %v503_v59 = vld [vmem:[#allocation2 + $0x128] sm:$0xff]  ;;  %v9693_v60 = vpack.c.bf16 %v501_v57, %v500_v56  ;;  %v9700_v2 = vld [vmem:[%s9483_s20 + $0x78] sm:$0xff]  }
  0xbf   : > { %7245 = vmatprep.mubr.bf16.mxu0 %v9609_v30  ;;  %7274 = vmatpush3.bf16.msra.mxu0 %v8845_v63  ;;  %v9695_v61 = vpack.c.bf16 %v503_v59, %v502_v58  ;;  %v504_v62 = vld [vmem:[#allocation2 + $0x138] sm:$0xff]  ;;  %v505_v63 = vld [vmem:[#allocation2 + $0x140] sm:$0xff]  ;;  %v444_v4 = vunpack.c.l.bf16 %v9700_v2  ;;  %v445_v5 = vunpack.c.h.bf16 %v9700_v2  ;;  %v1025_v15 = vld [vmem:[#allocation2 + $0xa] sm:$0xff] }
  0xc0   : > { %7275 = vmatprep.subr.bf16.mxu0 %v8846_v0  ;;  %v9702_v3 = vpack.c.bf16 %v505_v63, %v504_v62  ;;  %v1024_v14 = vld [vmem:[#allocation2 + $0x2] sm:$0xff]  ;;  %v1028_v26 = vld [vmem:[#allocation2 + $0x32] sm:$0xff]  ;;  %v1029_v27 = vld [vmem:[#allocation2 + $0x3a] sm:$0xff] }
  0xc1   : > { %476 = vst [vmem:[#allocation2 + $0x181] sm:$0xff] %v444_v4  ;;  %477 = vst [vmem:[#allocation2 + $0x189] sm:$0xff] %v445_v5  ;;  %v509_v13 = vld [vmem:[#allocation2 + $0x170] sm:$0xff]  ;;  %v1027_v23 = vld [vmem:[#allocation2 + $0x22] sm:$0xff] }
  0xc2   : > { %v1030_v35 = vld [vmem:[#allocation2 + $0x4a] sm:$0xff]  ;;  %v1031_v37 = vld [vmem:[#allocation2 + $0x52] sm:$0xff]  ;;  %v1032_v38 = vld [vmem:[#allocation2 + $0x62] sm:$0xff] }
  0xc3   : > { %7276 = vmatpush3.bf16.msra.mxu0 %v8846_v0  ;;  %v506_v0 = vld [vmem:[#allocation2 + $0x150] sm:$0xff]  ;;  %v8858_v48 = vld [vmem:[#allocation7 + $0xd8] sm:$0xff]   ;;  %v1035_v52 = vld [vmem:[#allocation2 + $0x82] sm:$0xff] }
  0xc4   : > { %7309 = vmatprep.subr.bf16.mxu0 %v8847_v1  ;;  %v1033_v39 = vld [vmem:[#allocation2 + $0x6a] sm:$0xff]  ;;  %v1034_v49 = vld [vmem:[#allocation2 + $0x7a] sm:$0xff] }
  0xc5   : > { %v9721_v47 = vpack.c.bf16 %v1033_v39, %v1032_v38  ;;  %v1037_v56 = vld [vmem:[#allocation2 + $0x9a] sm:$0xff]  ;;  %v9725_v58 = vpack.c.bf16 %v1035_v52, %v1034_v49  ;;  %v8860_v62 = vld [vmem:[#allocation7 + $0xe8] sm:$0xff]   ;;  %v8861_v5 = vld [vmem:[#allocation7 + $0xf0] sm:$0xff]  }
  0xc6   : > { %7246 = vmatmul.mubr.bf16.gmra.mrb[16].mxu0 %v9612_v31  ;;  %v8859_v57 = vld [vmem:[#allocation7 + $0xe0] sm:$0xff]   ;;  %v1038_v63 = vld [vmem:[#allocation2 + $0xaa] sm:$0xff] }
  0xc7   : > { %7249 = vmatprep.mubr.bf16.mxu0 %v9618_v36  ;;  %v1041_v4 = vld [vmem:[#allocation2 + $0xca] sm:$0xff]  ;;  %v1048_v38 = vld [vmem:[#allocation2 + $0x122] sm:$0xff]  ;;  %v1050_v49 = vld [vmem:[#allocation2 + $0x13a] sm:$0xff] }
  0xc8   : > { %v1049_v39 = vld [vmem:[#allocation2 + $0x12a] sm:$0xff]  ;;  %v1051_v52 = vld [vmem:[#allocation2 + $0x142] sm:$0xff] }
  0xce   : > { %7250 = vmatmul.mubr.bf16.gmra.mrb[20].mxu0 %v9624_v40 }
  0xcf   : > { %7253 = vmatprep.mubr.bf16.mxu0 %v9629_v43 }
  0xd6   : > { %7254 = vmatmul.mubr.bf16.gmra.mrb[24].mxu0 %v9632_v44 }
  0xd7   : > { %7257 = vmatprep.mubr.bf16.mxu0 %v9639_v50 }
  0xde   : > { %7258 = vmatmul.mubr.bf16.gmra.mrb[28].mxu0 %v9642_v51 }
  0xdf   : > { %7277 = vmatprep.mubr.bf16.mxu0 %v9230_v6 }
  0xe6   : > { %7278 = vmatmul.mubr.bf16.vlgmr.msra.gmra.mrb[0].mxu0 %v9663_v8 }
  0xe7   : > { %7310 = vmatpush3.bf16.msra.mxu0 %v8847_v1  ;;  %7281 = vmatprep.mubr.bf16.mxu0 %v9665_v10  ;;  %v507_v1 = vld [vmem:[#allocation2 + $0x158] sm:$0xff] }
  0xe8   : > { %7311 = vmatprep.subr.bf16.mxu0 %v8848_v9  ;;  %v9706_v6 = vpack.c.bf16 %v507_v1, %v506_v0  ;;  %v1039_v0 = vld [vmem:[#allocation2 + $0xb2] sm:$0xff]  ;;  %v1040_v1 = vld [vmem:[#allocation2 + $0xc2] sm:$0xff] }
  0xeb   : > { %7312 = vmatpush3.bf16.msra.mxu0 %v8848_v9  ;;  %v508_v9 = vld [vmem:[#allocation2 + $0x168] sm:$0xff] }
  0xec   : > { %7313 = vmatprep.subr.bf16.mxu0 %v8849_v18  ;;  %v9710_v16 = vpack.c.bf16 %v509_v13, %v508_v9  ;;  %v9731_v9 = vpack.c.bf16 %v1039_v0, %v1038_v63  ;;  %v9733_v13 = vpack.c.bf16 %v1041_v4, %v1040_v1  ;;  %v1054_v63 = vld [vmem:[#allocation2 + $0x16a] sm:$0xff]  ;;  %v1055_v0 = vld [vmem:[#allocation2 + $0x172] sm:$0xff] }
  0xed   : > { %v9755_v1 = vpack.c.bf16 %v1055_v0, %v1054_v63  ;;  %v8864_v4 = vld [vmem:[#allocation7 + $0x108] sm:$0xff]   ;;  %v8893_v63 = vld [vmem:[#allocation7 + $0x1f0] sm:$0xff]  }
  0xee   : > { %7282 = vmatmul.mubr.bf16.gmra.mrb[4].mxu0 %v9669_v19 }
  0xef   : > { %7285 = vmatprep.mubr.bf16.mxu0 %v9671_v22  ;;  %7314 = vmatpush3.bf16.msra.mxu0 %v8849_v18  ;;  %v1056_v18 = vpack.c.bf16 %v1025_v15, %v1024_v14  ;;  %v8862_v14 = vld [vmem:[#allocation7 + $0xf8] sm:$0xff]  }
  0xf0   : > { %7315 = vmatprep.subr.bf16.mxu0 %v8850_v20  ;;  %v1042_v15 = vld [vmem:[#allocation2 + $0xda] sm:$0xff] }
  0xf3   : > { %7316 = vmatpush3.bf16.msra.mxu0 %v8850_v20  ;;  %v1026_v20 = vld [vmem:[#allocation2 + $0x1a] sm:$0xff] }
  0xf4   : > { %7317 = vmatprep.subr.bf16.mxu0 %v8851_v29  ;;  %v9713_v28 = vpack.c.bf16 %v1027_v23, %v1026_v20  ;;  %v1044_v20 = vld [vmem:[#allocation2 + $0xf2] sm:$0xff]  ;;  %v1045_v23 = vld [vmem:[#allocation2 + $0xfa] sm:$0xff] }
  0xf6   : > { %7286 = vmatmul.mubr.bf16.gmra.mrb[8].mxu0 %v9675_v32 }
  0xf7   : > { %7289 = vmatprep.mubr.bf16.mxu0 %v9677_v34  ;;  %7318 = vmatpush3.bf16.msra.mxu0 %v8851_v29  ;;  %v9715_v29 = vpack.c.bf16 %v1029_v27, %v1028_v26  ;;  %v8863_v26 = vld [vmem:[#allocation7 + $0x100] sm:$0xff]  }
  0xf8   : > { %7319 = vmatprep.subr.bf16.mxu0 %v8852_v33 }
  0xfb   : > { %7320 = vmatpush3.bf16.msra.mxu0 %v8852_v33  ;;  %v8856_v33 = vld [vmem:[#allocation7 + $0xc8] sm:$0xff]  }
  0xfc   : > { %7321 = vmatprep.subr.bf16.mxu0 %v8853_v41 }
  0xfe   : > { %7290 = vmatmul.mubr.bf16.gmra.mrb[12].mxu0 %v9681_v42 }
  0xff   : > { %7293 = vmatprep.mubr.bf16.mxu0 %v9683_v46  ;;  %7322 = vmatpush3.bf16.msra.mxu0 %v8853_v41  ;;  %v8857_v41 = vld [vmem:[#allocation7 + $0xd0] sm:$0xff]  }
 0x100   : > { %7323 = vmatprep.subr.bf16.mxu0 %v8854_v45 }
 0x103   : > { %7324 = vmatpush3.bf16.msra.mxu0 %v8854_v45  ;;  %v9719_v45 = vpack.c.bf16 %v1031_v37, %v1030_v35  ;;  %v1046_v35 = vld [vmem:[#allocation2 + $0x10a] sm:$0xff]  ;;  %v1047_v37 = vld [vmem:[#allocation2 + $0x112] sm:$0xff] }
 0x104   : > { %7357 = vmatprep.subr.bf16.mxu0 %v8855_v53 }
 0x106   : > { %7294 = vmatmul.mubr.bf16.gmra.mrb[16].mxu0 %v9687_v54 }
 0x107   : > { %7297 = vmatprep.mubr.bf16.mxu0 %v9689_v55 }
 0x10e   : > { %7298 = vmatmul.mubr.bf16.gmra.mrb[20].mxu0 %v9693_v60 }
 0x10f   : > { %7301 = vmatprep.mubr.bf16.mxu0 %v9695_v61 }
 0x116   : > { %7302 = vmatmul.mubr.bf16.gmra.mrb[24].mxu0 %v9702_v3 }
 0x117   : > { %7305 = vmatprep.mubr.bf16.mxu0 %v9706_v6 }
 0x11e   : > { %7306 = vmatmul.mubr.bf16.gmra.mrb[28].mxu0 %v9710_v16 }
 0x11f   : > { %7325 = vmatprep.mubr.bf16.mxu0 %v1056_v18  ;;  %v1043_v18 = vld [vmem:[#allocation2 + $0xe2] sm:$0xff] }
 0x120   : > { %v9737_v27 = vpack.c.bf16 %v1043_v18, %v1042_v15  ;;  %v8867_v15 = vld [vmem:[#allocation7 + $0x120] sm:$0xff]   ;;  %v2253_v18 = vld [vmem:[#allocation2 + $0x90] sm:$0xff] }
 0x126   : > { %7326 = vmatmul.mubr.bf16.vlgmr.msra.gmra.mrb[0].mxu0 %v9713_v28 }
 0x127   : > { %7358 = vmatpush3.bf16.msra.mxu0 %v8855_v53  ;;  %7329 = vmatprep.mubr.bf16.mxu0 %v9715_v29  ;;  %v1036_v53 = vld [vmem:[#allocation2 + $0x92] sm:$0xff] }
 0x128   : > { %7359 = vmatprep.subr.bf16.mxu0 %v8856_v33  ;;  %v9727_v59 = vpack.c.bf16 %v1037_v56, %v1036_v53  ;;  %v1052_v53 = vld [vmem:[#allocation2 + $0x152] sm:$0xff]  ;;  %v1053_v56 = vld [vmem:[#allocation2 + $0x15a] sm:$0xff] }
 0x12b   : > { %7360 = vmatpush3.bf16.msra.mxu0 %v8856_v33  ;;  %v9739_v33 = vpack.c.bf16 %v1045_v23, %v1044_v20  ;;  %v2254_v20 = vld [vmem:[#allocation2 + $0x98] sm:$0xff]  ;;  %v8889_v23 = vld [vmem:[#allocation7 + $0x1d0] sm:$0xff]  }
 0x12c   : > { %7361 = vmatprep.subr.bf16.mxu0 %v8857_v41 }
 0x12e   : > { %7330 = vmatmul.mubr.bf16.gmra.mrb[4].mxu0 %v9719_v45 }
 0x12f   : > { %7333 = vmatprep.mubr.bf16.mxu0 %v9721_v47  ;;  %7362 = vmatpush3.bf16.msra.mxu0 %v8857_v41  ;;  %v9743_v41 = vpack.c.bf16 %v1047_v37, %v1046_v35  ;;  %v2255_v35 = vld [vmem:[#allocation2 + $0xa8] sm:$0xff]  ;;  %v2256_v37 = vld [vmem:[#allocation2 + $0xb0] sm:$0xff] }
 0x130   : > { %7363 = vmatprep.subr.bf16.mxu0 %v8858_v48 }
 0x133   : > { %7364 = vmatpush3.bf16.msra.mxu0 %v8858_v48  ;;  %v9745_v48 = vpack.c.bf16 %v1049_v39, %v1048_v38  ;;  %v2257_v38 = vld [vmem:[#allocation2 + $0xc0] sm:$0xff]  ;;  %v2258_v39 = vld [vmem:[#allocation2 + $0xc8] sm:$0xff] }
 0x134   : > { %7365 = vmatprep.subr.bf16.mxu0 %v8859_v57 }
 0x136   : > { %7334 = vmatmul.mubr.bf16.gmra.mrb[8].mxu0 %v9725_v58 }
 0x137   : > { %7337 = vmatprep.mubr.bf16.mxu0 %v9727_v59  ;;  %7366 = vmatpush3.bf16.msra.mxu0 %v8859_v57  ;;  %v9749_v57 = vpack.c.bf16 %v1051_v52, %v1050_v49  ;;  %v2283_v49 = vpack.c.bf16 %v2258_v39, %v2257_v38  ;;  %v8892_v52 = vld [vmem:[#allocation7 + $0x1e8] sm:$0xff]   ;;  %v2564_v38 = vld [vmem:[#allocation2 + $0xd9] sm:$0xff] }
 0x138   : > { %7367 = vmatprep.subr.bf16.mxu0 %v8860_v62  ;;  %v2565_v39 = vld [vmem:[#allocation2 + $0xe1] sm:$0xff] }
 0x13b   : > { %7368 = vmatpush3.bf16.msra.mxu0 %v8860_v62  ;;  %v9751_v62 = vpack.c.bf16 %v1053_v56, %v1052_v53  ;;  %v2259_v53 = vld [vmem:[#allocation2 + $0xd8] sm:$0xff]  ;;  %v2260_v56 = vld [vmem:[#allocation2 + $0xe0] sm:$0xff] }
 0x13c   : > { %7369 = vmatprep.subr.bf16.mxu0 %v8861_v5  ;;  %v2284_v0 = vpack.c.bf16 %v2260_v56, %v2259_v53  ;;  %v8902_v56 = vld [vmem:[#allocation7 + $0x238] sm:$0xff]  }
 0x13e   : > { %7338 = vmatmul.mubr.bf16.gmra.mrb[12].mxu0 %v9731_v9 }
 0x13f   : > { %7341 = vmatprep.mubr.bf16.mxu0 %v9733_v13  ;;  %7370 = vmatpush3.bf16.msra.mxu0 %v8861_v5  ;;  %v8865_v5 = vld [vmem:[#allocation7 + $0x110] sm:$0xff]  }
 0x140   : > { %7371 = vmatprep.subr.bf16.mxu0 %v8862_v14 }
 0x143   : > { %7372 = vmatpush3.bf16.msra.mxu0 %v8862_v14  ;;  %v8866_v14 = vld [vmem:[#allocation7 + $0x118] sm:$0xff]  }
 0x144   : > { %7405 = vmatprep.subr.bf16.mxu0 %v8863_v26 }
 0x146   : > { %7342 = vmatmul.mubr.bf16.gmra.mrb[16].mxu0 %v9737_v27 }
 0x147   : > { %7345 = vmatprep.mubr.bf16.mxu0 %v9739_v33 }
 0x14e   : > { %7346 = vmatmul.mubr.bf16.gmra.mrb[20].mxu0 %v9743_v41 }
 0x14f   : > { %7349 = vmatprep.mubr.bf16.mxu0 %v9745_v48 }
 0x156   : > { %7350 = vmatmul.mubr.bf16.gmra.mrb[24].mxu0 %v9749_v57 }
 0x157   : > { %7353 = vmatprep.mubr.bf16.mxu0 %v9751_v62 }
 0x15e   : > { %7354 = vmatmul.mubr.bf16.gmra.mrb[28].mxu0 %v9755_v1 }
 0x15f   : > { %7373 = vmatprep.mubr.bf16.mxu0 %v9663_v8  ;;  %v8868_v8 = vld [vmem:[#allocation7 + $0x128] sm:$0xff]  }
 0x166   : > { %7374 = vmatmul.mubr.bf16.vlgmr.msra.gmra.mrb[0].mxu0 %v9665_v10  ;;  %v8869_v10 = vld [vmem:[#allocation7 + $0x130] sm:$0xff]  }
 0x167   : > { %7406 = vmatpush3.bf16.msra.mxu0 %v8863_v26  ;;  %7377 = vmatprep.mubr.bf16.mxu0 %v9669_v19  ;;  %v8870_v19 = vld [vmem:[#allocation7 + $0x138] sm:$0xff]  }
 0x168   : > { %7407 = vmatprep.subr.bf16.mxu0 %v8864_v4 }
 0x16b   : > { %7408 = vmatpush3.bf16.msra.mxu0 %v8864_v4  ;;  %v8894_v4 = vld [vmem:[#allocation7 + $0x1f8] sm:$0xff]  }
 0x16c   : > { %7409 = vmatprep.subr.bf16.mxu0 %v8865_v5 }
 0x16e   : > { %7378 = vmatmul.mubr.bf16.gmra.mrb[4].mxu0 %v9671_v22  ;;  %v8871_v22 = vld [vmem:[#allocation7 + $0x140] sm:$0xff]  }
 0x16f   : > { %7381 = vmatprep.mubr.bf16.mxu0 %v9675_v32  ;;  %7410 = vmatpush3.bf16.msra.mxu0 %v8865_v5  ;;  %v1359_v32 = vld [vmem:[#allocation2 + $0x180] sm:$0xff]  ;;  %v2263_v5 = vld [vmem:[#allocation2 + $0x108] sm:$0xff] }
 0x170   : > { %7411 = vmatprep.subr.bf16.mxu0 %v8866_v14 }
 0x173   : > { %7412 = vmatpush3.bf16.msra.mxu0 %v8866_v14  ;;  %v2264_v14 = vld [vmem:[#allocation2 + $0x110] sm:$0xff] }
 0x174   : > { %7413 = vmatprep.subr.bf16.mxu0 %v8867_v15 }
 0x176   : > { %7382 = vmatmul.mubr.bf16.gmra.mrb[8].mxu0 %v9677_v34  ;;  %v1360_v34 = vld [vmem:[#allocation2 + $0x188] sm:$0xff] }
 0x177   : > { %7385 = vmatprep.mubr.bf16.mxu0 %v9681_v42  ;;  %7414 = vmatpush3.bf16.msra.mxu0 %v8867_v15  ;;  %v9773_v42 = vpack.c.bf16 %v1360_v34, %v1359_v32  ;;  %v2265_v15 = vld [vmem:[#allocation2 + $0x120] sm:$0xff]  ;;  %v2267_v32 = vld [vmem:[#allocation2 + $0x138] sm:$0xff] }
 0x178   : > { %7415 = vmatprep.subr.bf16.mxu0 %v8868_v8  ;;  %v2268_v34 = vld [vmem:[#allocation2 + $0x140] sm:$0xff] }
 0x17b   : > { %7416 = vmatpush3.bf16.msra.mxu0 %v8868_v8  ;;  %v2266_v8 = vld [vmem:[#allocation2 + $0x128] sm:$0xff] }
 0x17c   : > { %7417 = vmatprep.subr.bf16.mxu0 %v8869_v10 }
 0x17e   : > { %7386 = vmatmul.mubr.bf16.gmra.mrb[12].mxu0 %v9683_v46  ;;  %v8872_v46 = vld [vmem:[#allocation7 + $0x148] sm:$0xff]  }
 0x17f   : > { %7389 = vmatprep.mubr.bf16.mxu0 %v9687_v54  ;;  %7418 = vmatpush3.bf16.msra.mxu0 %v8869_v10  ;;  %v8873_v54 = vld [vmem:[#allocation7 + $0x150] sm:$0xff]   ;;  %v8895_v10 = vld [vmem:[#allocation7 + $0x200] sm:$0xff]  }
 0x180   : > { %7419 = vmatprep.subr.bf16.mxu0 %v8870_v19 }
 0x183   : > { %7420 = vmatpush3.bf16.msra.mxu0 %v8870_v19  ;;  %v2286_v19 = vpack.c.bf16 %v2264_v14, %v2263_v5  ;;  %v2572_v5 = vld [vmem:[#allocation2 + $0x139] sm:$0xff]  ;;  %v2573_v14 = vld [vmem:[#allocation2 + $0x141] sm:$0xff] }
 0x184   : > { %7453 = vmatprep.subr.bf16.mxu0 %v8871_v22 }
 0x186   : > { %7390 = vmatmul.mubr.bf16.gmra.mrb[16].mxu0 %v9689_v55  ;;  %v8874_v55 = vld [vmem:[#allocation7 + $0x158] sm:$0xff]  }
 0x187   : > { %7393 = vmatprep.mubr.bf16.mxu0 %v9693_v60  ;;  %v8875_v60 = vld [vmem:[#allocation7 + $0x160] sm:$0xff]  }
 0x18e   : > { %7394 = vmatmul.mubr.bf16.gmra.mrb[20].mxu0 %v9695_v61  ;;  %v2246_v61 = vld [vmem:[#allocation2 + $0x38] sm:$0xff] }
 0x18f   : > { %7397 = vmatprep.mubr.bf16.mxu0 %v9702_v3 }
 0x196   : > { %7398 = vmatmul.mubr.bf16.gmra.mrb[24].mxu0 %v9706_v6 }
 0x197   : > { %7401 = vmatprep.mubr.bf16.mxu0 %v9710_v16  ;;  %v2247_v16 = vld [vmem:[#allocation2 + $0x48] sm:$0xff] }
 0x19e   : > { %7402 = vmatmul.mubr.bf16.gmra.mrb[28].mxu0 %v9773_v42 }
 0x19f   : > { %7421 = vmatprep.mubr.bf16.mxu0 %v9574_v7  ;;  %v8876_v7 = vld [vmem:[#allocation7 + $0x168] sm:$0xff]  }
 0x1a6   : > { %7422 = vmatmul.mubr.bf16.vlgmr.msra.gmra.mrb[0].mxu0 %v9579_v11  ;;  %v8877_v11 = vld [vmem:[#allocation7 + $0x170] sm:$0xff]  }
 0x1a7   : > { %7454 = vmatpush3.bf16.msra.mxu0 %v8871_v22  ;;  %7425 = vmatprep.mubr.bf16.mxu0 %v9582_v12  ;;  %v8878_v12 = vld [vmem:[#allocation7 + $0x178] sm:$0xff]   ;;  %v2287_v22 = vpack.c.bf16 %v2266_v8, %v2265_v15 }
 0x1a8   : > { %7455 = vmatprep.subr.bf16.mxu0 %v8872_v46  ;;  %v2574_v15 = vld [vmem:[#allocation2 + $0x151] sm:$0xff]  ;;  %v2575_v8 = vld [vmem:[#allocation2 + $0x159] sm:$0xff] }
 0x1ab   : > { %7456 = vmatpush3.bf16.msra.mxu0 %v8872_v46  ;;  %v2269_v46 = vld [vmem:[#allocation2 + $0x150] sm:$0xff] }
 0x1ac   : > { %7457 = vmatprep.subr.bf16.mxu0 %v8873_v54 }
 0x1ae   : > { %7426 = vmatmul.mubr.bf16.gmra.mrb[4].mxu0 %v9588_v17  ;;  %v8879_v17 = vld [vmem:[#allocation7 + $0x180] sm:$0xff]  }
 0x1af   : > { %7429 = vmatprep.mubr.bf16.mxu0 %v9594_v21  ;;  %7458 = vmatpush3.bf16.msra.mxu0 %v8873_v54  ;;  %v8880_v21 = vld [vmem:[#allocation7 + $0x188] sm:$0xff]   ;;  %v2270_v54 = vld [vmem:[#allocation2 + $0x158] sm:$0xff] }
 0x1b0   : > { %7459 = vmatprep.subr.bf16.mxu0 %v8874_v55 }
 0x1b3   : > { %7460 = vmatpush3.bf16.msra.mxu0 %v8874_v55  ;;  %v2288_v55 = vpack.c.bf16 %v2268_v34, %v2267_v32  ;;  %v2577_v32 = vld [vmem:[#allocation2 + $0x171] sm:$0xff] }
 0x1b4   : > { %7461 = vmatprep.subr.bf16.mxu0 %v8875_v60 }
 0x1b6   : > { %7430 = vmatmul.mubr.bf16.gmra.mrb[8].mxu0 %v9599_v24  ;;  %v8881_v24 = vld [vmem:[#allocation7 + $0x190] sm:$0xff]  }
 0x1b7   : > { %7433 = vmatprep.mubr.bf16.mxu0 %v9602_v25  ;;  %7462 = vmatpush3.bf16.msra.mxu0 %v8875_v60  ;;  %v8882_v25 = vld [vmem:[#allocation7 + $0x198] sm:$0xff]   ;;  %v2289_v60 = vpack.c.bf16 %v2270_v54, %v2269_v46  ;;  %v2581_v54 = vld [vmem:[#allocation2 + $0x1a1] sm:$0xff] }
 0x1b8   : > { %7463 = vmatprep.subr.bf16.mxu0 %v8876_v7  ;;  %v2580_v46 = vld [vmem:[#allocation2 + $0x199] sm:$0xff] }
 0x1bb   : > { %7464 = vmatpush3.bf16.msra.mxu0 %v8876_v7  ;;  %v2271_v7 = vld [vmem:[#allocation2 + $0x168] sm:$0xff] }
 0x1bc   : > { %7465 = vmatprep.subr.bf16.mxu0 %v8877_v11 }
 0x1be   : > { %7434 = vmatmul.mubr.bf16.gmra.mrb[12].mxu0 %v9609_v30  ;;  %v8883_v30 = vld [vmem:[#allocation7 + $0x1a0] sm:$0xff]  }
 0x1bf   : > { %7437 = vmatprep.mubr.bf16.mxu0 %v9612_v31  ;;  %7466 = vmatpush3.bf16.msra.mxu0 %v8877_v11  ;;  %v8884_v31 = vld [vmem:[#allocation7 + $0x1a8] sm:$0xff]   ;;  %v2272_v11 = vld [vmem:[#allocation2 + $0x170] sm:$0xff] }
 0x1c0   : > { %7467 = vmatprep.subr.bf16.mxu0 %v8878_v12 }
 0x1c3   : > { %7468 = vmatpush3.bf16.msra.mxu0 %v8878_v12  ;;  %v2290_v12 = vpack.c.bf16 %v2272_v11, %v2271_v7  ;;  %v2597_v7 = vpack.c.bf16 %v2581_v54, %v2580_v46 }
 0x1c4   : > { %7501 = vmatprep.subr.bf16.mxu0 %v8879_v17 }
 0x1c6   : > { %7438 = vmatmul.mubr.bf16.gmra.mrb[16].mxu0 %v9618_v36  ;;  %v8885_v36 = vld [vmem:[#allocation7 + $0x1b0] sm:$0xff]  }
 0x1c7   : > { %7441 = vmatprep.mubr.bf16.mxu0 %v9624_v40  ;;  %v8886_v40 = vld [vmem:[#allocation7 + $0x1b8] sm:$0xff]  }
 0x1ce   : > { %7442 = vmatmul.mubr.bf16.gmra.mrb[20].mxu0 %v9629_v43  ;;  %v8887_v43 = vld [vmem:[#allocation7 + $0x1c0] sm:$0xff]  }
 0x1cf   : > { %7445 = vmatprep.mubr.bf16.mxu0 %v9632_v44  ;;  %v1969_v44 = vld [vmem:[#allocation2 + $0x182] sm:$0xff] }
 0x1d6   : > { %7446 = vmatmul.mubr.bf16.gmra.mrb[24].mxu0 %v9639_v50  ;;  %v1970_v50 = vld [vmem:[#allocation2 + $0x18a] sm:$0xff] }
 0x1d7   : > { %7449 = vmatprep.mubr.bf16.mxu0 %v9642_v51  ;;  %v2245_v51 = vld [vmem:[#allocation2 + $0x30] sm:$0xff]  ;;  %v9807_v3 = vpack.c.bf16 %v1970_v50, %v1969_v44  ;;  %v9816_v50 = vld [vmem:[#allocation9 + $0x48] sm:$0xff]  }
 0x1d8   : > { %v2277_v6 = vpack.c.bf16 %v2246_v61, %v2245_v51  ;;  %v2555_v44 = vld [vmem:[#allocation2 + $0x69] sm:$0xff] }
 0x1d9   : > { %v8896_v61 = vld [vmem:[#allocation7 + $0x208] sm:$0xff]  }
 0x1de   : > { %7450 = vmatmul.mubr.bf16.gmra.mrb[28].mxu0 %v9700_v2 }
 0x1df   : > { %7469 = vmatprep.mubr.bf16.mxu0 %v9713_v28  ;;  %v2248_v28 = vld [vmem:[#allocation2 + $0x50] sm:$0xff] }
 0x1e6   : > { %7470 = vmatmul.mubr.bf16.vlgmr.msra.gmra.mrb[0].mxu0 %v9715_v29  ;;  %v2249_v29 = vld [vmem:[#allocation2 + $0x60] sm:$0xff] }
 0x1e7   : > { %7502 = vmatpush3.bf16.msra.mxu0 %v8879_v17  ;;  %7473 = vmatprep.mubr.bf16.mxu0 %v9719_v45  ;;  %v2250_v45 = vld [vmem:[#allocation2 + $0x68] sm:$0xff]  ;;  %v2550_v17 = vld [vmem:[#allocation2 + $0x31] sm:$0xff] }
 0x1e8   : > { %7503 = vmatprep.subr.bf16.mxu0 %v8880_v21 }
 0x1eb   : > { %7504 = vmatpush3.bf16.msra.mxu0 %v8880_v21  ;;  %v2551_v21 = vld [vmem:[#allocation2 + $0x39] sm:$0xff] }
 0x1ec   : > { %7505 = vmatprep.subr.bf16.mxu0 %v8881_v24 }
 0x1ee   : > { %7474 = vmatmul.mubr.bf16.gmra.mrb[4].mxu0 %v9721_v47  ;;  %v2278_v47 = vpack.c.bf16 %v2248_v28, %v2247_v16  ;;  %v2556_v16 = vld [vmem:[#allocation2 + $0x79] sm:$0xff]  ;;  %v2557_v28 = vld [vmem:[#allocation2 + $0x81] sm:$0xff] }
 0x1ef   : > { %7477 = vmatprep.mubr.bf16.mxu0 %v9725_v58  ;;  %7506 = vmatpush3.bf16.msra.mxu0 %v8881_v24  ;;  %v2279_v58 = vpack.c.bf16 %v2250_v45, %v2249_v29  ;;  %v9015_v24 = vld [vmem:[#allocation2] sm:$0xff]  ;;  %v2558_v29 = vld [vmem:[#allocation2 + $0x91] sm:$0xff] }
 0x1f0   : > { %7507 = vmatprep.subr.bf16.mxu0 %v8882_v25  ;;  %v2559_v45 = vld [vmem:[#allocation2 + $0x99] sm:$0xff] }
 0x1f3   : > { %7508 = vmatpush3.bf16.msra.mxu0 %v8882_v25  ;;  %v9811_v25 = vpack.c.bf16 %v9015_v24, %v9015_v24  ;;  %v2860_v24 = vld [vmem:[#allocation2 + $0x6a] sm:$0xff] }
 0x1f4   : > { %7509 = vmatprep.subr.bf16.mxu0 %v8883_v30 }
 0x1f6   : > { %7478 = vmatmul.mubr.bf16.gmra.mrb[8].mxu0 %v9727_v59  ;;  %v8888_v59 = vld [vmem:[#allocation7 + $0x1c8] sm:$0xff]  }
 0x1f7   : > { %7481 = vmatprep.mubr.bf16.mxu0 %v9731_v9  ;;  %7510 = vmatpush3.bf16.msra.mxu0 %v8883_v30  ;;  %v2251_v9 = vld [vmem:[#allocation2 + $0x78] sm:$0xff]  ;;  %v2582_v30 = vpack.c.bf16 %v2551_v21, %v2550_v17  ;;  %v2859_v21 = vld [vmem:[#allocation2 + $0x62] sm:$0xff] }
 0x1f8   : > { %7511 = vmatprep.subr.bf16.mxu0 %v8884_v31  ;;  %v2858_v17 = vld [vmem:[#allocation2 + $0x52] sm:$0xff] }
 0x1fb   : > { %7512 = vmatpush3.bf16.msra.mxu0 %v8884_v31  ;;  %v9814_v31 = vld [vmem:[#allocation9 + $0x40] sm:$0xff]  }
 0x1fc   : > { %7513 = vmatprep.subr.bf16.mxu0 %v8885_v36  ;;  %8125 = vmatprep.subr.bf16.mxu1 %v9814_v31 }
 0x1fd   : > { %8133 = vmatpush3.bf16.msra.mxu1 %v9814_v31 }
 0x1fe   : > { %7482 = vmatmul.mubr.bf16.gmra.mrb[12].mxu0 %v9733_v13  ;;  %v2252_v13 = vld [vmem:[#allocation2 + $0x80] sm:$0xff]  ;;  %8126 = vmatprep.subr.bf16.mxu1 %v9816_v50 }
 0x1ff   : > { %7485 = vmatprep.mubr.bf16.mxu0 %v9737_v27  ;;  %7514 = vmatpush3.bf16.msra.mxu0 %v8885_v36  ;;  %v2280_v26 = vpack.c.bf16 %v2252_v13, %v2251_v9  ;;  %v2281_v27 = vpack.c.bf16 %v2254_v20, %v2253_v18  ;;  %v2552_v36 = vld [vmem:[#allocation2 + $0x49] sm:$0xff]  ;;  %v2586_v9 = vpack.c.bf16 %v2559_v45, %v2558_v29  ;;  %v8898_v13 = vld [vmem:[#allocation7 + $0x218] sm:$0xff]  }
 0x200   : > { %7515 = vmatprep.subr.bf16.mxu0 %v8886_v40  ;;  %v2560_v18 = vld [vmem:[#allocation2 + $0xa9] sm:$0xff]  ;;  %v2561_v20 = vld [vmem:[#allocation2 + $0xb1] sm:$0xff] }
 0x201   : > { %8134 = vmatpush3.bf16.msra.mxu1 %v9816_v50  ;;  %v2868_v29 = vld [vmem:[#allocation2 + $0xca] sm:$0xff] }
 0x203   : > { %7516 = vmatpush3.bf16.msra.mxu0 %v8886_v40  ;;  %v2553_v40 = vld [vmem:[#allocation2 + $0x51] sm:$0xff] }
 0x204   : > { %7549 = vmatprep.subr.bf16.mxu0 %v8887_v43 }
 0x206   : > { %7486 = vmatmul.mubr.bf16.gmra.mrb[16].mxu0 %v9739_v33  ;;  %v8890_v33 = vld [vmem:[#allocation7 + $0x1d8] sm:$0xff]  }
 0x207   : > { %7489 = vmatprep.mubr.bf16.mxu0 %v9743_v41  ;;  %v8891_v41 = vld [vmem:[#allocation7 + $0x1e0] sm:$0xff]  }
 0x20e   : > { %7490 = vmatmul.mubr.bf16.gmra.mrb[20].mxu0 %v9745_v48  ;;  %v2282_v48 = vpack.c.bf16 %v2256_v37, %v2255_v35  ;;  %v8900_v37 = vld [vmem:[#allocation7 + $0x228] sm:$0xff]  }
 0x20f   : > { %7493 = vmatprep.mubr.bf16.mxu0 %v9749_v57  ;;  %v2261_v57 = vld [vmem:[#allocation2 + $0xf0] sm:$0xff] }
 0x216   : > { %7494 = vmatmul.mubr.bf16.gmra.mrb[24].mxu0 %v9751_v62  ;;  %v2262_v62 = vld [vmem:[#allocation2 + $0xf8] sm:$0xff] }
 0x217   : > { %7497 = vmatprep.mubr.bf16.mxu0 %v9755_v1  ;;  %v2285_v1 = vpack.c.bf16 %v2262_v62, %v2261_v57  ;;  %v2568_v57 = vld [vmem:[#allocation2 + $0x109] sm:$0xff]  ;;  %v2569_v62 = vld [vmem:[#allocation2 + $0x111] sm:$0xff] }
 0x21e   : > { %7498 = vmatmul.mubr.bf16.gmra.mrb[28].mxu0 %v9807_v3 }
 0x21f   : > { %7517 = vmatprep.mubr.bf16.mxu0 %v2277_v6  ;;  %v9821_v6 = vld [vmem:[#allocation9 + $0x50] sm:$0xff]  }
 0x220   : > { %8127 = vmatprep.subr.bf16.mxu1 %v9821_v6 }
 0x221   : > { %8135 = vmatpush3.bf16.msra.mxu1 %v9821_v6 }
 0x226   : > { %7518 = vmatmul.mubr.bf16.vlgmr.msra.gmra.mrb[0].mxu0 %v2278_v47  ;;  %v8897_v47 = vld [vmem:[#allocation7 + $0x210] sm:$0xff]  }
 0x227   : > { %7550 = vmatpush3.bf16.msra.mxu0 %v8887_v43  ;;  %7521 = vmatprep.mubr.bf16.mxu0 %v2279_v58  ;;  %v2554_v43 = vld [vmem:[#allocation2 + $0x61] sm:$0xff]  ;;  %v9825_v58 = vld [vmem:[#allocation9 + $0x58] sm:$0xff]  }
 0x228   : > { %7551 = vmatprep.subr.bf16.mxu0 %v8888_v59  ;;  %v2584_v51 = vpack.c.bf16 %v2555_v44, %v2554_v43  ;;  %8128 = vmatprep.subr.bf16.mxu1 %v9825_v58  ;;  %v2862_v43 = vld [vmem:[#allocation2 + $0x82] sm:$0xff]  ;;  %v2864_v44 = vld [vmem:[#allocation2 + $0x9a] sm:$0xff] }
 0x229   : > { %8136 = vmatpush3.bf16.msra.mxu1 %v9825_v58 }
 0x22b   : > { %7552 = vmatpush3.bf16.msra.mxu0 %v8888_v59  ;;  %v2585_v59 = vpack.c.bf16 %v2557_v28, %v2556_v16  ;;  %v2866_v16 = vld [vmem:[#allocation2 + $0xb2] sm:$0xff]  ;;  %v2867_v28 = vld [vmem:[#allocation2 + $0xc2] sm:$0xff] }
 0x22c   : > { %7553 = vmatprep.subr.bf16.mxu0 %v8889_v23  ;;  %v2893_v45 = vpack.c.bf16 %v2868_v29, %v2867_v28 }
 0x22e   : > { %7522 = vmatmul.mubr.bf16.gmra.mrb[4].mxu0 %v2280_v26  ;;  %v2563_v26 = vld [vmem:[#allocation2 + $0xc9] sm:$0xff] }
 0x22f   : > { %7525 = vmatprep.mubr.bf16.mxu0 %v2281_v27  ;;  %7554 = vmatpush3.bf16.msra.mxu0 %v8889_v23  ;;  %v2562_v23 = vld [vmem:[#allocation2 + $0xc1] sm:$0xff] }
 0x230   : > { %7555 = vmatprep.subr.bf16.mxu0 %v8890_v33  ;;  %v8899_v27 = vld [vmem:[#allocation7 + $0x220] sm:$0xff]   ;;  %v2588_v35 = vpack.c.bf16 %v2563_v26, %v2562_v23  ;;  %v2876_v26 = vld [vmem:[#allocation2 + $0x12a] sm:$0xff] }
 0x231   : > { %v2875_v23 = vld [vmem:[#allocation2 + $0x122] sm:$0xff] }
 0x233   : > { %7556 = vmatpush3.bf16.msra.mxu0 %v8890_v33  ;;  %v2587_v33 = vpack.c.bf16 %v2561_v20, %v2560_v18  ;;  %v2873_v20 = vld [vmem:[#allocation2 + $0x10a] sm:$0xff] }
 0x234   : > { %7557 = vmatprep.subr.bf16.mxu0 %v8891_v41 }
 0x236   : > { %7526 = vmatmul.mubr.bf16.gmra.mrb[8].mxu0 %v2282_v48  ;;  %v2567_v48 = vld [vmem:[#allocation2 + $0xf9] sm:$0xff] }
 0x237   : > { %7529 = vmatprep.mubr.bf16.mxu0 %v2283_v49  ;;  %7558 = vmatpush3.bf16.msra.mxu0 %v8891_v41  ;;  %v2566_v41 = vld [vmem:[#allocation2 + $0xf1] sm:$0xff] }
 0x238   : > { %7559 = vmatprep.subr.bf16.mxu0 %v8892_v52  ;;  %v8901_v49 = vld [vmem:[#allocation7 + $0x230] sm:$0xff]   ;;  %v2590_v53 = vpack.c.bf16 %v2567_v48, %v2566_v41 }
 0x239   : > { %v2881_v48 = vld [vmem:[#allocation2 + $0x16a] sm:$0xff] }
 0x23b   : > { %7560 = vmatpush3.bf16.msra.mxu0 %v8892_v52  ;;  %v2589_v52 = vpack.c.bf16 %v2565_v39, %v2564_v38  ;;  %v2880_v38 = vld [vmem:[#allocation2 + $0x15a] sm:$0xff] }
 0x23c   : > { %7561 = vmatprep.subr.bf16.mxu0 %v8893_v63 }
 0x23e   : > { %7530 = vmatmul.mubr.bf16.gmra.mrb[12].mxu0 %v2284_v0  ;;  %v2571_v0 = vld [vmem:[#allocation2 + $0x129] sm:$0xff] }
 0x23f   : > { %7533 = vmatprep.mubr.bf16.mxu0 %v2285_v1  ;;  %7562 = vmatpush3.bf16.msra.mxu0 %v8893_v63  ;;  %v2570_v63 = vld [vmem:[#allocation2 + $0x121] sm:$0xff]  ;;  %v2591_v1 = vpack.c.bf16 %v2569_v62, %v2568_v57 }
 0x240   : > { %7563 = vmatprep.subr.bf16.mxu0 %v8894_v4  ;;  %v8907_v62 = vld [vmem:[#allocation9 + $0x60] sm:$0xff]  }
 0x241   : > { %8129 = vmatprep.subr.bf16.mxu1 %v8907_v62 }
 0x242   : > { %8137 = vmatpush3.bf16.msra.mxu1 %v8907_v62 }
 0x243   : > { %7564 = vmatpush3.bf16.msra.mxu0 %v8894_v4  ;;  %v2592_v4 = vpack.c.bf16 %v2571_v0, %v2570_v63  ;;  %v8908_v63 = vld [vmem:[#allocation9 + $0x68] sm:$0xff]   ;;  %v8909_v0 = vld [vmem:[#allocation9 + $0x70] sm:$0xff]  }
 0x244   : > { %7597 = vmatprep.subr.bf16.mxu0 %v8895_v10  ;;  %8130 = vmatprep.subr.bf16.mxu1 %v8908_v63 }
 0x246   : > { %7534 = vmatmul.mubr.bf16.gmra.mrb[16].mxu0 %v2286_v19  ;;  %v2594_v19 = vpack.c.bf16 %v2575_v8, %v2574_v15  ;;  %8138 = vmatpush3.bf16.msra.mxu1 %v8908_v63  ;;  %v9846_v15 = vld [vmem:[%s10288_s2] ss:$0 sm:$0xff] }
 0x247   : > { %7537 = vmatprep.mubr.bf16.mxu0 %v2287_v22  ;;  %v2576_v22 = vld [vmem:[#allocation2 + $0x169] sm:$0xff]  ;;  %8131 = vmatprep.subr.bf16.mxu1 %v8909_v0 }
 0x248   : > { %v2595_v34 = vpack.c.bf16 %v2577_v32, %v2576_v22 }
 0x24a   : > { %8139 = vmatpush3.bf16.msra.mxu1 %v8909_v0 }
 0x24e   : > { %7538 = vmatmul.mubr.bf16.gmra.mrb[20].mxu0 %v2288_v55  ;;  %v2855_v55 = vld [vmem:[#allocation2 + $0x32] sm:$0xff] }
 0x24f   : > { %7541 = vmatprep.mubr.bf16.mxu0 %v2289_v60  ;;  %v2856_v60 = vld [vmem:[#allocation2 + $0x3a] sm:$0xff] }
 0x250   : > { %v2887_v11 = vpack.c.bf16 %v2856_v60, %v2855_v55 }
 0x256   : > { %7542 = vmatmul.mubr.bf16.gmra.mrb[24].mxu0 %v2290_v12  ;;  %v2857_v12 = vld [vmem:[#allocation2 + $0x4a] sm:$0xff] }
 0x257   : > { %7545 = vmatprep.mubr.bf16.mxu0 %v9773_v42  ;;  %v2583_v42 = vpack.c.bf16 %v2553_v40, %v2552_v36  ;;  %v2889_v36 = vpack.c.bf16 %v2860_v24, %v2859_v21  ;;  %v2861_v40 = vld [vmem:[#allocation2 + $0x7a] sm:$0xff] }
 0x25e   : > { %7546 = vmatmul.mubr.bf16.gmra.mrb[28].mxu0 %v9811_v25 }
 0x25f   : > { %7565 = vmatprep.mubr.bf16.mxu0 %v2582_v30  ;;  %v2888_v30 = vpack.c.bf16 %v2858_v17, %v2857_v12 }
 0x266   : > { %7566 = vmatmul.mubr.bf16.vlgmr.msra.gmra.mrb[0].mxu0 %v2583_v42  ;;  %v2890_v42 = vpack.c.bf16 %v2862_v43, %v2861_v40 }
 0x267   : > { %7598 = vmatpush3.bf16.msra.mxu0 %v8895_v10  ;;  %7569 = vmatprep.mubr.bf16.mxu0 %v2584_v51  ;;  %v2593_v10 = vpack.c.bf16 %v2573_v14, %v2572_v5  ;;  %v9840_v14 = vld [vmem:[#allocation9] sm:$0xff]  }
 0x268   : > { %7599 = vmatprep.subr.bf16.mxu0 %v8896_v61 }
 0x26b   : > { %7600 = vmatpush3.bf16.msra.mxu0 %v8896_v61  ;;  %v2865_v61 = vld [vmem:[#allocation2 + $0xaa] sm:$0xff] }
 0x26c   : > { %7601 = vmatprep.subr.bf16.mxu0 %v8897_v47 }
 0x26e   : > { %7570 = vmatmul.mubr.bf16.gmra.mrb[4].mxu0 %v2585_v59  ;;  %v2871_v59 = vld [vmem:[#allocation2 + $0xf2] sm:$0xff] }
 0x26f   : > { %7573 = vmatprep.mubr.bf16.mxu0 %v2586_v9  ;;  %7602 = vmatpush3.bf16.msra.mxu0 %v8897_v47  ;;  %v2869_v47 = vld [vmem:[#allocation2 + $0xda] sm:$0xff] }
 0x270   : > { %7603 = vmatprep.subr.bf16.mxu0 %v8898_v13  ;;  %v2872_v9 = vld [vmem:[#allocation2 + $0xfa] sm:$0xff] }
 0x271   : > { %v2895_v18 = vpack.c.bf16 %v2872_v9, %v2871_v59 }
 0x273   : > { %7604 = vmatpush3.bf16.msra.mxu0 %v8898_v13 }
 0x274   : > { %7605 = vmatprep.subr.bf16.mxu0 %v8899_v27 }
 0x276   : > { %7574 = vmatmul.mubr.bf16.gmra.mrb[8].mxu0 %v2587_v33  ;;  %v2897_v33 = vpack.c.bf16 %v2876_v26, %v2875_v23 }
 0x277   : > { %7577 = vmatprep.mubr.bf16.mxu0 %v2588_v35  ;;  %7606 = vmatpush3.bf16.msra.mxu0 %v8899_v27  ;;  %v2877_v35 = vld [vmem:[#allocation2 + $0x13a] sm:$0xff] }
 0x278   : > { %7607 = vmatprep.subr.bf16.mxu0 %v8900_v37 }
 0x27b   : > { %7608 = vmatpush3.bf16.msra.mxu0 %v8900_v37  ;;  %v2879_v37 = vld [vmem:[#allocation2 + $0x152] sm:$0xff] }
 0x27c   : > { %7609 = vmatprep.subr.bf16.mxu0 %v8901_v49  ;;  %v2899_v41 = vpack.c.bf16 %v2880_v38, %v2879_v37 }
 0x27e   : > { %7578 = vmatmul.mubr.bf16.gmra.mrb[12].mxu0 %v2589_v52 }
 0x27f   : > { %7581 = vmatprep.mubr.bf16.mxu0 %v2590_v53  ;;  %7610 = vmatpush3.bf16.msra.mxu0 %v8901_v49  ;;  %v2882_v49 = vld [vmem:[#allocation2 + $0x172] sm:$0xff]  ;;  %v2885_v53 = vld [vmem:[#allocation2 + $0x19a] sm:$0xff] }
 0x280   : > { %7611 = vmatprep.subr.bf16.mxu0 %v8902_v56  ;;  %v2900_v52 = vpack.c.bf16 %v2882_v49, %v2881_v48 }
 0x283   : > { %7612 = vmatpush3.bf16.msra.mxu0 %v8902_v56  ;;  %v2886_v56 = vld [vmem:[#allocation2 + $0x1a2] sm:$0xff] }
 0x284   : > { %7645 = vmatprep.subr.bf16.mxu0 %v9814_v31  ;;  %v2902_v57 = vpack.c.bf16 %v2886_v56, %v2885_v53 }
 0x286   : > { %7582 = vmatmul.mubr.bf16.gmra.mrb[16].mxu0 %v2591_v1  ;;  %v3367_v1 = vld [vmem:[#allocation3 + $0x1] sm:$0xff] }
 0x287   : > { %7585 = vmatprep.mubr.bf16.mxu0 %v2592_v4  ;;  %v3368_v4 = vld [vmem:[#allocation3 + $0x9] sm:$0xff] }
 0x288   : > { %v3399_v5 = vpack.c.bf16 %v3368_v4, %v3367_v1 }
 0x28e   : > { %7586 = vmatmul.mubr.bf16.gmra.mrb[20].mxu0 %v2593_v10 }
 0x28f   : > { %7589 = vmatprep.mubr.bf16.mxu0 %v2594_v19 }
 0x296   : > { %7590 = vmatmul.mubr.bf16.gmra.mrb[24].mxu0 %v2595_v34 }
 0x297   : > { %7593 = vmatprep.mubr.bf16.mxu0 %v9700_v2  ;;  %v2863_v2 = vld [vmem:[#allocation2 + $0x92] sm:$0xff] }
 0x298   : > { %v2891_v51 = vpack.c.bf16 %v2864_v44, %v2863_v2 }
 0x29e   : > { %7594 = vmatmul.mubr.bf16.gmra.mrb[28].mxu0 %v2597_v7 }
 0x29f   : > { %7613 = vmatprep.mubr.bf16.mxu0 %v2887_v11 }
 0x2a6   : > { %7614 = vmatmul.mubr.bf16.vlgmr.msra.gmra.mrb[0].mxu0 %v2888_v30 }
 0x2a7   : > { %7617 = vmatprep.mubr.bf16.mxu0 %v2889_v36  ;;  %7646 = vmatpush3.bf16.msra.mxu0 %v9814_v31  ;;  %v2892_v31 = vpack.c.bf16 %v2866_v16, %v2865_v61 }
 0x2a8   : > { %7647 = vmatprep.subr.bf16.mxu0 %v9816_v50 }
 0x2ab   : > { %7648 = vmatpush3.bf16.msra.mxu0 %v9816_v50  ;;  %v2870_v50 = vld [vmem:[#allocation2 + $0xe2] sm:$0xff] }
 0x2ac   : > { %7649 = vmatprep.subr.bf16.mxu0 %v9821_v6  ;;  %v2894_v13 = vpack.c.bf16 %v2870_v50, %v2869_v47 }
 0x2ae   : > { %7618 = vmatmul.mubr.bf16.gmra.mrb[4].mxu0 %v2890_v42 }
 0x2af   : > { %7621 = vmatprep.mubr.bf16.mxu0 %v2891_v51  ;;  %7650 = vmatpush3.bf16.msra.mxu0 %v9821_v6  ;;  %v2874_v6 = vld [vmem:[#allocation2 + $0x112] sm:$0xff] }
 0x2b0   : > { %7651 = vmatprep.subr.bf16.mxu0 %v9825_v58  ;;  %v2896_v27 = vpack.c.bf16 %v2874_v6, %v2873_v20 }
 0x2b3   : > { %7652 = vmatpush3.bf16.msra.mxu0 %v9825_v58  ;;  %v2878_v58 = vld [vmem:[#allocation2 + $0x142] sm:$0xff] }
 0x2b4   : > { %v2898_v39 = vpack.c.bf16 %v2878_v58, %v2877_v35  ;;  %7653 = vmatprep.subr.bf16.mxu0 %v8907_v62 }
 0x2b6   : > { %7622 = vmatmul.mubr.bf16.gmra.mrb[8].mxu0 %v2892_v31 }
 0x2b7   : > { %7625 = vmatprep.mubr.bf16.mxu0 %v2893_v45  ;;  %7654 = vmatpush3.bf16.msra.mxu0 %v8907_v62 }
 0x2b8   : > { %7655 = vmatprep.subr.bf16.mxu0 %v8908_v63 }
 0x2bb   : > { %7656 = vmatpush3.bf16.msra.mxu0 %v8908_v63 }
 0x2bc   : > { %7657 = vmatprep.subr.bf16.mxu0 %v8909_v0 }
 0x2be   : > { %7626 = vmatmul.mubr.bf16.gmra.mrb[12].mxu0 %v2894_v13 }
 0x2bf   : > { %7629 = vmatprep.mubr.bf16.mxu0 %v2895_v18  ;;  %7658 = vmatpush3.bf16.msra.mxu0 %v8909_v0 }
 0x2c6   : > { %7630 = vmatmul.mubr.bf16.gmra.mrb[16].mxu0 %v2896_v27 }
 0x2c7   : > { %7633 = vmatprep.mubr.bf16.mxu0 %v2897_v33 }
 0x2ce   : > { %7634 = vmatmul.mubr.bf16.gmra.mrb[20].mxu0 %v2898_v39 }
 0x2cf   : > { %7637 = vmatprep.mubr.bf16.mxu0 %v2899_v41 }
 0x2d6   : > { %7638 = vmatmul.mubr.bf16.gmra.mrb[24].mxu0 %v2900_v52 }
 0x2d7   : > { %7641 = vmatprep.mubr.bf16.mxu0 %v9807_v3  ;;  %v8910_v3 = vld [vmem:[#allocation9 + $0x78] sm:$0xff]  }
 0x2d8   : > { %7659 = vmatprep.subr.bf16.mxu0 %v8910_v3  ;;  %8132 = vmatprep.subr.bf16.mxu1 %v8910_v3 }
 0x2d9   : > { %7660 = vmatpush3.bf16.msra.mxu0 %v8910_v3  ;;  %8140 = vmatpush3.bf16.msra.mxu1 %v8910_v3 }
 0x2da   : > { %7693 = vmatprep.subr.bf16.mxu1 %v9840_v14 }
 0x2de   : > { %7642 = vmatmul.mubr.bf16.gmra.mrb[28].mxu0 %v2902_v57 }
 0x2df   : > { %7661 = vmatprep.mubr.bf16.mxu0 %v3399_v5 }
 0x379   : > { %v7615_v8 = vpop.f32.mrb[0].mxu0 }
 0x37a   : > { %v3169_v10 = vadd.f32 %v7615_v8, %v9846_v15  ;;  %v3001_v19 = vpop.f32.mrb[1].mxu0 }
 0x37b   : > { %v3167_v22 = vadd.f32 %v9846_v15, %v3001_v19  ;;  %v7616_v32 = vpop.f32.mrb[2].mxu0 }
 0x37c   : > { %v3201_v34 = vmax.f32 %v3169_v10, 0.0  ;;  %v3170_v46 = vadd.f32 %v7616_v32, %v9846_v15  ;;  %v3004_v54 = vpop.f32.mrb[3].mxu0 }
 0x37d   : > { %v3199_v55 = vmax.f32 %v3167_v22, 0.0  ;;  %v3168_v60 = vadd.f32 %v9846_v15, %v3004_v54 }
 0x37e   : > { %3273 = vst [vmem:[#allocation3 + $0x31] sm:$0xff] %v3201_v34  ;;  %v3202_v7 = vmax.f32 %v3170_v46, 0.0 }
 0x37f   : > { %3271 = vst [vmem:[#allocation3 + $0x19] sm:$0xff] %v3199_v55  ;;  %v3200_v11 = vmax.f32 %v3168_v60, 0.0 }
 0x380   : > { %3274 = vst [vmem:[#allocation3 + $0x39] sm:$0xff] %v3202_v7  ;;  %v3401_v12 = vpack.c.bf16 %v3202_v7, %v3201_v34  ;;  %v8912_v7 = vld [vmem:[#allocation9 + $0x8] sm:$0xff]  }
 0x381   : > { %3272 = vst [vmem:[#allocation3 + $0x21] sm:$0xff] %v3200_v11  ;;  %v7619_v17 = vpop.f32.mrb[4].mxu0  ;;  %v3400_v21 = vpack.c.bf16 %v3200_v11, %v3199_v55 }
 0x382   : > { %v3173_v24 = vadd.f32 %v7619_v17, %v9846_v15  ;;  %v3017_v30 = vpop.f32.mrb[5].mxu0 }
 0x383   : > { %v3171_v36 = vadd.f32 %v9846_v15, %v3017_v30  ;;  %v7620_v40 = vpop.f32.mrb[6].mxu0  ;;  %7662 = vmatmul.mubr.bf16.vlgmr.msra.gmra.mrb[32].mxu0 %v3400_v21 }
 0x384   : > { %v3205_v43 = vmax.f32 %v3173_v24, 0.0  ;;  %v3174_v2 = vadd.f32 %v7620_v40, %v9846_v15  ;;  %v3020_v44 = vpop.f32.mrb[7].mxu0  ;;  %7665 = vmatprep.mubr.bf16.mxu0 %v3401_v12 }
 0x385   : > { %v3203_v42 = vmax.f32 %v3171_v36, 0.0  ;;  %v3172_v51 = vadd.f32 %v9846_v15, %v3020_v44 }
 0x386   : > { %3277 = vst [vmem:[#allocation3 + $0x61] sm:$0xff] %v3205_v43  ;;  %v3206_v61 = vmax.f32 %v3174_v2, 0.0  ;;  %v8913_v2 = vld [vmem:[#allocation9 + $0x10] sm:$0xff]  }
 0x387   : > { %3275 = vst [vmem:[#allocation3 + $0x49] sm:$0xff] %v3203_v42  ;;  %v3204_v16 = vmax.f32 %v3172_v51, 0.0 }
 0x388   : > { %3278 = vst [vmem:[#allocation3 + $0x69] sm:$0xff] %v3206_v61  ;;  %v3403_v28 = vpack.c.bf16 %v3206_v61, %v3205_v43 }
 0x389   : > { %3276 = vst [vmem:[#allocation3 + $0x51] sm:$0xff] %v3204_v16  ;;  %v7623_v29 = vpop.f32.mrb[8].mxu0  ;;  %v3402_v31 = vpack.c.bf16 %v3204_v16, %v3203_v42 }
 0x38a   : > { %v3177_v45 = vadd.f32 %v7623_v29, %v9846_v15  ;;  %v3033_v47 = vpop.f32.mrb[9].mxu0 }
 0x38b   : > { %v3175_v50 = vadd.f32 %v9846_v15, %v3033_v47  ;;  %v7624_v59 = vpop.f32.mrb[10].mxu0  ;;  %7666 = vmatmul.mubr.bf16.gmra.mrb[36].mxu0 %v3402_v31 }
 0x38c   : > { %v3209_v9 = vmax.f32 %v3177_v45, 0.0  ;;  %v3178_v13 = vadd.f32 %v7624_v59, %v9846_v15  ;;  %v3036_v18 = vpop.f32.mrb[11].mxu0  ;;  %7669 = vmatprep.mubr.bf16.mxu0 %v3403_v28  ;;  %v8914_v28 = vld [vmem:[#allocation9 + $0x18] sm:$0xff]  }
 0x38d   : > { %v3207_v20 = vmax.f32 %v3175_v50, 0.0  ;;  %v3176_v6 = vadd.f32 %v9846_v15, %v3036_v18  ;;  %v8915_v18 = vld [vmem:[#allocation9 + $0x20] sm:$0xff]  }
 0x38e   : > { %3281 = vst [vmem:[#allocation3 + $0x91] sm:$0xff] %v3209_v9  ;;  %v3210_v23 = vmax.f32 %v3178_v13, 0.0 }
 0x38f   : > { %3279 = vst [vmem:[#allocation3 + $0x79] sm:$0xff] %v3207_v20  ;;  %v3208_v26 = vmax.f32 %v3176_v6, 0.0 }
 0x390   : > { %3282 = vst [vmem:[#allocation3 + $0x99] sm:$0xff] %v3210_v23  ;;  %v3405_v27 = vpack.c.bf16 %v3210_v23, %v3209_v9 }
 0x391   : > { %3280 = vst [vmem:[#allocation3 + $0x81] sm:$0xff] %v3208_v26  ;;  %v7627_v33 = vpop.f32.mrb[12].mxu0  ;;  %v3404_v35 = vpack.c.bf16 %v3208_v26, %v3207_v20 }
 0x392   : > { %v3181_v58 = vadd.f32 %v7627_v33, %v9846_v15  ;;  %v3049_v37 = vpop.f32.mrb[13].mxu0  ;;  %v8916_v33 = vld [vmem:[#allocation9 + $0x28] sm:$0xff]  }
 0x393   : > { %v3179_v38 = vadd.f32 %v9846_v15, %v3049_v37  ;;  %v7628_v39 = vpop.f32.mrb[14].mxu0  ;;  %7670 = vmatmul.mubr.bf16.gmra.mrb[40].mxu0 %v3404_v35 }
 0x394   : > { %v3213_v41 = vmax.f32 %v3181_v58, 0.0  ;;  %v3182_v48 = vadd.f32 %v7628_v39, %v9846_v15  ;;  %v3052_v49 = vpop.f32.mrb[15].mxu0  ;;  %7673 = vmatprep.mubr.bf16.mxu0 %v3405_v27 }
 0x395   : > { %v3211_v52 = vmax.f32 %v3179_v38, 0.0  ;;  %v3180_v53 = vadd.f32 %v9846_v15, %v3052_v49 }
 0x396   : > { %3285 = vst [vmem:[#allocation3 + $0xc1] sm:$0xff] %v3213_v41  ;;  %v3214_v56 = vmax.f32 %v3182_v48, 0.0 }
 0x397   : > { %3283 = vst [vmem:[#allocation3 + $0xa9] sm:$0xff] %v3211_v52  ;;  %v3212_v57 = vmax.f32 %v3180_v53, 0.0  ;;  %v8917_v53 = vld [vmem:[#allocation9 + $0x30] sm:$0xff]  }
 0x398   : > { %3286 = vst [vmem:[#allocation3 + $0xc9] sm:$0xff] %v3214_v56  ;;  %v3407_v62 = vpack.c.bf16 %v3214_v56, %v3213_v41 }
 0x399   : > { %3284 = vst [vmem:[#allocation3 + $0xb1] sm:$0xff] %v3212_v57  ;;  %v7631_v63 = vpop.f32.mrb[16].mxu0  ;;  %v3406_v0 = vpack.c.bf16 %v3212_v57, %v3211_v52 }
 0x39a   : > { %v3185_v3 = vadd.f32 %v7631_v63, %v9846_v15  ;;  %v3065_v1 = vpop.f32.mrb[17].mxu0  ;;  %7677 = vmatprep.mubr.bf16.mxu1 %v3407_v62 }
 0x39b   : > { %v3183_v4 = vadd.f32 %v9846_v15, %v3065_v1  ;;  %v7632_v5 = vpop.f32.mrb[18].mxu0  ;;  %7674 = vmatmul.mubr.bf16.gmra.mrb[44].mxu0 %v3406_v0  ;;  %v8918_v0 = vld [vmem:[#allocation9 + $0x38] sm:$0xff]   ;;  %v3308_v1 = vld [vmem:[#allocation3 + $0x38] sm:$0xff] }
 0x39c   : > { %v3217_v8 = vmax.f32 %v3185_v3, 0.0  ;;  %v3186_v10 = vadd.f32 %v7632_v5, %v9846_v15  ;;  %v3068_v19 = vpop.f32.mrb[19].mxu0  ;;  %v3306_v3 = vld [vmem:[#allocation3 + $0x20] sm:$0xff] }
 0x39d   : > { %v3215_v22 = vmax.f32 %v3183_v4, 0.0  ;;  %v3184_v32 = vadd.f32 %v9846_v15, %v3068_v19  ;;  %v3305_v4 = vld [vmem:[#allocation3 + $0x18] sm:$0xff] }
 0x39e   : > { %3289 = vst [vmem:[#allocation3 + $0xf1] sm:$0xff] %v3217_v8  ;;  %v3218_v34 = vmax.f32 %v3186_v10, 0.0  ;;  %v9891_v5 = vpack.c.bf16 %v3306_v3, %v3305_v4  ;;  %v8920_v10 = vld [vmem:[#allocation9 + $0x88] sm:$0xff]   ;;  %v8929_v4 = vld [vmem:[#allocation9 + $0xd0] sm:$0xff]  }
 0x39f   : > { %3287 = vst [vmem:[#allocation3 + $0xd9] sm:$0xff] %v3215_v22  ;;  %v3216_v46 = vmax.f32 %v3184_v32, 0.0  ;;  %v3312_v32 = vld [vmem:[#allocation3 + $0x68] sm:$0xff]  ;;  %v8928_v3 = vld [vmem:[#allocation9 + $0xc8] sm:$0xff]  }
 0x3a0   : > { %3290 = vst [vmem:[#allocation3 + $0xf9] sm:$0xff] %v3218_v34  ;;  %v3409_v54 = vpack.c.bf16 %v3218_v34, %v3217_v8  ;;  %v3307_v8 = vld [vmem:[#allocation3 + $0x30] sm:$0xff]  ;;  %v3309_v34 = vld [vmem:[#allocation3 + $0x48] sm:$0xff] }
 0x3a1   : > { %3288 = vst [vmem:[#allocation3 + $0xe1] sm:$0xff] %v3216_v46  ;;  %v7635_v55 = vpop.f32.mrb[20].mxu0  ;;  %v3408_v60 = vpack.c.bf16 %v3216_v46, %v3215_v22  ;;  %v9893_v19 = vpack.c.bf16 %v3308_v1, %v3307_v8  ;;  %v3310_v22 = vld [vmem:[#allocation3 + $0x50] sm:$0xff] }
 0x3a2   : > { %v3189_v11 = vadd.f32 %v7635_v55, %v9846_v15  ;;  %v3081_v12 = vpop.f32.mrb[21].mxu0  ;;  %v9897_v46 = vpack.c.bf16 %v3310_v22, %v3309_v34  ;;  %v8922_v55 = vld [vmem:[#allocation9 + $0x98] sm:$0xff]  }
 0x3a3   : > { %v3187_v17 = vadd.f32 %v9846_v15, %v3081_v12  ;;  %v7636_v21 = vpop.f32.mrb[22].mxu0  ;;  %7678 = vmatmul.mubr.bf16.vlgmr.msra.gmra.mrb[0].mxu1 %v3408_v60  ;;  %v3316_v12 = vld [vmem:[#allocation3 + $0x98] sm:$0xff]  ;;  %v3855_v8 = vld [vmem:[#allocation3 + $0x4a] sm:$0xff] }
 0x3a4   : > { %v3221_v24 = vmax.f32 %v3189_v11, 0.0  ;;  %v3190_v30 = vadd.f32 %v7636_v21, %v9846_v15  ;;  %v3084_v36 = vpop.f32.mrb[23].mxu0  ;;  %7681 = vmatprep.mubr.bf16.mxu1 %v3409_v54  ;;  %7694 = vmatpush3.bf16.msra.mxu1 %v9840_v14  ;;  %v3311_v54 = vld [vmem:[#allocation3 + $0x60] sm:$0xff]  ;;  %v3858_v22 = vld [vmem:[#allocation3 + $0x6a] sm:$0xff] }
 0x3a5   : > { %v3219_v40 = vmax.f32 %v3187_v17, 0.0  ;;  %v3188_v43 = vadd.f32 %v9846_v15, %v3084_v36  ;;  %7695 = vmatprep.subr.bf16.mxu1 %v8912_v7  ;;  %v9899_v60 = vpack.c.bf16 %v3312_v32, %v3311_v54  ;;  %v3314_v11 = vld [vmem:[#allocation3 + $0x80] sm:$0xff]  ;;  %v3313_v17 = vld [vmem:[#allocation3 + $0x78] sm:$0xff]  ;;  %v8930_v34 = vld [vmem:[#allocation9 + $0xd8] sm:$0xff]  }
 0x3a6   : > { %3293 = vst [vmem:[#allocation3 + $0x121] sm:$0xff] %v3221_v24  ;;  %v3222_v44 = vmax.f32 %v3190_v30, 0.0  ;;  %v9903_v21 = vpack.c.bf16 %v3314_v11, %v3313_v17  ;;  %v8924_v30 = vld [vmem:[#allocation9 + $0xa8] sm:$0xff]   ;;  %v3860_v11 = vld [vmem:[#allocation3 + $0x82] sm:$0xff] }
 0x3a7   : > { %3291 = vst [vmem:[#allocation3 + $0x109] sm:$0xff] %v3219_v40  ;;  %v3220_v42 = vmax.f32 %v3188_v43, 0.0  ;;  %v3318_v43 = vld [vmem:[#allocation3 + $0xb0] sm:$0xff]  ;;  %v3862_v17 = vld [vmem:[#allocation3 + $0x9a] sm:$0xff] }
 0x3a8   : > { %3294 = vst [vmem:[#allocation3 + $0x129] sm:$0xff] %v3222_v44  ;;  %7696 = vmatpush3.bf16.msra.mxu1 %v8912_v7  ;;  %v3411_v51 = vpack.c.bf16 %v3222_v44, %v3221_v24  ;;  %v8923_v7 = vld [vmem:[#allocation9 + $0xa0] sm:$0xff]   ;;  %v3317_v44 = vld [vmem:[#allocation3 + $0xa8] sm:$0xff] }
 0x3a9   : > { %3292 = vst [vmem:[#allocation3 + $0x111] sm:$0xff] %v3220_v42  ;;  %v7639_v61 = vpop.f32.mrb[24].mxu0  ;;  %v3410_v16 = vpack.c.bf16 %v3220_v42, %v3219_v40  ;;  %7697 = vmatprep.subr.bf16.mxu1 %v8913_v2  ;;  %v3315_v24 = vld [vmem:[#allocation3 + $0x90] sm:$0xff]  ;;  %v8925_v40 = vld [vmem:[#allocation9 + $0xb0] sm:$0xff]   ;;  %v9909_v42 = vpack.c.bf16 %v3318_v43, %v3317_v44 }
 0x3aa   : > { %v3193_v29 = vadd.f32 %v7639_v61, %v9846_v15  ;;  %v3097_v14 = vpop.f32.mrb[25].mxu0  ;;  %v9905_v36 = vpack.c.bf16 %v3316_v12, %v3315_v24  ;;  %v8926_v61 = vld [vmem:[#allocation9 + $0xb8] sm:$0xff]   ;;  %v3861_v12 = vld [vmem:[#allocation3 + $0x92] sm:$0xff]  ;;  %v8933_v43 = vld [vmem:[#allocation9 + $0xf0] sm:$0xff]  }
 0x3ab   : > { %v3191_v31 = vadd.f32 %v9846_v15, %v3097_v14  ;;  %v7640_v45 = vpop.f32.mrb[26].mxu0  ;;  %7682 = vmatmul.mubr.bf16.gmra.mrb[4].mxu1 %v3410_v16  ;;  %v3324_v14 = vld [vmem:[#allocation3 + $0xf8] sm:$0xff] }
 0x3ac   : > { %v3225_v47 = vmax.f32 %v3193_v29, 0.0  ;;  %v3194_v50 = vadd.f32 %v7640_v45, %v9846_v15  ;;  %v3100_v59 = vpop.f32.mrb[27].mxu0  ;;  %7685 = vmatprep.mubr.bf16.mxu1 %v3411_v51  ;;  %7698 = vmatpush3.bf16.msra.mxu1 %v8913_v2  ;;  %v3320_v2 = vld [vmem:[#allocation3 + $0xc8] sm:$0xff]  ;;  %v3319_v51 = vld [vmem:[#allocation3 + $0xc0] sm:$0xff]  ;;  %v3864_v44 = vld [vmem:[#allocation3 + $0xb2] sm:$0xff] }
 0x3ad   : > { %v3223_v9 = vmax.f32 %v3191_v31, 0.0  ;;  %v3192_v13 = vadd.f32 %v9846_v15, %v3100_v59  ;;  %7699 = vmatprep.subr.bf16.mxu1 %v8914_v28  ;;  %v9911_v16 = vpack.c.bf16 %v3320_v2, %v3319_v51  ;;  %v3322_v29 = vld [vmem:[#allocation3 + $0xe0] sm:$0xff]  ;;  %v3321_v31 = vld [vmem:[#allocation3 + $0xd8] sm:$0xff]  ;;  %v3863_v2 = vld [vmem:[#allocation3 + $0xaa] sm:$0xff] }
 0x3ae   : > { %3297 = vst [vmem:[#allocation3 + $0x151] sm:$0xff] %v3225_v47  ;;  %v3226_v20 = vmax.f32 %v3194_v50, 0.0  ;;  %v9915_v45 = vpack.c.bf16 %v3322_v29, %v3321_v31  ;;  %v3865_v51 = vld [vmem:[#allocation3 + $0xc2] sm:$0xff]  ;;  %v8935_v31 = vld [vmem:[#allocation9 + $0x100] sm:$0xff]  }
 0x3af   : > { %3295 = vst [vmem:[#allocation3 + $0x139] sm:$0xff] %v3223_v9  ;;  %v9877_v6 = vmax.f32 %v3192_v13, 0.0  ;;  %v3325_v13 = vld [vmem:[#allocation3 + $0x108] sm:$0xff] }
 0x3b0   : > { %3298 = vst [vmem:[#allocation3 + $0x159] sm:$0xff] %v3226_v20  ;;  %7700 = vmatpush3.bf16.msra.mxu1 %v8914_v28  ;;  %v3413_v23 = vpack.c.bf16 %v3226_v20, %v3225_v47  ;;  %v8927_v28 = vld [vmem:[#allocation9 + $0xc0] sm:$0xff]   ;;  %v3327_v20 = vld [vmem:[#allocation3 + $0x120] sm:$0xff]  ;;  %v8934_v29 = vld [vmem:[#allocation9 + $0xf8] sm:$0xff]  }
 0x3b1   : > { %3296 = vst [vmem:[#allocation3 + $0x141] sm:$0xff] %v9877_v6  ;;  %v7643_v26 = vpop.f32.mrb[28].mxu0  ;;  %v3412_v27 = vpack.c.bf16 %v9877_v6, %v3223_v9  ;;  %7701 = vmatprep.subr.bf16.mxu1 %v8915_v18  ;;  %v3323_v47 = vld [vmem:[#allocation3 + $0xf0] sm:$0xff]  ;;  %v3328_v9 = vld [vmem:[#allocation3 + $0x128] sm:$0xff] }
 0x3b2   : > { %v3197_v35 = vadd.f32 %v7643_v26, %v9846_v15  ;;  %v3113_v58 = vpop.f32.mrb[29].mxu0  ;;  %v9917_v50 = vpack.c.bf16 %v3324_v14, %v3323_v47  ;;  %v3326_v59 = vld [vmem:[#allocation3 + $0x110] sm:$0xff]  ;;  %v3867_v47 = vld [vmem:[#allocation3 + $0xda] sm:$0xff] }
 0x3b3   : > { %v3195_v37 = vadd.f32 %v9846_v15, %v3113_v58  ;;  %v7644_v38 = vpop.f32.mrb[30].mxu0  ;;  %7686 = vmatmul.mubr.bf16.gmra.mrb[8].mxu1 %v3412_v27 }
 0x3b4   : > { %v3229_v39 = vmax.f32 %v3197_v35, 0.0  ;;  %v3198_v41 = vadd.f32 %v7644_v38, %v9846_v15  ;;  %v3116_v48 = vpop.f32.mrb[31].mxu0  ;;  %7689 = vmatprep.mubr.bf16.mxu1 %v3413_v23  ;;  %7702 = vmatpush3.bf16.msra.mxu1 %v8915_v18  ;;  %v9921_v18 = vpack.c.bf16 %v3326_v59, %v3325_v13  ;;  %v9923_v23 = vpack.c.bf16 %v3328_v9, %v3327_v20  ;;  %v3849_v38 = vld [vmem:[#allocation3 + $0x2] sm:$0xff]  ;;  %v3869_v9 = vld [vmem:[#allocation3 + $0xf2] sm:$0xff]  ;;  %v3870_v13 = vld [vmem:[#allocation3 + $0xfa] sm:$0xff] }
 0x3b5   : > { %v3227_v49 = vmax.f32 %v3195_v37, 0.0  ;;  %v3196_v52 = vadd.f32 %v9846_v15, %v3116_v48  ;;  %7703 = vmatprep.subr.bf16.mxu1 %v8916_v33  ;;  %v8919_v15 = vld [vmem:[#allocation9 + $0x80] sm:$0xff]   ;;  %v3868_v59 = vld [vmem:[#allocation3 + $0xe2] sm:$0xff] }
 0x3b6   : > { %3301 = vst [vmem:[#allocation3 + $0x181] sm:$0xff] %v3229_v39  ;;  %v3230_v56 = vmax.f32 %v3198_v41, 0.0  ;;  %v3331_v58 = vld [vmem:[#allocation3 + $0x150] sm:$0xff]  ;;  %v9960_v20 = vpack.c.bf16 %v3868_v59, %v3867_v47 }
 0x3b7   : > { %3299 = vst [vmem:[#allocation3 + $0x169] sm:$0xff] %v3227_v49  ;;  %v3228_v57 = vmax.f32 %v3196_v52, 0.0  ;;  %v3332_v27 = vld [vmem:[#allocation3 + $0x158] sm:$0xff] }
 0x3b8   : > { %3302 = vst [vmem:[#allocation3 + $0x189] sm:$0xff] %v3230_v56  ;;  %7704 = vmatpush3.bf16.msra.mxu1 %v8916_v33  ;;  %v9885_v62 = vpack.c.bf16 %v3230_v56, %v3229_v39  ;;  %v3330_v26 = vld [vmem:[#allocation3 + $0x140] sm:$0xff]  ;;  %v3329_v33 = vld [vmem:[#allocation3 + $0x138] sm:$0xff]  ;;  %v9929_v37 = vpack.c.bf16 %v3332_v27, %v3331_v58  ;;  %v3850_v39 = vld [vmem:[#allocation3 + $0xa] sm:$0xff] }
 0x3b9   : > { %3300 = vst [vmem:[#allocation3 + $0x171] sm:$0xff] %v3228_v57  ;;  %v9887_v63 = vpack.c.bf16 %v3228_v57, %v3227_v49  ;;  %7705 = vmatprep.subr.bf16.mxu1 %v8917_v53  ;;  %v9927_v35 = vpack.c.bf16 %v3330_v26, %v3329_v33  ;;  %v3881_v49 = vpack.c.bf16 %v3850_v39, %v3849_v38  ;;  %v3852_v56 = vld [vmem:[#allocation3 + $0x22] sm:$0xff]  ;;  %v3853_v57 = vld [vmem:[#allocation3 + $0x32] sm:$0xff]  ;;  %v3871_v27 = vld [vmem:[#allocation3 + $0x10a] sm:$0xff] }
 0x3ba   : > { %v9962_v26 = vpack.c.bf16 %v3870_v13, %v3869_v9  ;;  %v3872_v33 = vld [vmem:[#allocation3 + $0x112] sm:$0xff]  ;;  %v3873_v58 = vld [vmem:[#allocation3 + $0x122] sm:$0xff]  ;;  %v3874_v38 = vld [vmem:[#allocation3 + $0x12a] sm:$0xff] }
 0x3bb   : > { %7690 = vmatmul.mubr.bf16.gmra.mrb[12].mxu1 %v9887_v63  ;;  %v9966_v39 = vpack.c.bf16 %v3872_v33, %v3871_v27  ;;  %v4464_v59 = vld [vmem:[#allocation3 + $0x51] sm:$0xff]  ;;  %v4463_v27 = vld [vmem:[#allocation3 + $0x49] sm:$0xff] }
 0x3bc   : > { %7706 = vmatpush3.bf16.msra.mxu1 %v8917_v53  ;;  %7709 = vmatprep.mubr.bf16.mxu1 %v9811_v25  ;;  %v8921_v25 = vld [vmem:[#allocation9 + $0x90] sm:$0xff]   ;;  %v4461_v9 = vld [vmem:[#allocation3 + $0x31] sm:$0xff] }
 0x3bd   : > { %7707 = vmatprep.subr.bf16.mxu1 %v8918_v0  ;;  %v3851_v53 = vld [vmem:[#allocation3 + $0x1a] sm:$0xff] }
 0x3be   : > { %v3333_v48 = vld [vmem:[#allocation3 + $0x168] sm:$0xff]  ;;  %v8944_v33 = vld [vmem:[#allocation9 + $0x148] sm:$0xff]  }
 0x3c0   : > { %7708 = vmatpush3.bf16.msra.mxu1 %v8918_v0  ;;  %v3334_v41 = vld [vmem:[#allocation3 + $0x170] sm:$0xff]  ;;  %v3854_v0 = vld [vmem:[#allocation3 + $0x3a] sm:$0xff] }
 0x3c1   : > { %7741 = vmatprep.subr.bf16.mxu1 %v8919_v15  ;;  %v9933_v52 = vpack.c.bf16 %v3334_v41, %v3333_v48  ;;  %v9938_v1 = vpack.c.bf16 %v3854_v0, %v3853_v57  ;;  %v9968_v41 = vpack.c.bf16 %v3874_v38, %v3873_v58  ;;  %v3875_v48 = vld [vmem:[#allocation3 + $0x13a] sm:$0xff]  ;;  %v4466_v58 = vld [vmem:[#allocation3 + $0x69] sm:$0xff] }
 0x3c2   : > { %v4468_v38 = vld [vmem:[#allocation3 + $0x81] sm:$0xff] }
 0x3c3   : > { %7710 = vmatmul.mubr.bf16.vlgmr.msra.gmra.mrb[16].mxu1 %v9891_v5 }
 0x3c4   : > { %7713 = vmatprep.mubr.bf16.mxu1 %v9893_v19  ;;  %7742 = vmatpush3.bf16.msra.mxu1 %v8919_v15  ;;  %v9936_v15 = vpack.c.bf16 %v3852_v56, %v3851_v53  ;;  %v3877_v53 = vld [vmem:[#allocation3 + $0x152] sm:$0xff]  ;;  %v3878_v56 = vld [vmem:[#allocation3 + $0x15a] sm:$0xff] }
 0x3c5   : > { %7743 = vmatprep.subr.bf16.mxu1 %v8920_v10  ;;  %v9974_v0 = vpack.c.bf16 %v3878_v56, %v3877_v53  ;;  %v4467_v53 = vld [vmem:[#allocation3 + $0x79] sm:$0xff]  ;;  %v8946_v56 = vld [vmem:[#allocation9 + $0x158] sm:$0xff]  }
 0x3c8   : > { %7744 = vmatpush3.bf16.msra.mxu1 %v8920_v10  ;;  %v3856_v10 = vld [vmem:[#allocation3 + $0x52] sm:$0xff] }
 0x3c9   : > { %7745 = vmatprep.subr.bf16.mxu1 %v8921_v25  ;;  %v9942_v32 = vpack.c.bf16 %v3856_v10, %v3855_v8  ;;  %v8936_v10 = vld [vmem:[#allocation9 + $0x108] sm:$0xff]  }
 0x3cb   : > { %7714 = vmatmul.mubr.bf16.gmra.mrb[20].mxu1 %v9897_v46 }
 0x3cc   : > { %7717 = vmatprep.mubr.bf16.mxu1 %v9899_v60  ;;  %7746 = vmatpush3.bf16.msra.mxu1 %v8921_v25  ;;  %v3857_v25 = vld [vmem:[#allocation3 + $0x62] sm:$0xff] }
 0x3cd   : > { %7747 = vmatprep.subr.bf16.mxu1 %v8922_v55  ;;  %v9944_v54 = vpack.c.bf16 %v3858_v22, %v3857_v25  ;;  %v8937_v25 = vld [vmem:[#allocation9 + $0x110] sm:$0xff]   ;;  %v8938_v22 = vld [vmem:[#allocation9 + $0x118] sm:$0xff]  }
 0x3d0   : > { %7748 = vmatpush3.bf16.msra.mxu1 %v8922_v55  ;;  %v8931_v55 = vld [vmem:[#allocation9 + $0xe0] sm:$0xff]  }
 0x3d1   : > { %7749 = vmatprep.subr.bf16.mxu1 %v8923_v7 }
 0x3d3   : > { %7718 = vmatmul.mubr.bf16.gmra.mrb[24].mxu1 %v9903_v21 }
 0x3d4   : > { %7721 = vmatprep.mubr.bf16.mxu1 %v9905_v36  ;;  %7750 = vmatpush3.bf16.msra.mxu1 %v8923_v7  ;;  %v3859_v7 = vld [vmem:[#allocation3 + $0x7a] sm:$0xff] }
 0x3d5   : > { %7751 = vmatprep.subr.bf16.mxu1 %v8924_v30  ;;  %v9948_v24 = vpack.c.bf16 %v3860_v11, %v3859_v7  ;;  %v8942_v7 = vld [vmem:[#allocation9 + $0x138] sm:$0xff]  }
 0x3d8   : > { %7752 = vmatpush3.bf16.msra.mxu1 %v8924_v30  ;;  %v8932_v30 = vld [vmem:[#allocation9 + $0xe8] sm:$0xff]  }
 0x3d9   : > { %7753 = vmatprep.subr.bf16.mxu1 %v8925_v40 }
 0x3db   : > { %7722 = vmatmul.mubr.bf16.gmra.mrb[28].mxu1 %v9909_v42 }
 0x3dc   : > { %7725 = vmatprep.mubr.bf16.mxu1 %v9911_v16  ;;  %7754 = vmatpush3.bf16.msra.mxu1 %v8925_v40  ;;  %v9950_v40 = vpack.c.bf16 %v3862_v17, %v3861_v12 }
 0x3dd   : > { %7755 = vmatprep.subr.bf16.mxu1 %v8926_v61 }
 0x3e0   : > { %7756 = vmatpush3.bf16.msra.mxu1 %v8926_v61  ;;  %v3866_v61 = vld [vmem:[#allocation3 + $0xca] sm:$0xff] }
 0x3e1   : > { %7789 = vmatprep.subr.bf16.mxu1 %v8927_v28  ;;  %v9956_v14 = vpack.c.bf16 %v3866_v61, %v3865_v51  ;;  %v4460_v61 = vld [vmem:[#allocation3 + $0x21] sm:$0xff] }
 0x3e3   : > { %7726 = vmatmul.mubr.bf16.gmra.mrb[0].mxu1 %v9915_v45 }
 0x3e4   : > { %7729 = vmatprep.mubr.bf16.mxu1 %v9917_v50 }
 0x3eb   : > { %7730 = vmatmul.mubr.bf16.gmra.mrb[4].mxu1 %v9921_v18 }
 0x3ec   : > { %7733 = vmatprep.mubr.bf16.mxu1 %v9923_v23 }
 0x3f3   : > { %7734 = vmatmul.mubr.bf16.gmra.mrb[8].mxu1 %v9927_v35 }
 0x3f4   : > { %7737 = vmatprep.mubr.bf16.mxu1 %v9929_v37 }
 0x3fb   : > { %7738 = vmatmul.mubr.bf16.gmra.mrb[12].mxu1 %v9933_v52 }
 0x3fc   : > { %7757 = vmatprep.mubr.bf16.mxu1 %v3881_v49  ;;  %v3876_v49 = vld [vmem:[#allocation3 + $0x142] sm:$0xff] }
 0x3fd   : > { %v9972_v57 = vpack.c.bf16 %v3876_v49, %v3875_v48  ;;  %v4465_v48 = vld [vmem:[#allocation3 + $0x61] sm:$0xff] }
 0x3fe   : > { %v10037_v49 = vpack.c.bf16 %v4466_v58, %v4465_v48 }
 0x403   : > { %7758 = vmatmul.mubr.bf16.vlgmr.msra.gmra.mrb[16].mxu1 %v9936_v15 }
 0x404   : > { %7761 = vmatprep.mubr.bf16.mxu1 %v9938_v1  ;;  %7790 = vmatpush3.bf16.msra.mxu1 %v8927_v28  ;;  %v9954_v28 = vpack.c.bf16 %v3864_v44, %v3863_v2 }
 0x405   : > { %7791 = vmatprep.subr.bf16.mxu1 %v8928_v3 }
 0x408   : > { %7792 = vmatpush3.bf16.msra.mxu1 %v8928_v3  ;;  %v3879_v3 = vld [vmem:[#allocation3 + $0x16a] sm:$0xff] }
 0x409   : > { %7793 = vmatprep.subr.bf16.mxu1 %v8929_v4 }
 0x40b   : > { %7762 = vmatmul.mubr.bf16.gmra.mrb[20].mxu1 %v9942_v32 }
 0x40c   : > { %7765 = vmatprep.mubr.bf16.mxu1 %v9944_v54  ;;  %7794 = vmatpush3.bf16.msra.mxu1 %v8929_v4  ;;  %v3880_v4 = vld [vmem:[#allocation3 + $0x172] sm:$0xff] }
 0x40d   : > { %7795 = vmatprep.subr.bf16.mxu1 %v8930_v34  ;;  %v9978_v8 = vpack.c.bf16 %v3880_v4, %v3879_v3  ;;  %v10039_v3 = vpack.c.bf16 %v4468_v38, %v4467_v53  ;;  %v8947_v4 = vld [vmem:[#allocation9 + $0x160] sm:$0xff]  }
 0x40e   : > { %v4479_v38 = vld [vmem:[#allocation3 + $0x109] sm:$0xff] }
 0x40f   : > { %v4482_v53 = vld [vmem:[#allocation3 + $0x129] sm:$0xff] }
 0x410   : > { %7796 = vmatpush3.bf16.msra.mxu1 %v8930_v34  ;;  %v8939_v34 = vld [vmem:[#allocation9 + $0x120] sm:$0xff]  }
 0x411   : > { %7797 = vmatprep.subr.bf16.mxu1 %v8931_v55 }
 0x413   : > { %7766 = vmatmul.mubr.bf16.gmra.mrb[24].mxu1 %v9948_v24 }
 0x414   : > { %7769 = vmatprep.mubr.bf16.mxu1 %v9950_v40  ;;  %7798 = vmatpush3.bf16.msra.mxu1 %v8931_v55 }
 0x415   : > { %7799 = vmatprep.subr.bf16.mxu1 %v8932_v30 }
 0x418   : > { %7800 = vmatpush3.bf16.msra.mxu1 %v8932_v30 }
 0x419   : > { %7801 = vmatprep.subr.bf16.mxu1 %v8933_v43 }
 0x41b   : > { %7770 = vmatmul.mubr.bf16.gmra.mrb[28].mxu1 %v9954_v28 }
 0x41c   : > { %7773 = vmatprep.mubr.bf16.mxu1 %v9956_v14  ;;  %7802 = vmatpush3.bf16.msra.mxu1 %v8933_v43 }
 0x41d   : > { %7803 = vmatprep.subr.bf16.mxu1 %v8934_v29 }
 0x420   : > { %7804 = vmatpush3.bf16.msra.mxu1 %v8934_v29  ;;  %v4184_v29 = vld [vmem:[#allocation3 + $0x180] sm:$0xff] }
 0x421   : > { %7837 = vmatprep.subr.bf16.mxu1 %v8935_v31 }
 0x423   : > { %7774 = vmatmul.mubr.bf16.gmra.mrb[0].mxu1 %v9960_v20 }
 0x424   : > { %7777 = vmatprep.mubr.bf16.mxu1 %v9962_v26 }
 0x42b   : > { %7778 = vmatmul.mubr.bf16.gmra.mrb[4].mxu1 %v9966_v39 }
 0x42c   : > { %7781 = vmatprep.mubr.bf16.mxu1 %v9968_v41 }
 0x433   : > { %7782 = vmatmul.mubr.bf16.gmra.mrb[8].mxu1 %v9972_v57 }
 0x434   : > { %7785 = vmatprep.mubr.bf16.mxu1 %v9974_v0 }
 0x43b   : > { %7786 = vmatmul.mubr.bf16.gmra.mrb[12].mxu1 %v9978_v8 }
 0x43c   : > { %7805 = vmatprep.mubr.bf16.mxu1 %v9891_v5  ;;  %v8940_v5 = vld [vmem:[#allocation9 + $0x128] sm:$0xff]  }
 0x443   : > { %7806 = vmatmul.mubr.bf16.vlgmr.msra.gmra.mrb[16].mxu1 %v9893_v19  ;;  %v8941_v19 = vld [vmem:[#allocation9 + $0x130] sm:$0xff]  }
 0x444   : > { %7809 = vmatprep.mubr.bf16.mxu1 %v9897_v46  ;;  %7838 = vmatpush3.bf16.msra.mxu1 %v8935_v31 }
 0x445   : > { %7839 = vmatprep.subr.bf16.mxu1 %v8936_v10 }
 0x448   : > { %7840 = vmatpush3.bf16.msra.mxu1 %v8936_v10  ;;  %v4470_v10 = vld [vmem:[#allocation3 + $0x99] sm:$0xff] }
 0x449   : > { %7841 = vmatprep.subr.bf16.mxu1 %v8937_v25 }
 0x44b   : > { %7810 = vmatmul.mubr.bf16.gmra.mrb[20].mxu1 %v9899_v60 }
 0x44c   : > { %7813 = vmatprep.mubr.bf16.mxu1 %v9903_v21  ;;  %7842 = vmatpush3.bf16.msra.mxu1 %v8937_v25  ;;  %v4472_v25 = vld [vmem:[#allocation3 + $0xb1] sm:$0xff] }
 0x44d   : > { %7843 = vmatprep.subr.bf16.mxu1 %v8938_v22 }
 0x450   : > { %7844 = vmatpush3.bf16.msra.mxu1 %v8938_v22  ;;  %v4469_v22 = vld [vmem:[#allocation3 + $0x91] sm:$0xff] }
 0x451   : > { %7845 = vmatprep.subr.bf16.mxu1 %v8939_v34 }
 0x453   : > { %7814 = vmatmul.mubr.bf16.gmra.mrb[24].mxu1 %v9905_v36  ;;  %v8943_v36 = vld [vmem:[#allocation9 + $0x140] sm:$0xff]  }
 0x454   : > { %7817 = vmatprep.mubr.bf16.mxu1 %v9909_v42  ;;  %7846 = vmatpush3.bf16.msra.mxu1 %v8939_v34  ;;  %v10043_v34 = vpack.c.bf16 %v4470_v10, %v4469_v22  ;;  %v4486_v22 = vld [vmem:[#allocation3 + $0x159] sm:$0xff] }
 0x455   : > { %7847 = vmatprep.subr.bf16.mxu1 %v8940_v5 }
 0x456   : > { %v9988_v46 = vpop.f32.mrb[32].mxu0 }
 0x457   : > { %v9990_v55 = vpop.f32.mrb[33].mxu0 }
 0x458   : > { %v9992_v60 = vpop.f32.mrb[34].mxu0  ;;  %7848 = vmatpush3.bf16.msra.mxu1 %v8940_v5  ;;  %v4471_v5 = vld [vmem:[#allocation3 + $0xa9] sm:$0xff] }
 0x459   : > { %v9994_v21 = vpop.f32.mrb[35].mxu0  ;;  %7849 = vmatprep.subr.bf16.mxu1 %v8941_v19 }
 0x45b   : > { %7818 = vmatmul.mubr.bf16.gmra.mrb[28].mxu1 %v9911_v16 }
 0x45c   : > { %7821 = vmatprep.mubr.bf16.mxu1 %v9915_v45  ;;  %7850 = vmatpush3.bf16.msra.mxu1 %v8941_v19  ;;  %v8948_v19 = vld [vmem:[#allocation9 + $0x168] sm:$0xff]  }
 0x45d   : > { %7851 = vmatprep.subr.bf16.mxu1 %v8942_v7 }
 0x45e   : > { %v9998_v42 = vpop.f32.mrb[36].mxu0 }
 0x45f   : > { %v10000_v11 = vpop.f32.mrb[37].mxu0 }
 0x460   : > { %v10002_v12 = vpop.f32.mrb[38].mxu0  ;;  %7852 = vmatpush3.bf16.msra.mxu1 %v8942_v7  ;;  %v10045_v7 = vpack.c.bf16 %v4472_v25, %v4471_v5  ;;  %v4485_v5 = vld [vmem:[#allocation3 + $0x151] sm:$0xff] }
 0x461   : > { %v10004_v17 = vpop.f32.mrb[39].mxu0  ;;  %7885 = vmatprep.subr.bf16.mxu1 %v8943_v36 }
 0x463   : > { %7822 = vmatmul.mubr.bf16.gmra.mrb[0].mxu1 %v9917_v50 }
 0x464   : > { %7825 = vmatprep.mubr.bf16.mxu1 %v9921_v18  ;;  %v4185_v18 = vld [vmem:[#allocation3 + $0x188] sm:$0xff] }
 0x465   : > { %v10028_v31 = vpack.c.bf16 %v4185_v18, %v4184_v29  ;;  %v4474_v18 = vld [vmem:[#allocation3 + $0xc9] sm:$0xff]  ;;  %v4473_v29 = vld [vmem:[#allocation3 + $0xc1] sm:$0xff] }
 0x466   : > { %v10008_v16 = vpop.f32.mrb[40].mxu0 }
 0x467   : > { %v10010_v45 = vpop.f32.mrb[41].mxu0 }
 0x468   : > { %v10012_v30 = vpop.f32.mrb[42].mxu0 }
 0x469   : > { %v10014_v43 = vpop.f32.mrb[43].mxu0 }
 0x46b   : > { %7826 = vmatmul.mubr.bf16.gmra.mrb[4].mxu1 %v9923_v23  ;;  %v4459_v23 = vld [vmem:[#allocation3 + $0x19] sm:$0xff] }
 0x46c   : > { %7829 = vmatprep.mubr.bf16.mxu1 %v9927_v35  ;;  %v4491_v47 = vpack.c.bf16 %v4460_v61, %v4459_v23  ;;  %v4462_v35 = vld [vmem:[#allocation3 + $0x39] sm:$0xff]  ;;  %v4476_v61 = vld [vmem:[#allocation3 + $0xe1] sm:$0xff]  ;;  %v10049_v23 = vpack.c.bf16 %v4474_v18, %v4473_v29 }
 0x46d   : > { %v10031_v13 = vpack.c.bf16 %v4462_v35, %v4461_v9  ;;  %v8950_v35 = vld [vmem:[#allocation9 + $0x178] sm:$0xff]   ;;  %v8951_v9 = vld [vmem:[#allocation9 + $0x180] sm:$0xff]   ;;  %v5074_v29 = vld [vmem:[#allocation3 + $0x60] sm:$0xff] }
 0x46e   : > { %v10018_v2 = vpop.f32.mrb[44].mxu0  ;;  %v8954_v18 = vld [vmem:[#allocation9 + $0x198] sm:$0xff]  }
 0x46f   : > { %v10020_v44 = vpop.f32.mrb[45].mxu0 }
 0x470   : > { %v10022_v51 = vpop.f32.mrb[46].mxu0 }
 0x471   : > { %v10024_v50 = vpop.f32.mrb[47].mxu0 }
 0x473   : > { %7830 = vmatmul.mubr.bf16.gmra.mrb[8].mxu1 %v9929_v37  ;;  %v10033_v37 = vpack.c.bf16 %v4464_v59, %v4463_v27  ;;  %v4478_v27 = vld [vmem:[#allocation3 + $0xf9] sm:$0xff] }
 0x474   : > { %7833 = vmatprep.mubr.bf16.mxu1 %v9933_v52  ;;  %v8945_v52 = vld [vmem:[#allocation9 + $0x150] sm:$0xff]  }
 0x47b   : > { %7834 = vmatmul.mubr.bf16.gmra.mrb[12].mxu1 %v10028_v31 }
 0x47c   : > { %7853 = vmatprep.mubr.bf16.mxu1 %v4491_v47  ;;  %v4475_v47 = vld [vmem:[#allocation3 + $0xd9] sm:$0xff] }
 0x47d   : > { %v10051_v59 = vpack.c.bf16 %v4476_v61, %v4475_v47  ;;  %v5072_v61 = vld [vmem:[#allocation3 + $0x48] sm:$0xff] }
 0x483   : > { %7854 = vmatmul.mubr.bf16.vlgmr.msra.gmra.mrb[16].mxu1 %v10031_v13 }
 0x484   : > { %7857 = vmatprep.mubr.bf16.mxu1 %v10033_v37  ;;  %7886 = vmatpush3.bf16.msra.mxu1 %v8943_v36  ;;  %v8949_v36 = vld [vmem:[#allocation9 + $0x170] sm:$0xff]  }
 0x485   : > { %7887 = vmatprep.subr.bf16.mxu1 %v8944_v33 }
 0x488   : > { %7888 = vmatpush3.bf16.msra.mxu1 %v8944_v33  ;;  %v4480_v33 = vld [vmem:[#allocation3 + $0x111] sm:$0xff] }
 0x489   : > { %7889 = vmatprep.subr.bf16.mxu1 %v8945_v52  ;;  %v10057_v48 = vpack.c.bf16 %v4480_v33, %v4479_v38  ;;  %v5078_v33 = vld [vmem:[#allocation3 + $0x90] sm:$0xff] }
 0x48b   : > { %7858 = vmatmul.mubr.bf16.gmra.mrb[20].mxu1 %v10037_v49 }
 0x48c   : > { %7861 = vmatprep.mubr.bf16.mxu1 %v10039_v3  ;;  %7890 = vmatpush3.bf16.msra.mxu1 %v8945_v52  ;;  %v4477_v52 = vld [vmem:[#allocation3 + $0xf1] sm:$0xff] }
 0x48d   : > { %7891 = vmatprep.subr.bf16.mxu1 %v8946_v56  ;;  %v10055_v58 = vpack.c.bf16 %v4478_v27, %v4477_v52  ;;  %v8962_v52 = vld [vmem:[#allocation9 + $0x1d8] sm:$0xff]  }
 0x490   : > { %7892 = vmatpush3.bf16.msra.mxu1 %v8946_v56  ;;  %v10061_v56 = vld [vmem:[#allocation3 + $0x139] sm:$0xff] }
 0x491   : > { %7893 = vmatprep.subr.bf16.mxu1 %v8947_v4  ;;  %v4503_v25 = vpack.c.bf16 %v9877_v6, %v10061_v56  ;;  %v8953_v6 = vld [vmem:[#allocation9 + $0x190] sm:$0xff]  }
 0x493   : > { %7862 = vmatmul.mubr.bf16.gmra.mrb[24].mxu1 %v10043_v34 }
 0x494   : > { %7865 = vmatprep.mubr.bf16.mxu1 %v10045_v7  ;;  %7894 = vmatpush3.bf16.msra.mxu1 %v8947_v4  ;;  %v4481_v4 = vld [vmem:[#allocation3 + $0x121] sm:$0xff] }
 0x495   : > { %7895 = vmatprep.subr.bf16.mxu1 %v8948_v19  ;;  %v10063_v10 = vpack.c.bf16 %v4482_v53, %v4481_v4  ;;  %v8963_v53 = vld [vmem:[#allocation9 + $0x1e0] sm:$0xff]  }
 0x496   : > { %v5081_v4 = vld [vmem:[#allocation3 + $0xb0] sm:$0xff] }
 0x498   : > { %7896 = vmatpush3.bf16.msra.mxu1 %v8948_v19  ;;  %v10068_v19 = vpack.c.bf16 %v4486_v22, %v4485_v5  ;;  %v5080_v22 = vld [vmem:[#allocation3 + $0xa8] sm:$0xff] }
 0x499   : > { %7897 = vmatprep.subr.bf16.mxu1 %v8949_v36  ;;  %v5107_v5 = vpack.c.bf16 %v5081_v4, %v5080_v22  ;;  %v8968_v4 = vld [vmem:[#allocation9 + $0x208] sm:$0xff]   ;;  %v8970_v22 = vld [vmem:[#allocation9 + $0x218] sm:$0xff]  }
 0x49b   : > { %7866 = vmatmul.mubr.bf16.gmra.mrb[28].mxu1 %v10049_v23 }
 0x49c   : > { %7869 = vmatprep.mubr.bf16.mxu1 %v10051_v59  ;;  %7898 = vmatpush3.bf16.msra.mxu1 %v8949_v36  ;;  %v8952_v36 = vld [vmem:[#allocation9 + $0x188] sm:$0xff]  }
 0x49d   : > { %7899 = vmatprep.subr.bf16.mxu1 %v8950_v35 }
 0x4a0   : > { %7900 = vmatpush3.bf16.msra.mxu1 %v8950_v35  ;;  %v5079_v35 = vld [vmem:[#allocation3 + $0x98] sm:$0xff] }
 0x4a1   : > { %7933 = vmatprep.subr.bf16.mxu1 %v8951_v9  ;;  %v5106_v38 = vpack.c.bf16 %v5079_v35, %v5078_v33  ;;  %v5094_v35 = vld [vmem:[#allocation3 + $0x150] sm:$0xff]  ;;  %v5096_v33 = vld [vmem:[#allocation3 + $0x168] sm:$0xff] }
 0x4a3   : > { %7870 = vmatmul.mubr.bf16.gmra.mrb[0].mxu1 %v10055_v58 }
 0x4a4   : > { %7873 = vmatprep.mubr.bf16.mxu1 %v10057_v48 }
 0x4ab   : > { %7874 = vmatmul.mubr.bf16.gmra.mrb[4].mxu1 %v10063_v10 }
 0x4ac   : > { %7877 = vmatprep.mubr.bf16.mxu1 %v4503_v25  ;;  %v5083_v25 = vld [vmem:[#allocation3 + $0xc8] sm:$0xff] }
 0x4b3   : > { %7878 = vmatmul.mubr.bf16.gmra.mrb[8].mxu1 %v10068_v19 }
 0x4b4   : > { %7881 = vmatprep.mubr.bf16.mxu1 %v9887_v63  ;;  %v8956_v63 = vld [vmem:[#allocation9 + $0x1a8] sm:$0xff]  }
 0x4bb   : > { %7882 = vmatmul.mubr.bf16.gmra.mrb[12].mxu1 %v9885_v62  ;;  %v8955_v62 = vld [vmem:[#allocation9 + $0x1a0] sm:$0xff]  }
 0x4bc   : > { %7901 = vmatprep.mubr.bf16.mxu1 %v9936_v15  ;;  %v8957_v15 = vld [vmem:[#allocation9 + $0x1b0] sm:$0xff]  }
 0x4c3   : > { %7902 = vmatmul.mubr.bf16.vlgmr.msra.gmra.mrb[16].mxu1 %v9938_v1  ;;  %v8958_v1 = vld [vmem:[#allocation9 + $0x1b8] sm:$0xff]  }
 0x4c4   : > { %7905 = vmatprep.mubr.bf16.mxu1 %v9942_v32  ;;  %7934 = vmatpush3.bf16.msra.mxu1 %v8951_v9  ;;  %v8959_v32 = vld [vmem:[#allocation9 + $0x1c0] sm:$0xff]   ;;  %v5076_v9 = vld [vmem:[#allocation3 + $0x78] sm:$0xff] }
 0x4c5   : > { %7935 = vmatprep.subr.bf16.mxu1 %v8952_v36 }
 0x4c8   : > { %7936 = vmatpush3.bf16.msra.mxu1 %v8952_v36  ;;  %v5082_v36 = vld [vmem:[#allocation3 + $0xc0] sm:$0xff] }
 0x4c9   : > { %7937 = vmatprep.subr.bf16.mxu1 %v8953_v6 }
 0x4cb   : > { %7906 = vmatmul.mubr.bf16.gmra.mrb[20].mxu1 %v9944_v54  ;;  %v4794_v54 = vld [vmem:[#allocation3 + $0x182] sm:$0xff] }
 0x4cc   : > { %7909 = vmatprep.mubr.bf16.mxu1 %v9948_v24  ;;  %7938 = vmatpush3.bf16.msra.mxu1 %v8953_v6  ;;  %v4795_v24 = vld [vmem:[#allocation3 + $0x18a] sm:$0xff]  ;;  %v8964_v6 = vld [vmem:[#allocation9 + $0x1e8] sm:$0xff]  }
 0x4cd   : > { %7939 = vmatprep.subr.bf16.mxu1 %v8954_v18 }
 0x4d0   : > { %7940 = vmatpush3.bf16.msra.mxu1 %v8954_v18  ;;  %v5108_v18 = vpack.c.bf16 %v5083_v25, %v5082_v36  ;;  %v8969_v25 = vld [vmem:[#allocation9 + $0x210] sm:$0xff]  }
 0x4d1   : > { %7941 = vmatprep.subr.bf16.mxu1 %v8955_v62 }
 0x4d3   : > { %7910 = vmatmul.mubr.bf16.gmra.mrb[24].mxu1 %v9950_v40  ;;  %v5071_v40 = vld [vmem:[#allocation3 + $0x38] sm:$0xff] }
 0x4d4   : > { %7913 = vmatprep.mubr.bf16.mxu1 %v9954_v28  ;;  %7942 = vmatpush3.bf16.msra.mxu1 %v8955_v62  ;;  %v10088_v28 = vpack.c.bf16 %v4795_v24, %v4794_v54  ;;  %v8965_v62 = vld [vmem:[#allocation9 + $0x1f0] sm:$0xff]   ;;  %v5086_v54 = vld [vmem:[#allocation3 + $0xf0] sm:$0xff]  ;;  %v8966_v24 = vld [vmem:[#allocation9 + $0x1f8] sm:$0xff]  }
 0x4d5   : > { %7943 = vmatprep.subr.bf16.mxu1 %v8956_v63 }
 0x4d8   : > { %7944 = vmatpush3.bf16.msra.mxu1 %v8956_v63  ;;  %v5085_v63 = vld [vmem:[#allocation3 + $0xe0] sm:$0xff] }
 0x4d9   : > { %7945 = vmatprep.subr.bf16.mxu1 %v8957_v15 }
 0x4db   : > { %7914 = vmatmul.mubr.bf16.gmra.mrb[28].mxu1 %v9956_v14  ;;  %v5070_v14 = vld [vmem:[#allocation3 + $0x30] sm:$0xff] }
 0x4dc   : > { %7917 = vmatprep.mubr.bf16.mxu1 %v9960_v20  ;;  %7946 = vmatpush3.bf16.msra.mxu1 %v8957_v15  ;;  %v5102_v20 = vpack.c.bf16 %v5071_v40, %v5070_v14  ;;  %v5087_v15 = vld [vmem:[#allocation3 + $0xf8] sm:$0xff]  ;;  %v8967_v14 = vld [vmem:[#allocation9 + $0x200] sm:$0xff]  }
 0x4dd   : > { %7947 = vmatprep.subr.bf16.mxu1 %v8958_v1  ;;  %v5110_v40 = vpack.c.bf16 %v5087_v15, %v5086_v54  ;;  %v5681_v15 = vld [vmem:[#allocation3 + $0x3a] sm:$0xff] }
 0x4e0   : > { %7948 = vmatpush3.bf16.msra.mxu1 %v8958_v1  ;;  %v5084_v1 = vld [vmem:[#allocation3 + $0xd8] sm:$0xff] }
 0x4e1   : > { %7981 = vmatprep.subr.bf16.mxu1 %v8959_v32 }
 0x4e3   : > { %7918 = vmatmul.mubr.bf16.gmra.mrb[0].mxu1 %v9962_v26  ;;  %v5073_v26 = vld [vmem:[#allocation3 + $0x50] sm:$0xff] }
 0x4e4   : > { %7921 = vmatprep.mubr.bf16.mxu1 %v9966_v39  ;;  %v5075_v39 = vld [vmem:[#allocation3 + $0x68] sm:$0xff] }
 0x4e5   : > { %v5104_v47 = vpack.c.bf16 %v5075_v39, %v5074_v29  ;;  %v5088_v39 = vld [vmem:[#allocation3 + $0x108] sm:$0xff] }
 0x4eb   : > { %7922 = vmatmul.mubr.bf16.gmra.mrb[4].mxu1 %v9968_v41  ;;  %v5103_v41 = vpack.c.bf16 %v5073_v26, %v5072_v61  ;;  %v5091_v26 = vld [vmem:[#allocation3 + $0x128] sm:$0xff] }
 0x4ec   : > { %7925 = vmatprep.mubr.bf16.mxu1 %v9972_v57  ;;  %v8960_v57 = vld [vmem:[#allocation9 + $0x1c8] sm:$0xff]  }
 0x4f3   : > { %7926 = vmatmul.mubr.bf16.gmra.mrb[8].mxu1 %v9974_v0  ;;  %v8961_v0 = vld [vmem:[#allocation9 + $0x1d0] sm:$0xff]  }
 0x4f4   : > { %7929 = vmatprep.mubr.bf16.mxu1 %v9978_v8  ;;  %v5077_v8 = vld [vmem:[#allocation3 + $0x80] sm:$0xff] }
 0x4f5   : > { %v5105_v27 = vpack.c.bf16 %v5077_v8, %v5076_v9 }
 0x4fb   : > { %7930 = vmatmul.mubr.bf16.gmra.mrb[12].mxu1 %v10088_v28 }
 0x4fc   : > { %7949 = vmatprep.mubr.bf16.mxu1 %v5102_v20  ;;  %v5089_v20 = vld [vmem:[#allocation3 + $0x110] sm:$0xff] }
 0x4fd   : > { %v5111_v61 = vpack.c.bf16 %v5089_v20, %v5088_v39  ;;  %v5686_v20 = vld [vmem:[#allocation3 + $0x7a] sm:$0xff]  ;;  %v5688_v39 = vld [vmem:[#allocation3 + $0x92] sm:$0xff] }
 0x503   : > { %7950 = vmatmul.mubr.bf16.vlgmr.msra.gmra.mrb[16].mxu1 %v5103_v41  ;;  %v5090_v41 = vld [vmem:[#allocation3 + $0x120] sm:$0xff] }
 0x504   : > { %7953 = vmatprep.mubr.bf16.mxu1 %v5104_v47  ;;  %7982 = vmatpush3.bf16.msra.mxu1 %v8959_v32  ;;  %v5109_v32 = vpack.c.bf16 %v5085_v63, %v5084_v1  ;;  %v5112_v29 = vpack.c.bf16 %v5091_v26, %v5090_v41  ;;  %v5095_v47 = vld [vmem:[#allocation3 + $0x158] sm:$0xff]  ;;  %v5687_v26 = vld [vmem:[#allocation3 + $0x82] sm:$0xff] }
 0x505   : > { %7983 = vmatprep.subr.bf16.mxu1 %v8960_v57  ;;  %v5114_v9 = vpack.c.bf16 %v5095_v47, %v5094_v35  ;;  %v5683_v1 = vld [vmem:[#allocation3 + $0x52] sm:$0xff]  ;;  %v5715_v41 = vpack.c.bf16 %v5687_v26, %v5686_v20  ;;  %v5692_v35 = vld [vmem:[#allocation3 + $0xc2] sm:$0xff] }
 0x506   : > { %v8979_v47 = vld [vmem:[#allocation10 + $0x20] sm:$0xff]   ;;  %v9024_v20 = vld [vmem:[%s9483_s20 + $0x38] sm:$0xff]  }
 0x507   : > { %v9025_v26 = vld [vmem:[%s9483_s20 + $0x40] sm:$0xff]  }
 0x508   : > { %7984 = vmatpush3.bf16.msra.mxu1 %v8960_v57  ;;  %v5093_v57 = vld [vmem:[#allocation3 + $0x140] sm:$0xff] }
 0x509   : > { %7985 = vmatprep.subr.bf16.mxu1 %v8961_v0 }
 0x50b   : > { %7954 = vmatmul.mubr.bf16.gmra.mrb[20].mxu1 %v5105_v27  ;;  %v5097_v27 = vld [vmem:[#allocation3 + $0x170] sm:$0xff] }
 0x50c   : > { %7957 = vmatprep.mubr.bf16.mxu1 %v5106_v38  ;;  %7986 = vmatpush3.bf16.msra.mxu1 %v8961_v0  ;;  %v5092_v0 = vld [vmem:[#allocation3 + $0x138] sm:$0xff]  ;;  %v9016_v38 = vld [vmem:[#allocation2] sm:$0xff] }
 0x50d   : > { %7987 = vmatprep.subr.bf16.mxu1 %v8962_v52  ;;  %v5113_v8 = vpack.c.bf16 %v5093_v57, %v5092_v0  ;;  %v5690_v0 = vld [vmem:[#allocation3 + $0xaa] sm:$0xff] }
 0x510   : > { %7988 = vmatpush3.bf16.msra.mxu1 %v8962_v52  ;;  %v5115_v52 = vpack.c.bf16 %v5097_v27, %v5096_v33  ;;  %v8980_v33 = vld [vmem:[#allocation10 + $0x28] sm:$0xff]  }
 0x511   : > { %7989 = vmatprep.subr.bf16.mxu1 %v8963_v53 }
 0x513   : > { %7958 = vmatmul.mubr.bf16.gmra.mrb[24].mxu1 %v5107_v5  ;;  %v5404_v5 = vld [vmem:[#allocation3 + $0x189] sm:$0xff] }
 0x514   : > { %7961 = vmatprep.mubr.bf16.mxu1 %v5108_v18  ;;  %7990 = vmatpush3.bf16.msra.mxu1 %v8963_v53  ;;  %v5117_v53 = vpack.c.bf16 %v9016_v38, %v9016_v38  ;;  %v5405_v18 = vld [vmem:[#allocation3 + $0x199] sm:$0xff] }
 0x515   : > { %7991 = vmatprep.subr.bf16.mxu1 %v8964_v6  ;;  %v8981_v38 = vld [vmem:[#allocation10 + $0x30] sm:$0xff]  }
 0x518   : > { %7992 = vmatpush3.bf16.msra.mxu1 %v8964_v6 }
 0x519   : > { %7993 = vmatprep.subr.bf16.mxu1 %v8965_v62 }
 0x51b   : > { %7962 = vmatmul.mubr.bf16.gmra.mrb[28].mxu1 %v5109_v32  ;;  %v5684_v32 = vld [vmem:[#allocation3 + $0x62] sm:$0xff] }
 0x51c   : > { %7965 = vmatprep.mubr.bf16.mxu1 %v5110_v40  ;;  %7994 = vmatpush3.bf16.msra.mxu1 %v8965_v62  ;;  %v5406_v62 = vld [vmem:[#allocation3 + $0x1a1] sm:$0xff] }
 0x51d   : > { %7995 = vmatprep.subr.bf16.mxu1 %v8966_v24  ;;  %v5422_v63 = vpack.c.bf16 %v5406_v62, %v5405_v18 }
 0x520   : > { %7996 = vmatpush3.bf16.msra.mxu1 %v8966_v24  ;;  %v8976_v24 = vld [vmem:[#allocation10 + $0x8] sm:$0xff]  }
 0x521   : > { %8029 = vmatprep.subr.bf16.mxu1 %v8967_v14 }
 0x523   : > { %7966 = vmatmul.mubr.bf16.gmra.mrb[0].mxu1 %v5111_v61  ;;  %v5689_v61 = vld [vmem:[#allocation3 + $0x9a] sm:$0xff] }
 0x524   : > { %7969 = vmatprep.mubr.bf16.mxu1 %v5112_v29  ;;  %v8978_v29 = vld [vmem:[#allocation10 + $0x18] sm:$0xff]   ;;  %v5716_v57 = vpack.c.bf16 %v5689_v61, %v5688_v39  ;;  %v9026_v39 = vld [vmem:[%s9483_s20 + $0x48] sm:$0xff]   ;;  %v9027_v61 = vld [vmem:[%s9483_s20 + $0x50] sm:$0xff]  }
 0x52b   : > { %7970 = vmatmul.mubr.bf16.gmra.mrb[4].mxu1 %v5113_v8  ;;  %v5691_v8 = vld [vmem:[#allocation3 + $0xb2] sm:$0xff] }
 0x52c   : > { %7973 = vmatprep.mubr.bf16.mxu1 %v5114_v9  ;;  %v5693_v9 = vld [vmem:[#allocation3 + $0xca] sm:$0xff]  ;;  %v5717_v27 = vpack.c.bf16 %v5691_v8, %v5690_v0 }
 0x52d   : > { %v9032_v0 = vld [vmem:[%s9483_s20 + $0x78] sm:$0xff]   ;;  %v10125_v8 = vld [vmem:[%s10290_s4] ss:$0 sm:$0xff] }
 0x533   : > { %7974 = vmatmul.mubr.bf16.gmra.mrb[8].mxu1 %v5115_v52  ;;  %v5718_v52 = vpack.c.bf16 %v5693_v9, %v5692_v35  ;;  %v8147_v35 = vadd.f32 %v9992_v60, %v10125_v8  ;;  %v8150_v9 = vadd.f32 %v10125_v8, %v9994_v21 }
 0x534   : > { %7977 = vmatprep.mubr.bf16.mxu1 %v10028_v31  ;;  %v8971_v31 = vld [vmem:[#allocation9 + $0x220] sm:$0xff]  }
 0x53b   : > { %7978 = vmatmul.mubr.bf16.gmra.mrb[12].mxu1 %v5117_v53  ;;  %v5694_v53 = vld [vmem:[#allocation3 + $0xda] sm:$0xff] }
 0x53c   : > { %7997 = vmatprep.mubr.bf16.mxu1 %v10031_v13  ;;  %v8972_v13 = vld [vmem:[#allocation9 + $0x228] sm:$0xff]  }
 0x543   : > { %7998 = vmatmul.mubr.bf16.vlgmr.msra.gmra.mrb[16].mxu1 %v10033_v37  ;;  %v8973_v37 = vld [vmem:[#allocation9 + $0x230] sm:$0xff]  }
 0x544   : > { %8001 = vmatprep.mubr.bf16.mxu1 %v10037_v49  ;;  %8030 = vmatpush3.bf16.msra.mxu1 %v8967_v14  ;;  %v8974_v49 = vld [vmem:[#allocation9 + $0x238] sm:$0xff]   ;;  %v8977_v14 = vld [vmem:[#allocation10 + $0x10] sm:$0xff]  }
 0x545   : > { %8031 = vmatprep.subr.bf16.mxu1 %v8968_v4 }
 0x548   : > { %8032 = vmatpush3.bf16.msra.mxu1 %v8968_v4  ;;  %v5695_v4 = vld [vmem:[#allocation3 + $0xe2] sm:$0xff] }
 0x549   : > { %8033 = vmatprep.subr.bf16.mxu1 %v8969_v25 }
 0x54b   : > { %8002 = vmatmul.mubr.bf16.gmra.mrb[20].mxu1 %v10039_v3  ;;  %v8975_v3 = vld [vmem:[#allocation10] sm:$0xff]  }
 0x54c   : > { %8005 = vmatprep.mubr.bf16.mxu1 %v10043_v34  ;;  %8034 = vmatpush3.bf16.msra.mxu1 %v8969_v25  ;;  %v5398_v34 = vld [vmem:[#allocation3 + $0x141] sm:$0xff]  ;;  %v5696_v25 = vld [vmem:[#allocation3 + $0xf2] sm:$0xff] }
 0x54d   : > { %8035 = vmatprep.subr.bf16.mxu1 %v8970_v22 }
 0x550   : > { %8036 = vmatpush3.bf16.msra.mxu1 %v8970_v22  ;;  %v5697_v22 = vld [vmem:[#allocation3 + $0xfa] sm:$0xff] }
 0x551   : > { %8037 = vmatprep.subr.bf16.mxu1 %v8971_v31 }
 0x553   : > { %8006 = vmatmul.mubr.bf16.gmra.mrb[24].mxu1 %v10045_v7  ;;  %v5418_v7 = vpack.c.bf16 %v5398_v34, %v10061_v56  ;;  %v5682_v56 = vld [vmem:[#allocation3 + $0x4a] sm:$0xff]  ;;  %v5700_v34 = vld [vmem:[#allocation3 + $0x122] sm:$0xff] }
 0x554   : > { %8009 = vmatprep.mubr.bf16.mxu1 %v10049_v23  ;;  %8038 = vmatpush3.bf16.msra.mxu1 %v8971_v31  ;;  %v5402_v23 = vld [vmem:[#allocation3 + $0x171] sm:$0xff]  ;;  %v5713_v54 = vpack.c.bf16 %v5683_v1, %v5682_v56  ;;  %v5719_v31 = vpack.c.bf16 %v5695_v4, %v5694_v53  ;;  %v5711_v56 = vld [vmem:[#allocation3 + $0x1a2] sm:$0xff] }
 0x555   : > { %8039 = vmatprep.subr.bf16.mxu1 %v8972_v13 }
 0x558   : > { %8040 = vmatpush3.bf16.msra.mxu1 %v8972_v13  ;;  %v8982_v13 = vld [vmem:[#allocation10 + $0x38] sm:$0xff]  }
 0x559   : > { %8041 = vmatprep.subr.bf16.mxu1 %v8973_v37 }
 0x55b   : > { %8010 = vmatmul.mubr.bf16.gmra.mrb[28].mxu1 %v10051_v59  ;;  %v5401_v59 = vld [vmem:[#allocation3 + $0x169] sm:$0xff] }
 0x55c   : > { %8013 = vmatprep.mubr.bf16.mxu1 %v10055_v58  ;;  %8042 = vmatpush3.bf16.msra.mxu1 %v8973_v37  ;;  %v5420_v36 = vpack.c.bf16 %v5402_v23, %v5401_v59  ;;  %v5403_v58 = vld [vmem:[#allocation3 + $0x181] sm:$0xff]  ;;  %v5720_v37 = vpack.c.bf16 %v5697_v22, %v5696_v25 }
 0x55d   : > { %8043 = vmatprep.subr.bf16.mxu1 %v8974_v49  ;;  %v5421_v6 = vpack.c.bf16 %v5404_v5, %v5403_v58  ;;  %v5702_v59 = vld [vmem:[#allocation3 + $0x13a] sm:$0xff]  ;;  %v5704_v58 = vld [vmem:[#allocation3 + $0x152] sm:$0xff] }
 0x560   : > { %8044 = vmatpush3.bf16.msra.mxu1 %v8974_v49  ;;  %v5698_v49 = vld [vmem:[#allocation3 + $0x10a] sm:$0xff] }
 0x561   : > { %8077 = vmatprep.subr.bf16.mxu1 %v8975_v3 }
 0x563   : > { %8014 = vmatmul.mubr.bf16.gmra.mrb[0].mxu1 %v10057_v48  ;;  %v5680_v48 = vld [vmem:[#allocation3 + $0x32] sm:$0xff] }
 0x564   : > { %8017 = vmatprep.mubr.bf16.mxu1 %v10063_v10  ;;  %v5712_v10 = vpack.c.bf16 %v5681_v15, %v5680_v48  ;;  %v5707_v48 = vld [vmem:[#allocation3 + $0x172] sm:$0xff] }
 0x56b   : > { %8018 = vmatmul.mubr.bf16.gmra.mrb[4].mxu1 %v5418_v7  ;;  %v5701_v7 = vld [vmem:[#allocation3 + $0x12a] sm:$0xff] }
 0x56c   : > { %8021 = vmatprep.mubr.bf16.mxu1 %v10068_v19  ;;  %v5685_v19 = vld [vmem:[#allocation3 + $0x6a] sm:$0xff]  ;;  %v5722_v5 = vpack.c.bf16 %v5701_v7, %v5700_v34  ;;  %v8159_v34 = vadd.f32 %v10002_v12, %v10125_v8 }
 0x56d   : > { %v5714_v40 = vpack.c.bf16 %v5685_v19, %v5684_v32  ;;  %v9017_v32 = vld [vmem:[%s9483_s20] sm:$0xff]   ;;  %v9018_v19 = vld [vmem:[%s9483_s20 + $0x8] sm:$0xff]  }
 0x573   : > { %8022 = vmatmul.mubr.bf16.gmra.mrb[8].mxu1 %v5420_v36  ;;  %v5703_v36 = vld [vmem:[#allocation3 + $0x142] sm:$0xff] }
 0x574   : > { %8025 = vmatprep.mubr.bf16.mxu1 %v5421_v6  ;;  %v5705_v6 = vld [vmem:[#allocation3 + $0x15a] sm:$0xff]  ;;  %v5723_v18 = vpack.c.bf16 %v5703_v36, %v5702_v59 }
 0x575   : > { %v5724_v62 = vpack.c.bf16 %v5705_v6, %v5704_v58 }
 0x57b   : > { %8026 = vmatmul.mubr.bf16.gmra.mrb[12].mxu1 %v5422_v63  ;;  %v5706_v63 = vld [vmem:[#allocation3 + $0x16a] sm:$0xff] }
 0x57c   : > { %8045 = vmatprep.mubr.bf16.mxu1 %v5712_v10  ;;  %v5725_v15 = vpack.c.bf16 %v5707_v48, %v5706_v63  ;;  %v5710_v10 = vld [vmem:[#allocation3 + $0x19a] sm:$0xff]  ;;  %v8165_v48 = vadd.f32 %v10008_v16, %v10125_v8 }
 0x57d   : > { %v5727_v1 = vpack.c.bf16 %v5711_v56, %v5710_v10 }
 0x583   : > { %8046 = vmatmul.mubr.bf16.vlgmr.msra.gmra.mrb[16].mxu1 %v5713_v54  ;;  %v9019_v54 = vld [vmem:[%s9483_s20 + $0x10] sm:$0xff]  }
 0x584   : > { %8049 = vmatprep.mubr.bf16.mxu1 %v5714_v40  ;;  %8078 = vmatpush3.bf16.msra.mxu1 %v8975_v3  ;;  %v5699_v3 = vld [vmem:[#allocation3 + $0x112] sm:$0xff] }
 0x585   : > { %8079 = vmatprep.subr.bf16.mxu1 %v8976_v24  ;;  %v5721_v23 = vpack.c.bf16 %v5699_v3, %v5698_v49  ;;  %v9021_v40 = vld [vmem:[%s9483_s20 + $0x20] sm:$0xff]  }
 0x588   : > { %8080 = vmatpush3.bf16.msra.mxu1 %v8976_v24  ;;  %v9020_v24 = vld [vmem:[%s9483_s20 + $0x18] sm:$0xff]  }
 0x589   : > { %8081 = vmatprep.subr.bf16.mxu1 %v8977_v14 }
 0x58b   : > { %8050 = vmatmul.mubr.bf16.gmra.mrb[20].mxu1 %v5715_v41  ;;  %v9028_v41 = vld [vmem:[%s9483_s20 + $0x58] sm:$0xff]  }
 0x58c   : > { %8053 = vmatprep.mubr.bf16.mxu1 %v5716_v57  ;;  %8082 = vmatpush3.bf16.msra.mxu1 %v8977_v14  ;;  %v9023_v14 = vld [vmem:[%s9483_s20 + $0x30] sm:$0xff]   ;;  %v9030_v57 = vld [vmem:[%s9483_s20 + $0x68] sm:$0xff]  }
 0x58d   : > { %8083 = vmatprep.subr.bf16.mxu1 %v8978_v29 }
 0x590   : > { %8084 = vmatpush3.bf16.msra.mxu1 %v8978_v29  ;;  %v9029_v29 = vld [vmem:[%s9483_s20 + $0x60] sm:$0xff]  }
 0x591   : > { %8085 = vmatprep.subr.bf16.mxu1 %v8979_v47 }
 0x593   : > { %8054 = vmatmul.mubr.bf16.gmra.mrb[24].mxu1 %v5717_v27  ;;  %v10134_v27 = vld [vmem:[%s10292_s6] ss:$0 sm:$0xff] }
 0x594   : > { %8057 = vmatprep.mubr.bf16.mxu1 %v5718_v52  ;;  %8086 = vmatpush3.bf16.msra.mxu1 %v8979_v47  ;;  %v9031_v47 = vld [vmem:[%s9483_s20 + $0x70] sm:$0xff]   ;;  %v8144_v52 = vadd.f32 %v10125_v8, %v9990_v55  ;;  %v8148_v60 = vadd.f32 %v8147_v35, %v10134_v27  ;;  %v8151_v21 = vadd.f32 %v8150_v9, %v10134_v27 }
 0x595   : > { %8087 = vmatprep.subr.bf16.mxu1 %v8980_v33  ;;  %v8156_v55 = vadd.f32 %v10125_v8, %v10000_v11  ;;  %v8160_v6 = vadd.f32 %v8159_v34, %v10134_v27  ;;  %v8166_v16 = vadd.f32 %v8165_v48, %v10134_v27 }
 0x597   : > { %v8157_v36 = vadd.f32 %v8156_v55, %v10134_v27 }
 0x598   : > { %8088 = vmatpush3.bf16.msra.mxu1 %v8980_v33  ;;  %v8141_v33 = vadd.f32 %v9988_v46, %v10125_v8 }
 0x599   : > { %8089 = vmatprep.subr.bf16.mxu1 %v8981_v38 }
 0x59b   : > { %8058 = vmatmul.mubr.bf16.gmra.mrb[28].mxu1 %v5719_v31  ;;  %v8153_v31 = vadd.f32 %v9998_v42, %v10125_v8 }
 0x59c   : > { %8061 = vmatprep.mubr.bf16.mxu1 %v5720_v37  ;;  %8090 = vmatpush3.bf16.msra.mxu1 %v8981_v38 }
 0x59d   : > { %8091 = vmatprep.subr.bf16.mxu1 %v8982_v13  ;;  %v8154_v11 = vadd.f32 %v8153_v31, %v10134_v27 }
 0x5a0   : > { %8092 = vmatpush3.bf16.msra.mxu1 %v8982_v13 }
 0x5a3   : > { %8062 = vmatmul.mubr.bf16.gmra.mrb[0].mxu1 %v5721_v23 }
 0x5a4   : > { %8065 = vmatprep.mubr.bf16.mxu1 %v5722_v5  ;;  %v8162_v5 = vadd.f32 %v10125_v8, %v10004_v17 }
 0x5a6   : > { %v8163_v63 = vadd.f32 %v8162_v5, %v10134_v27 }
 0x5ab   : > { %8066 = vmatmul.mubr.bf16.gmra.mrb[4].mxu1 %v5723_v18 }
 0x5ac   : > { %8069 = vmatprep.mubr.bf16.mxu1 %v5724_v62 }
 0x5b3   : > { %8070 = vmatmul.mubr.bf16.gmra.mrb[8].mxu1 %v5725_v15 }
 0x5b4   : > { %8073 = vmatprep.mubr.bf16.mxu1 %v10088_v28  ;;  %v9022_v28 = vld [vmem:[%s9483_s20 + $0x28] sm:$0xff]   ;;  %s9147_s20 = scalar_lea.vmem %s10239_s16, 4096 }
 0x5b5   : > { %p9148_p10 = scmp.ne.s32.totalorder %s10239_s16, %s9147_s20  ;;  %p9155_p1 = scmp.lt.s32.totalorder %s9153_s13, %s9147_s20 }
 0x5b7   : > { %p9149_p3 = pnand %p9148_p10, %p9428_p5  ;;  %p9156_p2 = por %p9155_p1, %p9154_p12 }
 0x5b9   : > { %p9150_p7 = pneg %p9149_p3 }
 0x5bb   : > { %8074 = vmatmul.mubr.bf16.gmra.mrb[12].mxu1 %v5727_v1  ;;  %v8168_v1 = vadd.f32 %v10125_v8, %v10010_v45  ;;  %p9157_p4 = pnand %p9156_p2, %p9150_p7 }
 0x5bc   : > { %8093 = vmatprep.mubr.bf16.mxu1 %v9017_v32 }
 0x5bd   : > { %v8169_v45 = vadd.f32 %v8168_v1, %v10134_v27 }
 0x5c3   : > { %8094 = vmatmul.mubr.bf16.vlgmr.msra.gmra.mrb[16].mxu1 %v9018_v19 }
 0x5c4   : > { %8097 = vmatprep.mubr.bf16.mxu1 %v9019_v54  ;;  %v8171_v54 = vadd.f32 %v10012_v30, %v10125_v8 }
 0x5c6   : > { %v8172_v30 = vadd.f32 %v8171_v54, %v10134_v27 }
 0x5cb   : > { %8098 = vmatmul.mubr.bf16.gmra.mrb[20].mxu1 %v9020_v24 }
 0x5cc   : > { %8101 = vmatprep.mubr.bf16.mxu1 %v9021_v40  ;;  %v8174_v40 = vadd.f32 %v10125_v8, %v10014_v43 }
 0x5ce   : > { %v8175_v43 = vadd.f32 %v8174_v40, %v10134_v27 }
 0x5d3   : > { %8102 = vmatmul.mubr.bf16.gmra.mrb[24].mxu1 %v9022_v28 }
 0x5d4   : > { %8105 = vmatprep.mubr.bf16.mxu1 %v9023_v14 }
 0x5db   : > { %8106 = vmatmul.mubr.bf16.gmra.mrb[28].mxu1 %v9024_v20 }
 0x5dc   : > { %8109 = vmatprep.mubr.bf16.mxu1 %v9025_v26 }
 0x5e3   : > { %8110 = vmatmul.mubr.bf16.gmra.mrb[0].mxu1 %v9026_v39 }
 0x5e4   : > { %8113 = vmatprep.mubr.bf16.mxu1 %v9027_v61 }
 0x5eb   : > { %8114 = vmatmul.mubr.bf16.gmra.mrb[4].mxu1 %v9028_v41  ;;  %v8177_v41 = vadd.f32 %v10018_v2, %v10125_v8 }
 0x5ec   : > { %8117 = vmatprep.mubr.bf16.mxu1 %v9029_v29 }
 0x5ed   : > { %v8178_v2 = vadd.f32 %v8177_v41, %v10134_v27 }
 0x5f3   : > { %8118 = vmatmul.mubr.bf16.gmra.mrb[8].mxu1 %v9030_v57 }
 0x5f4   : > { %8121 = vmatprep.mubr.bf16.mxu1 %v9031_v47 }
 0x5fb   : > { %8122 = vmatmul.mubr.bf16.gmra.mrb[12].mxu1 %v9032_v0  ;;  %v8180_v0 = vadd.f32 %v10125_v8, %v10020_v44 }
 0x5fd   : > { %v8181_v44 = vadd.f32 %v8180_v0, %v10134_v27 }
 0x696   : > { %v8095_v38 = vpop.f32.mrb[16].mxu1 }
 0x697   : > { %v8142_v53 = vadd.f32 %v8141_v33, %v8095_v38  ;;  %v6225_v4 = vpop.f32.mrb[17].mxu1  ;;  %v8183_v33 = vadd.f32 %v10022_v51, %v10125_v8  ;;  %v8186_v38 = vadd.f32 %v10125_v8, %v10024_v50 }
 0x698   : > { %v8145_v25 = vadd.f32 %v8144_v52, %v6225_v4  ;;  %v8096_v22 = vpop.f32.mrb[18].mxu1 }
 0x699   : > { %v8143_v13 = vadd.f32 %v8142_v53, %v10134_v27  ;;  %v8149_v37 = vadd.f32 %v8148_v60, %v8096_v22  ;;  %v6228_v46 = vpop.f32.mrb[19].mxu1  ;;  %v8184_v51 = vadd.f32 %v8183_v33, %v10134_v27  ;;  %v8187_v50 = vadd.f32 %v8186_v38, %v10134_v27 }
 0x69a   : > { %v8146_v49 = vadd.f32 %v8145_v25, %v10134_v27  ;;  %v8152_v3 = vadd.f32 %v8151_v21, %v6228_v46 }
 0x69b   : > { %v6386_v7 = vmax.f32 %v8143_v13, 0.0  ;;  %v6387_v23 = vmax.f32 %v8149_v37, 0.0 }
 0x69c   : > { %v6384_v59 = vmax.f32 %v8146_v49, 0.0  ;;  %v6385_v42 = vmax.f32 %v8152_v3, 0.0  ;;  %v10198_v3 = vadd.f32 %v10134_v27, %v10125_v8 }
 0x69d   : > { %6418 = vst [vmem:[%s10153_s12 + $0x10] sm:$0xff] %v6386_v7  ;;  %6419 = vst [vmem:[%s10153_s12 + $0x18] sm:$0xff] %v6387_v23 }
 0x69e   : > { %6416 = vst [vmem:[%s10153_s12] sm:$0xff] %v6384_v59  ;;  %6417 = vst [vmem:[%s10153_s12 + $0x8] sm:$0xff] %v6385_v42  ;;  %v8099_v12 = vpop.f32.mrb[20].mxu1 }
 0x69f   : > { %v8155_v58 = vadd.f32 %v8154_v11, %v8099_v12  ;;  %v6241_v17 = vpop.f32.mrb[21].mxu1 }
 0x6a0   : > { %v8158_v18 = vadd.f32 %v8157_v36, %v6241_v17  ;;  %v8100_v62 = vpop.f32.mrb[22].mxu1 }
 0x6a1   : > { %v6390_v15 = vmax.f32 %v8155_v58, 0.0  ;;  %v8161_v10 = vadd.f32 %v8160_v6, %v8100_v62  ;;  %v6244_v56 = vpop.f32.mrb[23].mxu1 }
 0x6a2   : > { %v6388_v32 = vmax.f32 %v8158_v18, 0.0  ;;  %v8164_v19 = vadd.f32 %v8163_v63, %v6244_v56 }
 0x6a3   : > { %6422 = vst [vmem:[%s10153_s12 + $0x30] sm:$0xff] %v6390_v15  ;;  %v6391_v24 = vmax.f32 %v8161_v10, 0.0 }
 0x6a4   : > { %6420 = vst [vmem:[%s10153_s12 + $0x20] sm:$0xff] %v6388_v32  ;;  %v6389_v28 = vmax.f32 %v8164_v19, 0.0 }
 0x6a5   : > { %6423 = vst [vmem:[%s10153_s12 + $0x38] sm:$0xff] %v6391_v24 }
 0x6a6   : > { %6421 = vst [vmem:[%s10153_s12 + $0x28] sm:$0xff] %v6389_v28  ;;  %v8103_v14 = vpop.f32.mrb[24].mxu1 }
 0x6a7   : > { %v8167_v20 = vadd.f32 %v8166_v16, %v8103_v14  ;;  %v6257_v26 = vpop.f32.mrb[25].mxu1 }
 0x6a8   : > { %v8170_v39 = vadd.f32 %v8169_v45, %v6257_v26  ;;  %v8104_v61 = vpop.f32.mrb[26].mxu1 }
 0x6a9   : > { %v6394_v29 = vmax.f32 %v8167_v20, 0.0  ;;  %v8173_v57 = vadd.f32 %v8172_v30, %v8104_v61  ;;  %v6260_v47 = vpop.f32.mrb[27].mxu1 }
 0x6aa   : > { %v6392_v35 = vmax.f32 %v8170_v39, 0.0  ;;  %v8176_v9 = vadd.f32 %v8175_v43, %v6260_v47 }
 0x6ab   : > { %6426 = vst [vmem:[%s10153_s12 + $0x50] sm:$0xff] %v6394_v29  ;;  %v6395_v52 = vmax.f32 %v8173_v57, 0.0 }
 0x6ac   : > { %6424 = vst [vmem:[%s10153_s12 + $0x40] sm:$0xff] %v6392_v35  ;;  %v6393_v53 = vmax.f32 %v8176_v9, 0.0 }
 0x6ad   : > { %6427 = vst [vmem:[%s10153_s12 + $0x58] sm:$0xff] %v6395_v52 }
 0x6ae   : > { %6425 = vst [vmem:[%s10153_s12 + $0x48] sm:$0xff] %v6393_v53  ;;  %v8107_v4 = vpop.f32.mrb[28].mxu1 }
 0x6af   : > { %v8179_v60 = vadd.f32 %v8178_v2, %v8107_v4  ;;  %v6273_v25 = vpop.f32.mrb[29].mxu1 }
 0x6b0   : > { %v8182_v22 = vadd.f32 %v8181_v44, %v6273_v25  ;;  %v8108_v21 = vpop.f32.mrb[30].mxu1 }
 0x6b1   : > { %v6398_v31 = vmax.f32 %v8179_v60, 0.0  ;;  %v8185_v13 = vadd.f32 %v8184_v51, %v8108_v21  ;;  %v6276_v37 = vpop.f32.mrb[31].mxu1 }
 0x6b2   : > { %v6396_v46 = vmax.f32 %v8182_v22, 0.0  ;;  %v8188_v55 = vadd.f32 %v8187_v50, %v6276_v37 }
 0x6b3   : > { %6430 = vst [vmem:[%s10153_s12 + $0x70] sm:$0xff] %v6398_v31  ;;  %v6399_v49 = vmax.f32 %v8185_v13, 0.0 }
 0x6b4   : > { %6428 = vst [vmem:[%s10153_s12 + $0x60] sm:$0xff] %v6396_v46  ;;  %v6397_v34 = vmax.f32 %v8188_v55, 0.0 }
 0x6b5   : > { %6431 = vst [vmem:[%s10153_s12 + $0x78] sm:$0xff] %v6399_v49 }
 0x6b6   : > { %6429 = vst [vmem:[%s10153_s12 + $0x68] sm:$0xff] %v6397_v34  ;;  %v8111_v7 = vpop.f32.mrb[0].mxu1 }
 0x6b7   : > { %v8190_v23 = vadd.f32 %v10198_v3, %v8111_v7  ;;  %v6289_v5 = vpop.f32.mrb[1].mxu1 }
 0x6b8   : > { %v8192_v59 = vadd.f32 %v10198_v3, %v6289_v5  ;;  %v8112_v42 = vpop.f32.mrb[2].mxu1 }
 0x6b9   : > { %v6402_v11 = vmax.f32 %v8190_v23, 0.0  ;;  %v8194_v12 = vadd.f32 %v10198_v3, %v8112_v42  ;;  %v6292_v36 = vpop.f32.mrb[3].mxu1 }
 0x6ba   : > { %v6400_v8 = vmax.f32 %v8192_v59, 0.0  ;;  %v8196_v27 = vadd.f32 %v10198_v3, %v6292_v36 }
 0x6bb   : > { %6434 = vst [vmem:[%s10153_s12 + $0x90] sm:$0xff] %v6402_v11  ;;  %v6403_v58 = vmax.f32 %v8194_v12, 0.0 }
 0x6bc   : > { %6432 = vst [vmem:[%s10153_s12 + $0x80] sm:$0xff] %v6400_v8  ;;  %v6401_v17 = vmax.f32 %v8196_v27, 0.0 }
 0x6bd   : > { %6435 = vst [vmem:[%s10153_s12 + $0x98] sm:$0xff] %v6403_v58 }
 0x6be   : > { %6433 = vst [vmem:[%s10153_s12 + $0x88] sm:$0xff] %v6401_v17  ;;  %v8115_v6 = vpop.f32.mrb[4].mxu1 }
 0x6bf   : > { %v8198_v18 = vadd.f32 %v10198_v3, %v8115_v6  ;;  %v6305_v62 = vpop.f32.mrb[5].mxu1 }
 0x6c0   : > { %v8200_v63 = vadd.f32 %v10198_v3, %v6305_v62  ;;  %v8116_v48 = vpop.f32.mrb[6].mxu1 }
 0x6c1   : > { %v6406_v15 = vmax.f32 %v8198_v18, 0.0  ;;  %v8202_v10 = vadd.f32 %v10198_v3, %v8116_v48  ;;  %v6308_v56 = vpop.f32.mrb[7].mxu1 }
 0x6c2   : > { %v6404_v1 = vmax.f32 %v8200_v63, 0.0  ;;  %v8204_v32 = vadd.f32 %v10198_v3, %v6308_v56 }
 0x6c3   : > { %6438 = vst [vmem:[%s10153_s12 + $0xb0] sm:$0xff] %v6406_v15  ;;  %v6407_v19 = vmax.f32 %v8202_v10, 0.0 }
 0x6c4   : > { %6436 = vst [vmem:[%s10153_s12 + $0xa0] sm:$0xff] %v6404_v1  ;;  %v6405_v54 = vmax.f32 %v8204_v32, 0.0 }
 0x6c5   : > { %6439 = vst [vmem:[%s10153_s12 + $0xb8] sm:$0xff] %v6407_v19 }
 0x6c6   : > { %6437 = vst [vmem:[%s10153_s12 + $0xa8] sm:$0xff] %v6405_v54  ;;  %v8119_v24 = vpop.f32.mrb[8].mxu1 }
 0x6c7   : > { %v8206_v40 = vadd.f32 %v10198_v3, %v8119_v24  ;;  %v6321_v28 = vpop.f32.mrb[9].mxu1 }
 0x6c8   : > { %v8208_v16 = vadd.f32 %v10198_v3, %v6321_v28  ;;  %v8120_v14 = vpop.f32.mrb[10].mxu1 }
 0x6c9   : > { %v6410_v45 = vmax.f32 %v8206_v40, 0.0  ;;  %v8210_v20 = vadd.f32 %v10198_v3, %v8120_v14  ;;  %v6324_v26 = vpop.f32.mrb[11].mxu1 }
 0x6ca   : > { %v6408_v30 = vmax.f32 %v8208_v16, 0.0  ;;  %v8212_v39 = vadd.f32 %v10198_v3, %v6324_v26 }
 0x6cb   : > { %6442 = vst [vmem:[%s10153_s12 + $0xd0] sm:$0xff] %v6410_v45  ;;  %v6411_v61 = vmax.f32 %v8210_v20, 0.0 }
 0x6cc   : > { %6440 = vst [vmem:[%s10153_s12 + $0xc0] sm:$0xff] %v6408_v30  ;;  %v6409_v43 = vmax.f32 %v8212_v39, 0.0 }
 0x6cd   : > { %6443 = vst [vmem:[%s10153_s12 + $0xd8] sm:$0xff] %v6411_v61 }
 0x6ce   : > { %6441 = vst [vmem:[%s10153_s12 + $0xc8] sm:$0xff] %v6409_v43  ;;  %v8123_v41 = vpop.f32.mrb[12].mxu1 }
 0x6cf   : > { %v8214_v29 = vadd.f32 %v10198_v3, %v8123_v41  ;;  %v6337_v57 = vpop.f32.mrb[13].mxu1 }
 0x6d0   : > { %v8216_v47 = vadd.f32 %v10198_v3, %v6337_v57  ;;  %v8124_v0 = vpop.f32.mrb[14].mxu1 }
 0x6d1   : > { %v6414_v35 = vmax.f32 %v8214_v29, 0.0  ;;  %v8218_v9 = vadd.f32 %v10198_v3, %v8124_v0  ;;  %v6340_v33 = vpop.f32.mrb[15].mxu1 }
 0x6d2   : > { %v6412_v52 = vmax.f32 %v8216_v47, 0.0  ;;  %v8220_v38 = vadd.f32 %v10198_v3, %v6340_v33 }
 0x6d3   : > { %6446 = vst [vmem:[%s10153_s12 + $0xf0] sm:$0xff] %v6414_v35  ;;  %v6415_v53 = vmax.f32 %v8218_v9, 0.0 }
 0x6d4   : > { %6444 = vst [vmem:[%s10153_s12 + $0xe0] sm:$0xff] %v6412_v52  ;;  %v6413_v2 = vmax.f32 %v8220_v38, 0.0 }
 0x6d5   : > { %6447 = vst [vmem:[%s10153_s12 + $0xf8] sm:$0xff] %v6415_v53 }
 0x6d6   : > { %6445 = vst [vmem:[%s10153_s12 + $0xe8] sm:$0xff] %v6413_v2 }
 0x6d7   : > { %9160 = shalt.err (!%p9157_p4)
}
 0x6d8   : > { %s9161_s15 = scalar_lea.hbm %s10237_s11, 4096  ;;  %s9165_s8 = scalar_lea.hbm %s10293_s7, 8192 }
 0x6d9   : > { %p9162_p9 = scmp.ne.s32.totalorder %s10237_s11, %s9161_s15  ;;  %p9166_p8 = scmp.lt.u32.totalorder %s10237_s11, %s10293_s7 }
 0x6da   : > { %p9167_p13 = scmp.lt.u32.totalorder %s9165_s8, %s9161_s15  ;;  %p9169_p10 = scmp.lt.u32.totalorder %s9161_s15, %s10237_s11 }
 0x6db   : > { %p9163_p0 = pnand %p9162_p9, %p9428_p5 }
 0x6dc   : > { %p9168_p6 = por %p9167_p13, %p9166_p8 }
 0x6dd   : > { %p9164_p11 = pneg %p9163_p0 }
 0x6de   : > { %p9170_p3 = por %p9169_p10, %p9168_p6 }
 0x6e0   : > { %p9171_p7 = pnand %p9170_p3, %p9164_p11 }
 0x6e2   : > { %9174 = shalt.err (!%p9171_p7)
}
 0x6e3   : > { %s9232_s29 = smov 128   ;;  %s9233_s23 = smov 8  }
 0x6e4   : > { %8763 = dma.vmem_to_hbm [thread:$0]  (%p9428_p5), %s10239_s16, 4096, %s10237_s11, %s6449_s28, %s9232_s29, %s9232_s29, %s9233_s23  }
 0x6e5 PF: > { %s10313_s20 = sld [smem:[#allocation17_spill]]  ;;  %s6477_s30 = sand.u32 1, %s9209_s24  }
 0x6e6   : > { %p10315_p1 = scmp.ge.s32.totalorder %s9221_s27, 2  ;;  %s6478_s9 = scalar_lea.sflag [#allocation6], %s6477_s30 }
 0x6eb   : > { %p10314_p12 = scmp.ne.s32.totalorder %s10313_s20, 0 }
 0x6ed   : > { %p8780_p2 = pnand %p10315_p1, %p10314_p12 }
 0x6ef   : > { %9204 = dma.done.wait (!%p8780_p2), %s6478_s9, 4096  }
 0x6f0   : > { %9206 = vsyncadd (!%p8780_p2), %s6478_s9, 4294963200  ;;  %p22_p4 = scmp.ge.s32.totalorder %s9414_s22, 4   ;;  %s10316_s24 = smov %s9213_s25 }
 0x6f1   : > { %s10317_s25 = smov %s9217_s26  ;;  %s10318_s26 = smov %s9424_s18 }
 0x6f2   : > { %s10319_s27 = smov %s9414_s22  ;;  %24 = sbr.rel (!%p22_p4) target bundleno = 7 (0x7), region = 111 }
 0x6f9   :  { %6483 = vsyncpa [#allocation5], 1 }
 0x6fa   :  { %6485 = vsyncpa [#allocation5 + $0x1], 1 }
 0x6fb   :  { %6486 = vsyncpa [#allocation8], 1 }
 0x6fc   :  { %6487 = vsyncpa [#allocation11], 1 }
 0x6fd   :  { %6488 = vsyncpa [#allocation6], 1 }
 0x6fe   :  { %6490 = vsyncpa [#allocation6 + $0x1], 1 }

</bundles_post_ra>
